<compile_context>
chip_gen: v7x
topology: tpu7x:2x2x1
jax: 0.10.0
libtpu: 0.0.40
codegen_flags: <defaults>
</compile_context>

<pallas_src>
import functools

import jax
import jax.numpy as jnp
from jax import lax
from jax.experimental import pallas as pl
from jax.experimental.pallas import tpu as pltpu


_VMEM_LIMIT_BYTES = 48 * 1024 * 1024   # <= v7x 64 MiB physical; >> v5e 16 MiB default


def _round_up(n, m):
    return ((n + m - 1) // m) * m


def _sigmoid(x):
    # sigmoid(x) = 0.5*tanh(0.5*x) + 0.5 : one EUP op per gate instead of the
    # exp + reciprocal lowering (EUP is the binding slot at small batch).
    return 0.5 * jnp.tanh(0.5 * x) + 0.5


def _weight_spec(shape, index_map, single_buffer):
    """BlockSpec for a grid-invariant operand; single-buffer it to halve VMEM."""
    if single_buffer:
        return pl.BlockSpec(shape, index_map, pipeline_mode=pl.Buffered(1))
    return pl.BlockSpec(shape, index_map)


# ------------------ Kernel A: input projection (parallel over time blocks) -----------
def input_proj_kernel(x_ref, wih_ref, b_ref, gx_ref):
    TT, B, I = x_ref.shape
    G4 = gx_ref.shape[-1]
    # (TT, B, I) -> (TT*B, I): collapses leading dims onto the sublane axis (B % 8 == 0)
    # on the f32 input, then casts to bf16 for a native-rate MXU matmul.
    x2d = x_ref[...].reshape(TT * B, I).astype(jnp.bfloat16)
    g = jnp.dot(x2d, wih_ref[...], preferred_element_type=jnp.float32) + b_ref[...]
    gx_ref[...] = g.reshape(TT, B, G4).astype(gx_ref.dtype)   # bf16 store


# --------- Kernel B: recurrence + fused output Linear (batch-parallel, time-serial) ---
def lstm_recurrence_kernel(gx_ref, whh_ref, wl_ref, bl_ref, y_ref,
                           h_scr, c_scr, hblk_scr, *, hidden, steps, unroll):
    # A new batch chunk starts its time sweep at time-block 0 -> reset carries
    # (torch default h0 = c0 = 0).
    @pl.when(pl.program_id(1) == 0)
    def _():
        h_scr[...] = jnp.zeros_like(h_scr)
        c_scr[...] = jnp.zeros_like(c_scr)

    Hp = hidden

    def step(s, carry):
        h_prev = h_scr[...]                      # (BC, Hp) f32 carry
        c_prev = c_scr[...]
        # Only this small bf16 matmul sits on the serial h->h critical path.
        gates = gx_ref[s].astype(jnp.float32) + jnp.dot(
            h_prev.astype(jnp.bfloat16), whh_ref[...],
            preferred_element_type=jnp.float32)
        # Hp is a multiple of 128 -> all four gate slices are 128-lane aligned.
        i_g = _sigmoid(gates[:, 0 * Hp:1 * Hp])
        f_g = _sigmoid(gates[:, 1 * Hp:2 * Hp])
        g_g = jnp.tanh(gates[:, 2 * Hp:3 * Hp])
        o_g = _sigmoid(gates[:, 3 * Hp:4 * Hp])
        c_new = f_g * c_prev + i_g * g_g
        h_new = o_g * jnp.tanh(c_new)
        c_scr[...] = c_new
        h_scr[...] = h_new
        hblk_scr[s] = h_new                      # block-local hidden-state buffer
        return carry

    # TT timesteps per grid step; bounded unroll keeps MXU/VPU/EUP overlap without
    # blowing up code size / vreg pressure when TT is large.
    lax.fori_loop(0, steps, step, 0, unroll=unroll)

    # Fused output Linear: one lane-dense batched matmul per block, off the serial
    # dependence chain (hides under the pipeline's writeback/prefetch).  Removes the
    # h_all HBM write + read of the unfused version.
    TT, BC, _ = hblk_scr.shape
    Op = y_ref.shape[-1]
    h2d = hblk_scr[...].reshape(TT * BC, Hp).astype(jnp.bfloat16)
    y = jnp.dot(h2d, wl_ref[...], preferred_element_type=jnp.float32) + bl_ref[...]
    y_ref[...] = y.reshape(TT, BC, Op).astype(y_ref.dtype)


def simple_lstm_forward(x, params, *, tt=None, single_buffer_weights=True):
    """x: (B, T, I) float32, batch-first (PyTorch convention). Returns (B, T, O) f32."""
    w_ih, w_hh, b_ih, b_hh, w_lin, b_lin = (
        params["w_ih"], params["w_hh"], params["b_ih"], params["b_hh"],
        params["w_lin"], params["b_lin"])

    B, T, I = x.shape
    H = w_hh.shape[1]          # w_hh: (4H, H)
    O = w_lin.shape[0]         # w_lin: (O, H)

    # ---- padding to native TPU tiles ----
    Bp = _round_up(B, 8)        # sublanes
    Hp = _round_up(H, 128)      # lanes (also 128-aligns the four gate slices)
    Op = _round_up(O, 128)      # lane-dense output store

    # Time-block size: aim for >= 256 MXU rows (TT*Bp) in the batched matmuls, but
    # never pad the time axis beyond the real sequence (padded steps are wasted
    # serial work) and cap the block so VMEM stays comfortably inside the budget.
    if tt is None:
        target = max(8, min(64, 256 // Bp))
        tt = min(_round_up(T, 8), _round_up(target, 8))
    TT = tt
    Tp = _round_up(T, TT)
    n_blocks = Tp // TT

    # Batch chunking of the recurrence: the h->c chain is independent per batch row,
    # so on v7x (2 TensorCores) the "parallel" batch axis shards the serial cost.
    # Chunk only when the halves stay 16-row aligned (bf16 sublane tiling).
    BC = Bp // 2 if (Bp >= 32 and Bp % 32 == 0) else Bp
    n_bchunks = Bp // BC

    # NOTE: for real H <= 64 the per-gate padding to Hp=128 inflates the gate axis,
    # W_hh FLOPs and gates_x HBM traffic by Hp/H (4x at H=32).  A packed-lane variant
    # (4H-lane gate axis + lane-iota mask choosing sigmoid vs tanh) removes that cost.
    # TODO(synk): packed-gate (unpadded) fast path for H <= 64; the padded path below
    # is kept because it is exact and shape-general.
    def _pad_gate_rows(w):
        # w: (4H, ...) stacked gate blocks [i, f, g, o]; pad each block to Hp rows.
        pads = ((0, Hp - H),) + tuple((0, 0) for _ in range(w.ndim - 1))
        return jnp.concatenate(
            [jnp.pad(w[k * H:(k + 1) * H], pads) for k in range(4)], axis=0)

    wih_p = _pad_gate_rows(w_ih)                                   # (4Hp, I)
    whh_p = jnp.pad(_pad_gate_rows(w_hh), ((0, 0), (0, Hp - H)))   # (4Hp, Hp)
    bias_p = _pad_gate_rows(b_ih + b_hh)                           # (4Hp,)
    wl_p = jnp.pad(w_lin, ((0, Op - O), (0, Hp - H)))              # (Op, Hp)
    bl_p = jnp.pad(b_lin, (0, Op - O))                             # (Op,)

    # bf16 matmul operands (f32 accumulation, f32 carries); f32 biases.
    wih_t = jnp.transpose(wih_p, (1, 0)).astype(jnp.bfloat16)      # (I, 4Hp)
    whh_t = jnp.transpose(whh_p, (1, 0)).astype(jnp.bfloat16)      # (Hp, 4Hp)
    wl_t = jnp.transpose(wl_p, (1, 0)).astype(jnp.bfloat16)        # (Hp, Op)
    bias = bias_p.reshape(1, 4 * Hp).astype(jnp.float32)
    bl = bl_p.reshape(1, Op).astype(jnp.float32)

    # Time-major + pad batch/time (one-time XLA transpose; time-major inside the
    # kernels avoids sublane shuffles on the serial path).
    x_tm = jnp.transpose(x, (1, 0, 2))
    x_tm = jnp.pad(x_tm, ((0, Tp - T), (0, Bp - B), (0, 0)))       # (Tp, Bp, I) f32

    par = pltpu.CompilerParams(dimension_semantics=("parallel",),
                               vmem_limit_bytes=_VMEM_LIMIT_BYTES)
    seq = pltpu.CompilerParams(dimension_semantics=("parallel", "arbitrary"),
                               vmem_limit_bytes=_VMEM_LIMIT_BYTES)

    wspec = functools.partial(_weight_spec, single_buffer=single_buffer_weights)

    # ---- Kernel A: G_x = x @ W_ih^T + (b_ih + b_hh), stored in bf16 ----
    gates_x = pl.pallas_call(
        input_proj_kernel,
        out_shape=jax.ShapeDtypeStruct((Tp, Bp, 4 * Hp), jnp.bfloat16),
        grid_spec=pltpu.PrefetchScalarGridSpec(
            num_scalar_prefetch=0,
            grid=(n_blocks,),
            in_specs=[
                pl.BlockSpec((TT, Bp, I), lambda t: (t, 0, 0)),
                wspec((I, 4 * Hp), lambda t: (0, 0)),
                wspec((1, 4 * Hp), lambda t: (0, 0)),
            ],
            out_specs=pl.BlockSpec((TT, Bp, 4 * Hp), lambda t: (t, 0, 0)),
        ),
        compiler_params=par,
    )(x_tm, wih_t, bias)

    # ---- Kernel B: sequential recurrence + fused output Linear ----
    y_tm = pl.pallas_call(
        functools.partial(lstm_recurrence_kernel, hidden=Hp, steps=TT,
                          unroll=min(8, TT)),
        out_shape=jax.ShapeDtypeStruct((Tp, Bp, Op), jnp.float32),
        grid_spec=pltpu.PrefetchScalarGridSpec(
            num_scalar_prefetch=0,
            grid=(n_bchunks, n_blocks),
            in_specs=[
                pl.BlockSpec((TT, BC, 4 * Hp), lambda b, t: (t, b, 0)),
                wspec((Hp, 4 * Hp), lambda b, t: (0, 0)),
                wspec((Hp, Op), lambda b, t: (0, 0)),
                wspec((1, Op), lambda b, t: (0, 0)),
            ],
            out_specs=pl.BlockSpec((TT, BC, Op), lambda b, t: (t, b, 0)),
            scratch_shapes=[
                pltpu.VMEM((BC, Hp), jnp.float32),        # h carry (f32)
                pltpu.VMEM((BC, Hp), jnp.float32),        # c carry (f32)
                pltpu.VMEM((TT, BC, Hp), jnp.float32),    # block hidden states
            ],
        ),
        compiler_params=seq,
    )(gates_x, whh_t, wl_t, bl)

    # Strip padding and return batch-first, matching torch output layout.
    return jnp.transpose(y_tm[:T, :B, :O], (1, 0, 2))


def reference_forward(x, params):
    """Pure-JAX f32 reference (matches torch.nn.LSTM + Linear semantics)."""
    w_ih, w_hh, b_ih, b_hh, w_lin, b_lin = (
        params["w_ih"], params["w_hh"], params["b_ih"], params["b_hh"],
        params["w_lin"], params["b_lin"])
    B, T, I = x.shape
    H = w_hh.shape[1]

    def step(carry, x_t):
        h, c = carry
        gates = x_t @ w_ih.T + b_ih + h @ w_hh.T + b_hh
        i = jax.nn.sigmoid(gates[:, 0 * H:1 * H])
        f = jax.nn.sigmoid(gates[:, 1 * H:2 * H])
        g = jnp.tanh(gates[:, 2 * H:3 * H])
        o = jax.nn.sigmoid(gates[:, 3 * H:4 * H])
        c = f * c + i * g
        h = o * jnp.tanh(c)
        return (h, c), h

    init = (jnp.zeros((B, H), jnp.float32), jnp.zeros((B, H), jnp.float32))
    _, hs = jax.lax.scan(step, init, jnp.transpose(x, (1, 0, 2)))
    hs = jnp.transpose(hs, (1, 0, 2))                  # (B, T, H)
    return hs @ w_lin.T + b_lin


def init_params(key, input_size, hidden_size, output_size):
    """Deterministic init mirroring PyTorch's U(-1/sqrt(H), 1/sqrt(H))."""
    ks = jax.random.split(key, 6)
    k_lstm = 1.0 / jnp.sqrt(hidden_size)
    k_lin = 1.0 / jnp.sqrt(hidden_size)
    u = lambda k, shape, lim: jax.random.uniform(k, shape, jnp.float32, -lim, lim)
    return {
        "w_ih": u(ks[0], (4 * hidden_size, input_size), k_lstm),
        "w_hh": u(ks[1], (4 * hidden_size, hidden_size), k_lstm),
        "b_ih": u(ks[2], (4 * hidden_size,), k_lstm),
        "b_hh": u(ks[3], (4 * hidden_size,), k_lstm),
        "w_lin": u(ks[4], (output_size, hidden_size), k_lin),
        "b_lin": u(ks[5], (output_size,), k_lin),
    }


if __name__ == "__main__":
    B, T, I, H, O = 4, 8, 16, 32, 8

    key = jax.random.PRNGKey(0)
    k_x, k_p = jax.random.split(key)
    x = jax.random.normal(k_x, (B, T, I), jnp.float32)
    params = init_params(k_p, I, H, O)

    try:
        fwd = jax.jit(functools.partial(simple_lstm_forward,
                                        single_buffer_weights=True))
        y = jax.block_until_ready(fwd(x, params))
    except Exception:
        # Fallback if single-buffered (pl.Buffered(1)) grid-invariant operands are
        # not supported by this Pallas build; semantics are identical.
        fwd = jax.jit(functools.partial(simple_lstm_forward,
                                        single_buffer_weights=False))
        y = jax.block_until_ready(fwd(x, params))

    y_ref = jax.block_until_ready(reference_forward(x, params))
    assert y.shape == (B, T, O)
    # bf16 matmul operands + bf16 gates intermediate vs f32 reference -> relaxed tol.
    err = float(jnp.max(jnp.abs(y - y_ref)))
    assert err < 5e-2, f"mismatch vs JAX reference, max abs err = {err}"

    print("KERNEL_OK")
</pallas_src>

<mosaic_0001>
module attributes {stable_mosaic.version = 11 : i64} {
  func.func @input_proj_kernel(%arg0: i32, %arg1: memref<8x8x16xf32, #tpu.memory_space<vmem>>, %arg2: memref<16x512xbf16, #tpu.memory_space<vmem>>, %arg3: memref<1x512xf32, #tpu.memory_space<vmem>>, %arg4: memref<8x8x512xbf16, #tpu.memory_space<vmem>>) attributes {dimension_semantics = [#tpu.dimension_semantics<parallel>], iteration_bounds = array<i64: 1>, scalar_prefetch = 0 : i64, scratch_operands = 0 : i64, tpu.core_type = #tpu.core_type<tc>, window_params = [{transform_indices = @transform_0, window_bounds = array<i64: 8, 8, 16>}, {pipeline_mode = #tpu.pipeline_mode<synchronous>, transform_indices = @transform_1, window_bounds = array<i64: 16, 512>}, {pipeline_mode = #tpu.pipeline_mode<synchronous>, transform_indices = @transform_2, window_bounds = array<i64: 1, 512>}, {transform_indices = @transform_3, window_bounds = array<i64: 8, 8, 512>}]} {
    %c0 = arith.constant 0 : index
    %c0_0 = arith.constant 0 : index
    %c0_1 = arith.constant 0 : index
    %0 = vector.load %arg1[%c0, %c0_0, %c0_1] : memref<8x8x16xf32, #tpu.memory_space<vmem>>, vector<8x8x16xf32>
    %1 = vector.shape_cast %0 : vector<8x8x16xf32> to vector<64x16xf32>
    %2 = arith.truncf %1 : vector<64x16xf32> to vector<64x16xbf16>
    %c0_2 = arith.constant 0 : index
    %c0_3 = arith.constant 0 : index
    %3 = vector.load %arg2[%c0_2, %c0_3] : memref<16x512xbf16, #tpu.memory_space<vmem>>, vector<16x512xbf16>
    %cst = arith.constant dense<0.000000e+00> : vector<64x512xf32>
    %4 = tpu.matmul %2, %3, %cst {dimension_numbers = #tpu.dot_dimension_numbers<[1], [0], [0], [1], [0, 0, 1, 1], [], []>} : vector<64x16xbf16>, vector<16x512xbf16>, vector<64x512xf32> -> vector<64x512xf32>
    %c0_4 = arith.constant 0 : index
    %c0_5 = arith.constant 0 : index
    %5 = vector.load %arg3[%c0_4, %c0_5] : memref<1x512xf32, #tpu.memory_space<vmem>>, vector<1x512xf32>
    %6 = vector.broadcast %5 : vector<1x512xf32> to vector<64x512xf32>
    %7 = arith.addf %4, %6 : vector<64x512xf32>
    %8 = vector.shape_cast %7 : vector<64x512xf32> to vector<8x8x512xf32>
    %9 = arith.truncf %8 : vector<8x8x512xf32> to vector<8x8x512xbf16>
    %c0_6 = arith.constant 0 : index
    %c0_7 = arith.constant 0 : index
    %c0_8 = arith.constant 0 : index
    %10 = vector.load %arg4[%c0_6, %c0_7, %c0_8] : memref<8x8x512xbf16, #tpu.memory_space<vmem>>, vector<8x8x512xbf16>
    tpu.vector_store %arg4[%c0_6, %c0_7, %c0_8], %9 {strides = array<i32>} : memref<8x8x512xbf16, #tpu.memory_space<vmem>>, vector<8x8x512xbf16>,
    return
  }
  func.func @transform_0(%arg0: i32) -> (i32, i32, i32) {
    %c0_i32 = arith.constant 0 : i32
    %c0_i32_0 = arith.constant 0 : i32
    %c0_i32_1 = arith.constant 0 : i32
    return %arg0, %c0_i32, %c0_i32_0 : i32, i32, i32
  }
  func.func @transform_1(%arg0: i32) -> (i32, i32) {
    %c0_i32 = arith.constant 0 : i32
    %c0_i32_0 = arith.constant 0 : i32
    %c0_i32_1 = arith.constant 0 : i32
    return %c0_i32, %c0_i32_0 : i32, i32
  }
  func.func @transform_2(%arg0: i32) -> (i32, i32) {
    %c0_i32 = arith.constant 0 : i32
    %c0_i32_0 = arith.constant 0 : i32
    %c0_i32_1 = arith.constant 0 : i32
    return %c0_i32, %c0_i32_0 : i32, i32
  }
  func.func @transform_3(%arg0: i32) -> (i32, i32, i32) {
    %c0_i32 = arith.constant 0 : i32
    %c0_i32_0 = arith.constant 0 : i32
    %c0_i32_1 = arith.constant 0 : i32
    return %arg0, %c0_i32, %c0_i32_0 : i32, i32, i32
  }
}

module attributes {stable_mosaic.version = 11 : i64} {
  func.func @lstm_recurrence_kernel(%arg0: i32, %arg1: i32, %arg2: memref<8x8x512xbf16, #tpu.memory_space<vmem>>, %arg3: memref<128x512xbf16, #tpu.memory_space<vmem>>, %arg4: memref<128x128xbf16, #tpu.memory_space<vmem>>, %arg5: memref<1x128xf32, #tpu.memory_space<vmem>>, %arg6: memref<8x8x128xf32, #tpu.memory_space<vmem>>, %arg7: memref<8x128xf32, #tpu.memory_space<vmem>>, %arg8: memref<8x128xf32, #tpu.memory_space<vmem>>, %arg9: memref<8x8x128xf32, #tpu.memory_space<vmem>>) attributes {dimension_semantics = [#tpu.dimension_semantics<parallel>, #tpu.dimension_semantics<arbitrary>], iteration_bounds = array<i64: 1, 1>, scalar_prefetch = 0 : i64, scratch_operands = 3 : i64, tpu.core_type = #tpu.core_type<tc>, window_params = [{transform_indices = @transform_0, window_bounds = array<i64: 8, 8, 512>}, {pipeline_mode = #tpu.pipeline_mode<synchronous>, transform_indices = @transform_1, window_bounds = array<i64: 128, 512>}, {pipeline_mode = #tpu.pipeline_mode<synchronous>, transform_indices = @transform_2, window_bounds = array<i64: 128, 128>}, {pipeline_mode = #tpu.pipeline_mode<synchronous>, transform_indices = @transform_3, window_bounds = array<i64: 1, 128>}, {transform_indices = @transform_4, window_bounds = array<i64: 8, 8, 128>}]} {
    %c0_i32 = arith.constant 0 : i32
    %0 = arith.cmpi eq, %arg1, %c0_i32 : i32
    %1 = arith.extui %0 : i1 to i32
    %c0_i32_0 = arith.constant 0 : i32
    %2 = arith.cmpi ne, %1, %c0_i32_0 : i32
    scf.if %2 {
      %cst_203 = arith.constant 0.000000e+00 : f32
      %389 = vector.broadcast %cst_203 : f32 to vector<8x128xf32>
      %c0_204 = arith.constant 0 : index
      %c0_205 = arith.constant 0 : index
      %390 = vector.load %arg7[%c0_204, %c0_205] : memref<8x128xf32, #tpu.memory_space<vmem>>, vector<8x128xf32>
      tpu.vector_store %arg7[%c0_204, %c0_205], %389 {strides = array<i32>} : memref<8x128xf32, #tpu.memory_space<vmem>>, vector<8x128xf32>,
      %cst_206 = arith.constant 0.000000e+00 : f32
      %391 = vector.broadcast %cst_206 : f32 to vector<8x128xf32>
      %c0_207 = arith.constant 0 : index
      %c0_208 = arith.constant 0 : index
      %392 = vector.load %arg8[%c0_207, %c0_208] : memref<8x128xf32, #tpu.memory_space<vmem>>, vector<8x128xf32>
      tpu.vector_store %arg8[%c0_207, %c0_208], %391 {strides = array<i32>} : memref<8x128xf32, #tpu.memory_space<vmem>>, vector<8x128xf32>,
    } else {
    }
    %c0_i32_1 = arith.constant 0 : i32
    %c0 = arith.constant 0 : index
    %c0_2 = arith.constant 0 : index
    %3 = vector.load %arg7[%c0, %c0_2] : memref<8x128xf32, #tpu.memory_space<vmem>>, vector<8x128xf32>
    %c0_3 = arith.constant 0 : index
    %c0_4 = arith.constant 0 : index
    %4 = vector.load %arg8[%c0_3, %c0_4] : memref<8x128xf32, #tpu.memory_space<vmem>>, vector<8x128xf32>
    %5 = arith.index_cast %c0_i32_1 : i32 to index
    %c0_5 = arith.constant 0 : index
    %c0_6 = arith.constant 0 : index
    %6 = vector.load %arg2[%5, %c0_5, %c0_6] : memref<8x8x512xbf16, #tpu.memory_space<vmem>>, vector<1x8x512xbf16>
    %7 = vector.shape_cast %6 : vector<1x8x512xbf16> to vector<8x512xbf16>
    %8 = arith.extf %7 : vector<8x512xbf16> to vector<8x512xf32>
    %9 = arith.truncf %3 : vector<8x128xf32> to vector<8x128xbf16>
    %c0_7 = arith.constant 0 : index
    %c0_8 = arith.constant 0 : index
    %10 = vector.load %arg3[%c0_7, %c0_8] : memref<128x512xbf16, #tpu.memory_space<vmem>>, vector<128x512xbf16>
    %cst = arith.constant dense<0.000000e+00> : vector<8x512xf32>
    %11 = tpu.matmul %9, %10, %cst {dimension_numbers = #tpu.dot_dimension_numbers<[1], [0], [0], [1], [0, 0, 1, 1], [], []>} : vector<8x128xbf16>, vector<128x512xbf16>, vector<8x512xf32> -> vector<8x512xf32>
    %12 = arith.addf %8, %11 : vector<8x512xf32>
    %13 = vector.extract_strided_slice %12 {offsets = [0, 0], sizes = [8, 128], strides = [1, 1]} : vector<8x512xf32> to vector<8x128xf32>
    %cst_9 = arith.constant 5.000000e-01 : f32
    %14 = vector.broadcast %cst_9 : f32 to vector<8x128xf32>
    %15 = arith.mulf %14, %13 : vector<8x128xf32>
    %16 = math.tanh %15 : vector<8x128xf32>
    %cst_10 = arith.constant 5.000000e-01 : f32
    %17 = vector.broadcast %cst_10 : f32 to vector<8x128xf32>
    %18 = arith.mulf %17, %16 : vector<8x128xf32>
    %cst_11 = arith.constant 5.000000e-01 : f32
    %19 = vector.broadcast %cst_11 : f32 to vector<8x128xf32>
    %20 = arith.addf %18, %19 : vector<8x128xf32>
    %21 = vector.extract_strided_slice %12 {offsets = [0, 128], sizes = [8, 128], strides = [1, 1]} : vector<8x512xf32> to vector<8x128xf32>
    %cst_12 = arith.constant 5.000000e-01 : f32
    %22 = vector.broadcast %cst_12 : f32 to vector<8x128xf32>
    %23 = arith.mulf %22, %21 : vector<8x128xf32>
    %24 = math.tanh %23 : vector<8x128xf32>
    %cst_13 = arith.constant 5.000000e-01 : f32
    %25 = vector.broadcast %cst_13 : f32 to vector<8x128xf32>
    %26 = arith.mulf %25, %24 : vector<8x128xf32>
    %cst_14 = arith.constant 5.000000e-01 : f32
    %27 = vector.broadcast %cst_14 : f32 to vector<8x128xf32>
    %28 = arith.addf %26, %27 : vector<8x128xf32>
    %29 = vector.extract_strided_slice %12 {offsets = [0, 256], sizes = [8, 128], strides = [1, 1]} : vector<8x512xf32> to vector<8x128xf32>
    %30 = math.tanh %29 : vector<8x128xf32>
    %31 = vector.extract_strided_slice %12 {offsets = [0, 384], sizes = [8, 128], strides = [1, 1]} : vector<8x512xf32> to vector<8x128xf32>
    %cst_15 = arith.constant 5.000000e-01 : f32
    %32 = vector.broadcast %cst_15 : f32 to vector<8x128xf32>
    %33 = arith.mulf %32, %31 : vector<8x128xf32>
    %34 = math.tanh %33 : vector<8x128xf32>
    %cst_16 = arith.constant 5.000000e-01 : f32
    %35 = vector.broadcast %cst_16 : f32 to vector<8x128xf32>
    %36 = arith.mulf %35, %34 : vector<8x128xf32>
    %cst_17 = arith.constant 5.000000e-01 : f32
    %37 = vector.broadcast %cst_17 : f32 to vector<8x128xf32>
    %38 = arith.addf %36, %37 : vector<8x128xf32>
    %39 = arith.mulf %28, %4 : vector<8x128xf32>
    %40 = arith.mulf %20, %30 : vector<8x128xf32>
    %41 = arith.addf %39, %40 : vector<8x128xf32>
    %42 = math.tanh %41 : vector<8x128xf32>
    %43 = arith.mulf %38, %42 : vector<8x128xf32>
    %c0_18 = arith.constant 0 : index
    %c0_19 = arith.constant 0 : index
    %44 = vector.load %arg8[%c0_18, %c0_19] : memref<8x128xf32, #tpu.memory_space<vmem>>, vector<8x128xf32>
    tpu.vector_store %arg8[%c0_18, %c0_19], %41 {strides = array<i32>} : memref<8x128xf32, #tpu.memory_space<vmem>>, vector<8x128xf32>,
    %c0_20 = arith.constant 0 : index
    %c0_21 = arith.constant 0 : index
    %45 = vector.load %arg7[%c0_20, %c0_21] : memref<8x128xf32, #tpu.memory_space<vmem>>, vector<8x128xf32>
    tpu.vector_store %arg7[%c0_20, %c0_21], %43 {strides = array<i32>} : memref<8x128xf32, #tpu.memory_space<vmem>>, vector<8x128xf32>,
    %46 = arith.index_cast %c0_i32_1 : i32 to index
    %c0_22 = arith.constant 0 : index
    %c0_23 = arith.constant 0 : index
    %47 = vector.load %arg9[%46, %c0_22, %c0_23] : memref<8x8x128xf32, #tpu.memory_space<vmem>>, vector<1x8x128xf32>
    %48 = vector.shape_cast %47 : vector<1x8x128xf32> to vector<8x128xf32>
    %49 = vector.shape_cast %43 : vector<8x128xf32> to vector<1x8x128xf32>
    tpu.vector_store %arg9[%46, %c0_22, %c0_23], %49 {strides = array<i32>} : memref<8x8x128xf32, #tpu.memory_space<vmem>>, vector<1x8x128xf32>,
    %c1_i32 = arith.constant 1 : i32
    %c0_24 = arith.constant 0 : index
    %c0_25 = arith.constant 0 : index
    %50 = vector.load %arg7[%c0_24, %c0_25] : memref<8x128xf32, #tpu.memory_space<vmem>>, vector<8x128xf32>
    %c0_26 = arith.constant 0 : index
    %c0_27 = arith.constant 0 : index
    %51 = vector.load %arg8[%c0_26, %c0_27] : memref<8x128xf32, #tpu.memory_space<vmem>>, vector<8x128xf32>
    %52 = arith.index_cast %c1_i32 : i32 to index
    %c0_28 = arith.constant 0 : index
    %c0_29 = arith.constant 0 : index
    %53 = vector.load %arg2[%52, %c0_28, %c0_29] : memref<8x8x512xbf16, #tpu.memory_space<vmem>>, vector<1x8x512xbf16>
    %54 = vector.shape_cast %53 : vector<1x8x512xbf16> to vector<8x512xbf16>
    %55 = arith.extf %54 : vector<8x512xbf16> to vector<8x512xf32>
    %56 = arith.truncf %50 : vector<8x128xf32> to vector<8x128xbf16>
    %c0_30 = arith.constant 0 : index
    %c0_31 = arith.constant 0 : index
    %57 = vector.load %arg3[%c0_30, %c0_31] : memref<128x512xbf16, #tpu.memory_space<vmem>>, vector<128x512xbf16>
    %cst_32 = arith.constant dense<0.000000e+00> : vector<8x512xf32>
    %58 = tpu.matmul %56, %57, %cst_32 {dimension_numbers = #tpu.dot_dimension_numbers<[1], [0], [0], [1], [0, 0, 1, 1], [], []>} : vector<8x128xbf16>, vector<128x512xbf16>, vector<8x512xf32> -> vector<8x512xf32>
    %59 = arith.addf %55, %58 : vector<8x512xf32>
    %60 = vector.extract_strided_slice %59 {offsets = [0, 0], sizes = [8, 128], strides = [1, 1]} : vector<8x512xf32> to vector<8x128xf32>
    %cst_33 = arith.constant 5.000000e-01 : f32
    %61 = vector.broadcast %cst_33 : f32 to vector<8x128xf32>
    %62 = arith.mulf %61, %60 : vector<8x128xf32>
    %63 = math.tanh %62 : vector<8x128xf32>
    %cst_34 = arith.constant 5.000000e-01 : f32
    %64 = vector.broadcast %cst_34 : f32 to vector<8x128xf32>
    %65 = arith.mulf %64, %63 : vector<8x128xf32>
    %cst_35 = arith.constant 5.000000e-01 : f32
    %66 = vector.broadcast %cst_35 : f32 to vector<8x128xf32>
    %67 = arith.addf %65, %66 : vector<8x128xf32>
    %68 = vector.extract_strided_slice %59 {offsets = [0, 128], sizes = [8, 128], strides = [1, 1]} : vector<8x512xf32> to vector<8x128xf32>
    %cst_36 = arith.constant 5.000000e-01 : f32
    %69 = vector.broadcast %cst_36 : f32 to vector<8x128xf32>
    %70 = arith.mulf %69, %68 : vector<8x128xf32>
    %71 = math.tanh %70 : vector<8x128xf32>
    %cst_37 = arith.constant 5.000000e-01 : f32
    %72 = vector.broadcast %cst_37 : f32 to vector<8x128xf32>
    %73 = arith.mulf %72, %71 : vector<8x128xf32>
    %cst_38 = arith.constant 5.000000e-01 : f32
    %74 = vector.broadcast %cst_38 : f32 to vector<8x128xf32>
    %75 = arith.addf %73, %74 : vector<8x128xf32>
    %76 = vector.extract_strided_slice %59 {offsets = [0, 256], sizes = [8, 128], strides = [1, 1]} : vector<8x512xf32> to vector<8x128xf32>
    %77 = math.tanh %76 : vector<8x128xf32>
    %78 = vector.extract_strided_slice %59 {offsets = [0, 384], sizes = [8, 128], strides = [1, 1]} : vector<8x512xf32> to vector<8x128xf32>
    %cst_39 = arith.constant 5.000000e-01 : f32
    %79 = vector.broadcast %cst_39 : f32 to vector<8x128xf32>
    %80 = arith.mulf %79, %78 : vector<8x128xf32>
    %81 = math.tanh %80 : vector<8x128xf32>
    %cst_40 = arith.constant 5.000000e-01 : f32
    %82 = vector.broadcast %cst_40 : f32 to vector<8x128xf32>
    %83 = arith.mulf %82, %81 : vector<8x128xf32>
    %cst_41 = arith.constant 5.000000e-01 : f32
    %84 = vector.broadcast %cst_41 : f32 to vector<8x128xf32>
    %85 = arith.addf %83, %84 : vector<8x128xf32>
    %86 = arith.mulf %75, %51 : vector<8x128xf32>
    %87 = arith.mulf %67, %77 : vector<8x128xf32>
    %88 = arith.addf %86, %87 : vector<8x128xf32>
    %89 = math.tanh %88 : vector<8x128xf32>
    %90 = arith.mulf %85, %89 : vector<8x128xf32>
    %c0_42 = arith.constant 0 : index
    %c0_43 = arith.constant 0 : index
    %91 = vector.load %arg8[%c0_42, %c0_43] : memref<8x128xf32, #tpu.memory_space<vmem>>, vector<8x128xf32>
    tpu.vector_store %arg8[%c0_42, %c0_43], %88 {strides = array<i32>} : memref<8x128xf32, #tpu.memory_space<vmem>>, vector<8x128xf32>,
    %c0_44 = arith.constant 0 : index
    %c0_45 = arith.constant 0 : index
    %92 = vector.load %arg7[%c0_44, %c0_45] : memref<8x128xf32, #tpu.memory_space<vmem>>, vector<8x128xf32>
    tpu.vector_store %arg7[%c0_44, %c0_45], %90 {strides = array<i32>} : memref<8x128xf32, #tpu.memory_space<vmem>>, vector<8x128xf32>,
    %93 = arith.index_cast %c1_i32 : i32 to index
    %c0_46 = arith.constant 0 : index
    %c0_47 = arith.constant 0 : index
    %94 = vector.load %arg9[%93, %c0_46, %c0_47] : memref<8x8x128xf32, #tpu.memory_space<vmem>>, vector<1x8x128xf32>
    %95 = vector.shape_cast %94 : vector<1x8x128xf32> to vector<8x128xf32>
    %96 = vector.shape_cast %90 : vector<8x128xf32> to vector<1x8x128xf32>
    tpu.vector_store %arg9[%93, %c0_46, %c0_47], %96 {strides = array<i32>} : memref<8x8x128xf32, #tpu.memory_space<vmem>>, vector<1x8x128xf32>,
    %c2_i32 = arith.constant 2 : i32
    %c0_48 = arith.constant 0 : index
    %c0_49 = arith.constant 0 : index
    %97 = vector.load %arg7[%c0_48, %c0_49] : memref<8x128xf32, #tpu.memory_space<vmem>>, vector<8x128xf32>
    %c0_50 = arith.constant 0 : index
    %c0_51 = arith.constant 0 : index
    %98 = vector.load %arg8[%c0_50, %c0_51] : memref<8x128xf32, #tpu.memory_space<vmem>>, vector<8x128xf32>
    %99 = arith.index_cast %c2_i32 : i32 to index
    %c0_52 = arith.constant 0 : index
    %c0_53 = arith.constant 0 : index
    %100 = vector.load %arg2[%99, %c0_52, %c0_53] : memref<8x8x512xbf16, #tpu.memory_space<vmem>>, vector<1x8x512xbf16>
    %101 = vector.shape_cast %100 : vector<1x8x512xbf16> to vector<8x512xbf16>
    %102 = arith.extf %101 : vector<8x512xbf16> to vector<8x512xf32>
    %103 = arith.truncf %97 : vector<8x128xf32> to vector<8x128xbf16>
    %c0_54 = arith.constant 0 : index
    %c0_55 = arith.constant 0 : index
    %104 = vector.load %arg3[%c0_54, %c0_55] : memref<128x512xbf16, #tpu.memory_space<vmem>>, vector<128x512xbf16>
    %cst_56 = arith.constant dense<0.000000e+00> : vector<8x512xf32>
    %105 = tpu.matmul %103, %104, %cst_56 {dimension_numbers = #tpu.dot_dimension_numbers<[1], [0], [0], [1], [0, 0, 1, 1], [], []>} : vector<8x128xbf16>, vector<128x512xbf16>, vector<8x512xf32> -> vector<8x512xf32>
    %106 = arith.addf %102, %105 : vector<8x512xf32>
    %107 = vector.extract_strided_slice %106 {offsets = [0, 0], sizes = [8, 128], strides = [1, 1]} : vector<8x512xf32> to vector<8x128xf32>
    %cst_57 = arith.constant 5.000000e-01 : f32
    %108 = vector.broadcast %cst_57 : f32 to vector<8x128xf32>
    %109 = arith.mulf %108, %107 : vector<8x128xf32>
    %110 = math.tanh %109 : vector<8x128xf32>
    %cst_58 = arith.constant 5.000000e-01 : f32
    %111 = vector.broadcast %cst_58 : f32 to vector<8x128xf32>
    %112 = arith.mulf %111, %110 : vector<8x128xf32>
    %cst_59 = arith.constant 5.000000e-01 : f32
    %113 = vector.broadcast %cst_59 : f32 to vector<8x128xf32>
    %114 = arith.addf %112, %113 : vector<8x128xf32>
    %115 = vector.extract_strided_slice %106 {offsets = [0, 128], sizes = [8, 128], strides = [1, 1]} : vector<8x512xf32> to vector<8x128xf32>
    %cst_60 = arith.constant 5.000000e-01 : f32
    %116 = vector.broadcast %cst_60 : f32 to vector<8x128xf32>
    %117 = arith.mulf %116, %115 : vector<8x128xf32>
    %118 = math.tanh %117 : vector<8x128xf32>
    %cst_61 = arith.constant 5.000000e-01 : f32
    %119 = vector.broadcast %cst_61 : f32 to vector<8x128xf32>
    %120 = arith.mulf %119, %118 : vector<8x128xf32>
    %cst_62 = arith.constant 5.000000e-01 : f32
    %121 = vector.broadcast %cst_62 : f32 to vector<8x128xf32>
    %122 = arith.addf %120, %121 : vector<8x128xf32>
    %123 = vector.extract_strided_slice %106 {offsets = [0, 256], sizes = [8, 128], strides = [1, 1]} : vector<8x512xf32> to vector<8x128xf32>
    %124 = math.tanh %123 : vector<8x128xf32>
    %125 = vector.extract_strided_slice %106 {offsets = [0, 384], sizes = [8, 128], strides = [1, 1]} : vector<8x512xf32> to vector<8x128xf32>
    %cst_63 = arith.constant 5.000000e-01 : f32
    %126 = vector.broadcast %cst_63 : f32 to vector<8x128xf32>
    %127 = arith.mulf %126, %125 : vector<8x128xf32>
    %128 = math.tanh %127 : vector<8x128xf32>
    %cst_64 = arith.constant 5.000000e-01 : f32
    %129 = vector.broadcast %cst_64 : f32 to vector<8x128xf32>
    %130 = arith.mulf %129, %128 : vector<8x128xf32>
    %cst_65 = arith.constant 5.000000e-01 : f32
    %131 = vector.broadcast %cst_65 : f32 to vector<8x128xf32>
    %132 = arith.addf %130, %131 : vector<8x128xf32>
    %133 = arith.mulf %122, %98 : vector<8x128xf32>
    %134 = arith.mulf %114, %124 : vector<8x128xf32>
    %135 = arith.addf %133, %134 : vector<8x128xf32>
    %136 = math.tanh %135 : vector<8x128xf32>
    %137 = arith.mulf %132, %136 : vector<8x128xf32>
    %c0_66 = arith.constant 0 : index
    %c0_67 = arith.constant 0 : index
    %138 = vector.load %arg8[%c0_66, %c0_67] : memref<8x128xf32, #tpu.memory_space<vmem>>, vector<8x128xf32>
    tpu.vector_store %arg8[%c0_66, %c0_67], %135 {strides = array<i32>} : memref<8x128xf32, #tpu.memory_space<vmem>>, vector<8x128xf32>,
    %c0_68 = arith.constant 0 : index
    %c0_69 = arith.constant 0 : index
    %139 = vector.load %arg7[%c0_68, %c0_69] : memref<8x128xf32, #tpu.memory_space<vmem>>, vector<8x128xf32>
    tpu.vector_store %arg7[%c0_68, %c0_69], %137 {strides = array<i32>} : memref<8x128xf32, #tpu.memory_space<vmem>>, vector<8x128xf32>,
    %140 = arith.index_cast %c2_i32 : i32 to index
    %c0_70 = arith.constant 0 : index
    %c0_71 = arith.constant 0 : index
    %141 = vector.load %arg9[%140, %c0_70, %c0_71] : memref<8x8x128xf32, #tpu.memory_space<vmem>>, vector<1x8x128xf32>
    %142 = vector.shape_cast %141 : vector<1x8x128xf32> to vector<8x128xf32>
    %143 = vector.shape_cast %137 : vector<8x128xf32> to vector<1x8x128xf32>
    tpu.vector_store %arg9[%140, %c0_70, %c0_71], %143 {strides = array<i32>} : memref<8x8x128xf32, #tpu.memory_space<vmem>>, vector<1x8x128xf32>,
    %c3_i32 = arith.constant 3 : i32
    %c0_72 = arith.constant 0 : index
    %c0_73 = arith.constant 0 : index
    %144 = vector.load %arg7[%c0_72, %c0_73] : memref<8x128xf32, #tpu.memory_space<vmem>>, vector<8x128xf32>
    %c0_74 = arith.constant 0 : index
    %c0_75 = arith.constant 0 : index
    %145 = vector.load %arg8[%c0_74, %c0_75] : memref<8x128xf32, #tpu.memory_space<vmem>>, vector<8x128xf32>
    %146 = arith.index_cast %c3_i32 : i32 to index
    %c0_76 = arith.constant 0 : index
    %c0_77 = arith.constant 0 : index
    %147 = vector.load %arg2[%146, %c0_76, %c0_77] : memref<8x8x512xbf16, #tpu.memory_space<vmem>>, vector<1x8x512xbf16>
    %148 = vector.shape_cast %147 : vector<1x8x512xbf16> to vector<8x512xbf16>
    %149 = arith.extf %148 : vector<8x512xbf16> to vector<8x512xf32>
    %150 = arith.truncf %144 : vector<8x128xf32> to vector<8x128xbf16>
    %c0_78 = arith.constant 0 : index
    %c0_79 = arith.constant 0 : index
    %151 = vector.load %arg3[%c0_78, %c0_79] : memref<128x512xbf16, #tpu.memory_space<vmem>>, vector<128x512xbf16>
    %cst_80 = arith.constant dense<0.000000e+00> : vector<8x512xf32>
    %152 = tpu.matmul %150, %151, %cst_80 {dimension_numbers = #tpu.dot_dimension_numbers<[1], [0], [0], [1], [0, 0, 1, 1], [], []>} : vector<8x128xbf16>, vector<128x512xbf16>, vector<8x512xf32> -> vector<8x512xf32>
    %153 = arith.addf %149, %152 : vector<8x512xf32>
    %154 = vector.extract_strided_slice %153 {offsets = [0, 0], sizes = [8, 128], strides = [1, 1]} : vector<8x512xf32> to vector<8x128xf32>
    %cst_81 = arith.constant 5.000000e-01 : f32
    %155 = vector.broadcast %cst_81 : f32 to vector<8x128xf32>
    %156 = arith.mulf %155, %154 : vector<8x128xf32>
    %157 = math.tanh %156 : vector<8x128xf32>
    %cst_82 = arith.constant 5.000000e-01 : f32
    %158 = vector.broadcast %cst_82 : f32 to vector<8x128xf32>
    %159 = arith.mulf %158, %157 : vector<8x128xf32>
    %cst_83 = arith.constant 5.000000e-01 : f32
    %160 = vector.broadcast %cst_83 : f32 to vector<8x128xf32>
    %161 = arith.addf %159, %160 : vector<8x128xf32>
    %162 = vector.extract_strided_slice %153 {offsets = [0, 128], sizes = [8, 128], strides = [1, 1]} : vector<8x512xf32> to vector<8x128xf32>
    %cst_84 = arith.constant 5.000000e-01 : f32
    %163 = vector.broadcast %cst_84 : f32 to vector<8x128xf32>
    %164 = arith.mulf %163, %162 : vector<8x128xf32>
    %165 = math.tanh %164 : vector<8x128xf32>
    %cst_85 = arith.constant 5.000000e-01 : f32
    %166 = vector.broadcast %cst_85 : f32 to vector<8x128xf32>
    %167 = arith.mulf %166, %165 : vector<8x128xf32>
    %cst_86 = arith.constant 5.000000e-01 : f32
    %168 = vector.broadcast %cst_86 : f32 to vector<8x128xf32>
    %169 = arith.addf %167, %168 : vector<8x128xf32>
    %170 = vector.extract_strided_slice %153 {offsets = [0, 256], sizes = [8, 128], strides = [1, 1]} : vector<8x512xf32> to vector<8x128xf32>
    %171 = math.tanh %170 : vector<8x128xf32>
    %172 = vector.extract_strided_slice %153 {offsets = [0, 384], sizes = [8, 128], strides = [1, 1]} : vector<8x512xf32> to vector<8x128xf32>
    %cst_87 = arith.constant 5.000000e-01 : f32
    %173 = vector.broadcast %cst_87 : f32 to vector<8x128xf32>
    %174 = arith.mulf %173, %172 : vector<8x128xf32>
    %175 = math.tanh %174 : vector<8x128xf32>
    %cst_88 = arith.constant 5.000000e-01 : f32
    %176 = vector.broadcast %cst_88 : f32 to vector<8x128xf32>
    %177 = arith.mulf %176, %175 : vector<8x128xf32>
    %cst_89 = arith.constant 5.000000e-01 : f32
    %178 = vector.broadcast %cst_89 : f32 to vector<8x128xf32>
    %179 = arith.addf %177, %178 : vector<8x128xf32>
    %180 = arith.mulf %169, %145 : vector<8x128xf32>
    %181 = arith.mulf %161, %171 : vector<8x128xf32>
    %182 = arith.addf %180, %181 : vector<8x128xf32>
    %183 = math.tanh %182 : vector<8x128xf32>
    %184 = arith.mulf %179, %183 : vector<8x128xf32>
    %c0_90 = arith.constant 0 : index
    %c0_91 = arith.constant 0 : index
    %185 = vector.load %arg8[%c0_90, %c0_91] : memref<8x128xf32, #tpu.memory_space<vmem>>, vector<8x128xf32>
    tpu.vector_store %arg8[%c0_90, %c0_91], %182 {strides = array<i32>} : memref<8x128xf32, #tpu.memory_space<vmem>>, vector<8x128xf32>,
    %c0_92 = arith.constant 0 : index
    %c0_93 = arith.constant 0 : index
    %186 = vector.load %arg7[%c0_92, %c0_93] : memref<8x128xf32, #tpu.memory_space<vmem>>, vector<8x128xf32>
    tpu.vector_store %arg7[%c0_92, %c0_93], %184 {strides = array<i32>} : memref<8x128xf32, #tpu.memory_space<vmem>>, vector<8x128xf32>,
    %187 = arith.index_cast %c3_i32 : i32 to index
    %c0_94 = arith.constant 0 : index
    %c0_95 = arith.constant 0 : index
    %188 = vector.load %arg9[%187, %c0_94, %c0_95] : memref<8x8x128xf32, #tpu.memory_space<vmem>>, vector<1x8x128xf32>
    %189 = vector.shape_cast %188 : vector<1x8x128xf32> to vector<8x128xf32>
    %190 = vector.shape_cast %184 : vector<8x128xf32> to vector<1x8x128xf32>
    tpu.vector_store %arg9[%187, %c0_94, %c0_95], %190 {strides = array<i32>} : memref<8x8x128xf32, #tpu.memory_space<vmem>>, vector<1x8x128xf32>,
    %c4_i32 = arith.constant 4 : i32
    %c0_96 = arith.constant 0 : index
    %c0_97 = arith.constant 0 : index
    %191 = vector.load %arg7[%c0_96, %c0_97] : memref<8x128xf32, #tpu.memory_space<vmem>>, vector<8x128xf32>
    %c0_98 = arith.constant 0 : index
    %c0_99 = arith.constant 0 : index
    %192 = vector.load %arg8[%c0_98, %c0_99] : memref<8x128xf32, #tpu.memory_space<vmem>>, vector<8x128xf32>
    %193 = arith.index_cast %c4_i32 : i32 to index
    %c0_100 = arith.constant 0 : index
    %c0_101 = arith.constant 0 : index
    %194 = vector.load %arg2[%193, %c0_100, %c0_101] : memref<8x8x512xbf16, #tpu.memory_space<vmem>>, vector<1x8x512xbf16>
    %195 = vector.shape_cast %194 : vector<1x8x512xbf16> to vector<8x512xbf16>
    %196 = arith.extf %195 : vector<8x512xbf16> to vector<8x512xf32>
    %197 = arith.truncf %191 : vector<8x128xf32> to vector<8x128xbf16>
    %c0_102 = arith.constant 0 : index
    %c0_103 = arith.constant 0 : index
    %198 = vector.load %arg3[%c0_102, %c0_103] : memref<128x512xbf16, #tpu.memory_space<vmem>>, vector<128x512xbf16>
    %cst_104 = arith.constant dense<0.000000e+00> : vector<8x512xf32>
    %199 = tpu.matmul %197, %198, %cst_104 {dimension_numbers = #tpu.dot_dimension_numbers<[1], [0], [0], [1], [0, 0, 1, 1], [], []>} : vector<8x128xbf16>, vector<128x512xbf16>, vector<8x512xf32> -> vector<8x512xf32>
    %200 = arith.addf %196, %199 : vector<8x512xf32>
    %201 = vector.extract_strided_slice %200 {offsets = [0, 0], sizes = [8, 128], strides = [1, 1]} : vector<8x512xf32> to vector<8x128xf32>
    %cst_105 = arith.constant 5.000000e-01 : f32
    %202 = vector.broadcast %cst_105 : f32 to vector<8x128xf32>
    %203 = arith.mulf %202, %201 : vector<8x128xf32>
    %204 = math.tanh %203 : vector<8x128xf32>
    %cst_106 = arith.constant 5.000000e-01 : f32
    %205 = vector.broadcast %cst_106 : f32 to vector<8x128xf32>
    %206 = arith.mulf %205, %204 : vector<8x128xf32>
    %cst_107 = arith.constant 5.000000e-01 : f32
    %207 = vector.broadcast %cst_107 : f32 to vector<8x128xf32>
    %208 = arith.addf %206, %207 : vector<8x128xf32>
    %209 = vector.extract_strided_slice %200 {offsets = [0, 128], sizes = [8, 128], strides = [1, 1]} : vector<8x512xf32> to vector<8x128xf32>
    %cst_108 = arith.constant 5.000000e-01 : f32
    %210 = vector.broadcast %cst_108 : f32 to vector<8x128xf32>
    %211 = arith.mulf %210, %209 : vector<8x128xf32>
    %212 = math.tanh %211 : vector<8x128xf32>
    %cst_109 = arith.constant 5.000000e-01 : f32
    %213 = vector.broadcast %cst_109 : f32 to vector<8x128xf32>
    %214 = arith.mulf %213, %212 : vector<8x128xf32>
    %cst_110 = arith.constant 5.000000e-01 : f32
    %215 = vector.broadcast %cst_110 : f32 to vector<8x128xf32>
    %216 = arith.addf %214, %215 : vector<8x128xf32>
    %217 = vector.extract_strided_slice %200 {offsets = [0, 256], sizes = [8, 128], strides = [1, 1]} : vector<8x512xf32> to vector<8x128xf32>
    %218 = math.tanh %217 : vector<8x128xf32>
    %219 = vector.extract_strided_slice %200 {offsets = [0, 384], sizes = [8, 128], strides = [1, 1]} : vector<8x512xf32> to vector<8x128xf32>
    %cst_111 = arith.constant 5.000000e-01 : f32
    %220 = vector.broadcast %cst_111 : f32 to vector<8x128xf32>
    %221 = arith.mulf %220, %219 : vector<8x128xf32>
    %222 = math.tanh %221 : vector<8x128xf32>
    %cst_112 = arith.constant 5.000000e-01 : f32
    %223 = vector.broadcast %cst_112 : f32 to vector<8x128xf32>
    %224 = arith.mulf %223, %222 : vector<8x128xf32>
    %cst_113 = arith.constant 5.000000e-01 : f32
    %225 = vector.broadcast %cst_113 : f32 to vector<8x128xf32>
    %226 = arith.addf %224, %225 : vector<8x128xf32>
    %227 = arith.mulf %216, %192 : vector<8x128xf32>
    %228 = arith.mulf %208, %218 : vector<8x128xf32>
    %229 = arith.addf %227, %228 : vector<8x128xf32>
    %230 = math.tanh %229 : vector<8x128xf32>
    %231 = arith.mulf %226, %230 : vector<8x128xf32>
    %c0_114 = arith.constant 0 : index
    %c0_115 = arith.constant 0 : index
    %232 = vector.load %arg8[%c0_114, %c0_115] : memref<8x128xf32, #tpu.memory_space<vmem>>, vector<8x128xf32>
    tpu.vector_store %arg8[%c0_114, %c0_115], %229 {strides = array<i32>} : memref<8x128xf32, #tpu.memory_space<vmem>>, vector<8x128xf32>,
    %c0_116 = arith.constant 0 : index
    %c0_117 = arith.constant 0 : index
    %233 = vector.load %arg7[%c0_116, %c0_117] : memref<8x128xf32, #tpu.memory_space<vmem>>, vector<8x128xf32>
    tpu.vector_store %arg7[%c0_116, %c0_117], %231 {strides = array<i32>} : memref<8x128xf32, #tpu.memory_space<vmem>>, vector<8x128xf32>,
    %234 = arith.index_cast %c4_i32 : i32 to index
    %c0_118 = arith.constant 0 : index
    %c0_119 = arith.constant 0 : index
    %235 = vector.load %arg9[%234, %c0_118, %c0_119] : memref<8x8x128xf32, #tpu.memory_space<vmem>>, vector<1x8x128xf32>
    %236 = vector.shape_cast %235 : vector<1x8x128xf32> to vector<8x128xf32>
    %237 = vector.shape_cast %231 : vector<8x128xf32> to vector<1x8x128xf32>
    tpu.vector_store %arg9[%234, %c0_118, %c0_119], %237 {strides = array<i32>} : memref<8x8x128xf32, #tpu.memory_space<vmem>>, vector<1x8x128xf32>,
    %c5_i32 = arith.constant 5 : i32
    %c0_120 = arith.constant 0 : index
    %c0_121 = arith.constant 0 : index
    %238 = vector.load %arg7[%c0_120, %c0_121] : memref<8x128xf32, #tpu.memory_space<vmem>>, vector<8x128xf32>
    %c0_122 = arith.constant 0 : index
    %c0_123 = arith.constant 0 : index
    %239 = vector.load %arg8[%c0_122, %c0_123] : memref<8x128xf32, #tpu.memory_space<vmem>>, vector<8x128xf32>
    %240 = arith.index_cast %c5_i32 : i32 to index
    %c0_124 = arith.constant 0 : index
    %c0_125 = arith.constant 0 : index
    %241 = vector.load %arg2[%240, %c0_124, %c0_125] : memref<8x8x512xbf16, #tpu.memory_space<vmem>>, vector<1x8x512xbf16>
    %242 = vector.shape_cast %241 : vector<1x8x512xbf16> to vector<8x512xbf16>
    %243 = arith.extf %242 : vector<8x512xbf16> to vector<8x512xf32>
    %244 = arith.truncf %238 : vector<8x128xf32> to vector<8x128xbf16>
    %c0_126 = arith.constant 0 : index
    %c0_127 = arith.constant 0 : index
    %245 = vector.load %arg3[%c0_126, %c0_127] : memref<128x512xbf16, #tpu.memory_space<vmem>>, vector<128x512xbf16>
    %cst_128 = arith.constant dense<0.000000e+00> : vector<8x512xf32>
    %246 = tpu.matmul %244, %245, %cst_128 {dimension_numbers = #tpu.dot_dimension_numbers<[1], [0], [0], [1], [0, 0, 1, 1], [], []>} : vector<8x128xbf16>, vector<128x512xbf16>, vector<8x512xf32> -> vector<8x512xf32>
    %247 = arith.addf %243, %246 : vector<8x512xf32>
    %248 = vector.extract_strided_slice %247 {offsets = [0, 0], sizes = [8, 128], strides = [1, 1]} : vector<8x512xf32> to vector<8x128xf32>
    %cst_129 = arith.constant 5.000000e-01 : f32
    %249 = vector.broadcast %cst_129 : f32 to vector<8x128xf32>
    %250 = arith.mulf %249, %248 : vector<8x128xf32>
    %251 = math.tanh %250 : vector<8x128xf32>
    %cst_130 = arith.constant 5.000000e-01 : f32
    %252 = vector.broadcast %cst_130 : f32 to vector<8x128xf32>
    %253 = arith.mulf %252, %251 : vector<8x128xf32>
    %cst_131 = arith.constant 5.000000e-01 : f32
    %254 = vector.broadcast %cst_131 : f32 to vector<8x128xf32>
    %255 = arith.addf %253, %254 : vector<8x128xf32>
    %256 = vector.extract_strided_slice %247 {offsets = [0, 128], sizes = [8, 128], strides = [1, 1]} : vector<8x512xf32> to vector<8x128xf32>
    %cst_132 = arith.constant 5.000000e-01 : f32
    %257 = vector.broadcast %cst_132 : f32 to vector<8x128xf32>
    %258 = arith.mulf %257, %256 : vector<8x128xf32>
    %259 = math.tanh %258 : vector<8x128xf32>
    %cst_133 = arith.constant 5.000000e-01 : f32
    %260 = vector.broadcast %cst_133 : f32 to vector<8x128xf32>
    %261 = arith.mulf %260, %259 : vector<8x128xf32>
    %cst_134 = arith.constant 5.000000e-01 : f32
    %262 = vector.broadcast %cst_134 : f32 to vector<8x128xf32>
    %263 = arith.addf %261, %262 : vector<8x128xf32>
    %264 = vector.extract_strided_slice %247 {offsets = [0, 256], sizes = [8, 128], strides = [1, 1]} : vector<8x512xf32> to vector<8x128xf32>
    %265 = math.tanh %264 : vector<8x128xf32>
    %266 = vector.extract_strided_slice %247 {offsets = [0, 384], sizes = [8, 128], strides = [1, 1]} : vector<8x512xf32> to vector<8x128xf32>
    %cst_135 = arith.constant 5.000000e-01 : f32
    %267 = vector.broadcast %cst_135 : f32 to vector<8x128xf32>
    %268 = arith.mulf %267, %266 : vector<8x128xf32>
    %269 = math.tanh %268 : vector<8x128xf32>
    %cst_136 = arith.constant 5.000000e-01 : f32
    %270 = vector.broadcast %cst_136 : f32 to vector<8x128xf32>
    %271 = arith.mulf %270, %269 : vector<8x128xf32>
    %cst_137 = arith.constant 5.000000e-01 : f32
    %272 = vector.broadcast %cst_137 : f32 to vector<8x128xf32>
    %273 = arith.addf %271, %272 : vector<8x128xf32>
    %274 = arith.mulf %263, %239 : vector<8x128xf32>
    %275 = arith.mulf %255, %265 : vector<8x128xf32>
    %276 = arith.addf %274, %275 : vector<8x128xf32>
    %277 = math.tanh %276 : vector<8x128xf32>
    %278 = arith.mulf %273, %277 : vector<8x128xf32>
    %c0_138 = arith.constant 0 : index
    %c0_139 = arith.constant 0 : index
    %279 = vector.load %arg8[%c0_138, %c0_139] : memref<8x128xf32, #tpu.memory_space<vmem>>, vector<8x128xf32>
    tpu.vector_store %arg8[%c0_138, %c0_139], %276 {strides = array<i32>} : memref<8x128xf32, #tpu.memory_space<vmem>>, vector<8x128xf32>,
    %c0_140 = arith.constant 0 : index
    %c0_141 = arith.constant 0 : index
    %280 = vector.load %arg7[%c0_140, %c0_141] : memref<8x128xf32, #tpu.memory_space<vmem>>, vector<8x128xf32>
    tpu.vector_store %arg7[%c0_140, %c0_141], %278 {strides = array<i32>} : memref<8x128xf32, #tpu.memory_space<vmem>>, vector<8x128xf32>,
    %281 = arith.index_cast %c5_i32 : i32 to index
    %c0_142 = arith.constant 0 : index
    %c0_143 = arith.constant 0 : index
    %282 = vector.load %arg9[%281, %c0_142, %c0_143] : memref<8x8x128xf32, #tpu.memory_space<vmem>>, vector<1x8x128xf32>
    %283 = vector.shape_cast %282 : vector<1x8x128xf32> to vector<8x128xf32>
    %284 = vector.shape_cast %278 : vector<8x128xf32> to vector<1x8x128xf32>
    tpu.vector_store %arg9[%281, %c0_142, %c0_143], %284 {strides = array<i32>} : memref<8x8x128xf32, #tpu.memory_space<vmem>>, vector<1x8x128xf32>,
    %c6_i32 = arith.constant 6 : i32
    %c0_144 = arith.constant 0 : index
    %c0_145 = arith.constant 0 : index
    %285 = vector.load %arg7[%c0_144, %c0_145] : memref<8x128xf32, #tpu.memory_space<vmem>>, vector<8x128xf32>
    %c0_146 = arith.constant 0 : index
    %c0_147 = arith.constant 0 : index
    %286 = vector.load %arg8[%c0_146, %c0_147] : memref<8x128xf32, #tpu.memory_space<vmem>>, vector<8x128xf32>
    %287 = arith.index_cast %c6_i32 : i32 to index
    %c0_148 = arith.constant 0 : index
    %c0_149 = arith.constant 0 : index
    %288 = vector.load %arg2[%287, %c0_148, %c0_149] : memref<8x8x512xbf16, #tpu.memory_space<vmem>>, vector<1x8x512xbf16>
    %289 = vector.shape_cast %288 : vector<1x8x512xbf16> to vector<8x512xbf16>
    %290 = arith.extf %289 : vector<8x512xbf16> to vector<8x512xf32>
    %291 = arith.truncf %285 : vector<8x128xf32> to vector<8x128xbf16>
    %c0_150 = arith.constant 0 : index
    %c0_151 = arith.constant 0 : index
    %292 = vector.load %arg3[%c0_150, %c0_151] : memref<128x512xbf16, #tpu.memory_space<vmem>>, vector<128x512xbf16>
    %cst_152 = arith.constant dense<0.000000e+00> : vector<8x512xf32>
    %293 = tpu.matmul %291, %292, %cst_152 {dimension_numbers = #tpu.dot_dimension_numbers<[1], [0], [0], [1], [0, 0, 1, 1], [], []>} : vector<8x128xbf16>, vector<128x512xbf16>, vector<8x512xf32> -> vector<8x512xf32>
    %294 = arith.addf %290, %293 : vector<8x512xf32>
    %295 = vector.extract_strided_slice %294 {offsets = [0, 0], sizes = [8, 128], strides = [1, 1]} : vector<8x512xf32> to vector<8x128xf32>
    %cst_153 = arith.constant 5.000000e-01 : f32
    %296 = vector.broadcast %cst_153 : f32 to vector<8x128xf32>
    %297 = arith.mulf %296, %295 : vector<8x128xf32>
    %298 = math.tanh %297 : vector<8x128xf32>
    %cst_154 = arith.constant 5.000000e-01 : f32
    %299 = vector.broadcast %cst_154 : f32 to vector<8x128xf32>
    %300 = arith.mulf %299, %298 : vector<8x128xf32>
    %cst_155 = arith.constant 5.000000e-01 : f32
    %301 = vector.broadcast %cst_155 : f32 to vector<8x128xf32>
    %302 = arith.addf %300, %301 : vector<8x128xf32>
    %303 = vector.extract_strided_slice %294 {offsets = [0, 128], sizes = [8, 128], strides = [1, 1]} : vector<8x512xf32> to vector<8x128xf32>
    %cst_156 = arith.constant 5.000000e-01 : f32
    %304 = vector.broadcast %cst_156 : f32 to vector<8x128xf32>
    %305 = arith.mulf %304, %303 : vector<8x128xf32>
    %306 = math.tanh %305 : vector<8x128xf32>
    %cst_157 = arith.constant 5.000000e-01 : f32
    %307 = vector.broadcast %cst_157 : f32 to vector<8x128xf32>
    %308 = arith.mulf %307, %306 : vector<8x128xf32>
    %cst_158 = arith.constant 5.000000e-01 : f32
    %309 = vector.broadcast %cst_158 : f32 to vector<8x128xf32>
    %310 = arith.addf %308, %309 : vector<8x128xf32>
    %311 = vector.extract_strided_slice %294 {offsets = [0, 256], sizes = [8, 128], strides = [1, 1]} : vector<8x512xf32> to vector<8x128xf32>
    %312 = math.tanh %311 : vector<8x128xf32>
    %313 = vector.extract_strided_slice %294 {offsets = [0, 384], sizes = [8, 128], strides = [1, 1]} : vector<8x512xf32> to vector<8x128xf32>
    %cst_159 = arith.constant 5.000000e-01 : f32
    %314 = vector.broadcast %cst_159 : f32 to vector<8x128xf32>
    %315 = arith.mulf %314, %313 : vector<8x128xf32>
    %316 = math.tanh %315 : vector<8x128xf32>
    %cst_160 = arith.constant 5.000000e-01 : f32
    %317 = vector.broadcast %cst_160 : f32 to vector<8x128xf32>
    %318 = arith.mulf %317, %316 : vector<8x128xf32>
    %cst_161 = arith.constant 5.000000e-01 : f32
    %319 = vector.broadcast %cst_161 : f32 to vector<8x128xf32>
    %320 = arith.addf %318, %319 : vector<8x128xf32>
    %321 = arith.mulf %310, %286 : vector<8x128xf32>
    %322 = arith.mulf %302, %312 : vector<8x128xf32>
    %323 = arith.addf %321, %322 : vector<8x128xf32>
    %324 = math.tanh %323 : vector<8x128xf32>
    %325 = arith.mulf %320, %324 : vector<8x128xf32>
    %c0_162 = arith.constant 0 : index
    %c0_163 = arith.constant 0 : index
    %326 = vector.load %arg8[%c0_162, %c0_163] : memref<8x128xf32, #tpu.memory_space<vmem>>, vector<8x128xf32>
    tpu.vector_store %arg8[%c0_162, %c0_163], %323 {strides = array<i32>} : memref<8x128xf32, #tpu.memory_space<vmem>>, vector<8x128xf32>,
    %c0_164 = arith.constant 0 : index
    %c0_165 = arith.constant 0 : index
    %327 = vector.load %arg7[%c0_164, %c0_165] : memref<8x128xf32, #tpu.memory_space<vmem>>, vector<8x128xf32>
    tpu.vector_store %arg7[%c0_164, %c0_165], %325 {strides = array<i32>} : memref<8x128xf32, #tpu.memory_space<vmem>>, vector<8x128xf32>,
    %328 = arith.index_cast %c6_i32 : i32 to index
    %c0_166 = arith.constant 0 : index
    %c0_167 = arith.constant 0 : index
    %329 = vector.load %arg9[%328, %c0_166, %c0_167] : memref<8x8x128xf32, #tpu.memory_space<vmem>>, vector<1x8x128xf32>
    %330 = vector.shape_cast %329 : vector<1x8x128xf32> to vector<8x128xf32>
    %331 = vector.shape_cast %325 : vector<8x128xf32> to vector<1x8x128xf32>
    tpu.vector_store %arg9[%328, %c0_166, %c0_167], %331 {strides = array<i32>} : memref<8x8x128xf32, #tpu.memory_space<vmem>>, vector<1x8x128xf32>,
    %c7_i32 = arith.constant 7 : i32
    %c0_168 = arith.constant 0 : index
    %c0_169 = arith.constant 0 : index
    %332 = vector.load %arg7[%c0_168, %c0_169] : memref<8x128xf32, #tpu.memory_space<vmem>>, vector<8x128xf32>
    %c0_170 = arith.constant 0 : index
    %c0_171 = arith.constant 0 : index
    %333 = vector.load %arg8[%c0_170, %c0_171] : memref<8x128xf32, #tpu.memory_space<vmem>>, vector<8x128xf32>
    %334 = arith.index_cast %c7_i32 : i32 to index
    %c0_172 = arith.constant 0 : index
    %c0_173 = arith.constant 0 : index
    %335 = vector.load %arg2[%334, %c0_172, %c0_173] : memref<8x8x512xbf16, #tpu.memory_space<vmem>>, vector<1x8x512xbf16>
    %336 = vector.shape_cast %335 : vector<1x8x512xbf16> to vector<8x512xbf16>
    %337 = arith.extf %336 : vector<8x512xbf16> to vector<8x512xf32>
    %338 = arith.truncf %332 : vector<8x128xf32> to vector<8x128xbf16>
    %c0_174 = arith.constant 0 : index
    %c0_175 = arith.constant 0 : index
    %339 = vector.load %arg3[%c0_174, %c0_175] : memref<128x512xbf16, #tpu.memory_space<vmem>>, vector<128x512xbf16>
    %cst_176 = arith.constant dense<0.000000e+00> : vector<8x512xf32>
    %340 = tpu.matmul %338, %339, %cst_176 {dimension_numbers = #tpu.dot_dimension_numbers<[1], [0], [0], [1], [0, 0, 1, 1], [], []>} : vector<8x128xbf16>, vector<128x512xbf16>, vector<8x512xf32> -> vector<8x512xf32>
    %341 = arith.addf %337, %340 : vector<8x512xf32>
    %342 = vector.extract_strided_slice %341 {offsets = [0, 0], sizes = [8, 128], strides = [1, 1]} : vector<8x512xf32> to vector<8x128xf32>
    %cst_177 = arith.constant 5.000000e-01 : f32
    %343 = vector.broadcast %cst_177 : f32 to vector<8x128xf32>
    %344 = arith.mulf %343, %342 : vector<8x128xf32>
    %345 = math.tanh %344 : vector<8x128xf32>
    %cst_178 = arith.constant 5.000000e-01 : f32
    %346 = vector.broadcast %cst_178 : f32 to vector<8x128xf32>
    %347 = arith.mulf %346, %345 : vector<8x128xf32>
    %cst_179 = arith.constant 5.000000e-01 : f32
    %348 = vector.broadcast %cst_179 : f32 to vector<8x128xf32>
    %349 = arith.addf %347, %348 : vector<8x128xf32>
    %350 = vector.extract_strided_slice %341 {offsets = [0, 128], sizes = [8, 128], strides = [1, 1]} : vector<8x512xf32> to vector<8x128xf32>
    %cst_180 = arith.constant 5.000000e-01 : f32
    %351 = vector.broadcast %cst_180 : f32 to vector<8x128xf32>
    %352 = arith.mulf %351, %350 : vector<8x128xf32>
    %353 = math.tanh %352 : vector<8x128xf32>
    %cst_181 = arith.constant 5.000000e-01 : f32
    %354 = vector.broadcast %cst_181 : f32 to vector<8x128xf32>
    %355 = arith.mulf %354, %353 : vector<8x128xf32>
    %cst_182 = arith.constant 5.000000e-01 : f32
    %356 = vector.broadcast %cst_182 : f32 to vector<8x128xf32>
    %357 = arith.addf %355, %356 : vector<8x128xf32>
    %358 = vector.extract_strided_slice %341 {offsets = [0, 256], sizes = [8, 128], strides = [1, 1]} : vector<8x512xf32> to vector<8x128xf32>
    %359 = math.tanh %358 : vector<8x128xf32>
    %360 = vector.extract_strided_slice %341 {offsets = [0, 384], sizes = [8, 128], strides = [1, 1]} : vector<8x512xf32> to vector<8x128xf32>
    %cst_183 = arith.constant 5.000000e-01 : f32
    %361 = vector.broadcast %cst_183 : f32 to vector<8x128xf32>
    %362 = arith.mulf %361, %360 : vector<8x128xf32>
    %363 = math.tanh %362 : vector<8x128xf32>
    %cst_184 = arith.constant 5.000000e-01 : f32
    %364 = vector.broadcast %cst_184 : f32 to vector<8x128xf32>
    %365 = arith.mulf %364, %363 : vector<8x128xf32>
    %cst_185 = arith.constant 5.000000e-01 : f32
    %366 = vector.broadcast %cst_185 : f32 to vector<8x128xf32>
    %367 = arith.addf %365, %366 : vector<8x128xf32>
    %368 = arith.mulf %357, %333 : vector<8x128xf32>
    %369 = arith.mulf %349, %359 : vector<8x128xf32>
    %370 = arith.addf %368, %369 : vector<8x128xf32>
    %371 = math.tanh %370 : vector<8x128xf32>
    %372 = arith.mulf %367, %371 : vector<8x128xf32>
    %c0_186 = arith.constant 0 : index
    %c0_187 = arith.constant 0 : index
    %373 = vector.load %arg8[%c0_186, %c0_187] : memref<8x128xf32, #tpu.memory_space<vmem>>, vector<8x128xf32>
    tpu.vector_store %arg8[%c0_186, %c0_187], %370 {strides = array<i32>} : memref<8x128xf32, #tpu.memory_space<vmem>>, vector<8x128xf32>,
    %c0_188 = arith.constant 0 : index
    %c0_189 = arith.constant 0 : index
    %374 = vector.load %arg7[%c0_188, %c0_189] : memref<8x128xf32, #tpu.memory_space<vmem>>, vector<8x128xf32>
    tpu.vector_store %arg7[%c0_188, %c0_189], %372 {strides = array<i32>} : memref<8x128xf32, #tpu.memory_space<vmem>>, vector<8x128xf32>,
    %375 = arith.index_cast %c7_i32 : i32 to index
    %c0_190 = arith.constant 0 : index
    %c0_191 = arith.constant 0 : index
    %376 = vector.load %arg9[%375, %c0_190, %c0_191] : memref<8x8x128xf32, #tpu.memory_space<vmem>>, vector<1x8x128xf32>
    %377 = vector.shape_cast %376 : vector<1x8x128xf32> to vector<8x128xf32>
    %378 = vector.shape_cast %372 : vector<8x128xf32> to vector<1x8x128xf32>
    tpu.vector_store %arg9[%375, %c0_190, %c0_191], %378 {strides = array<i32>} : memref<8x8x128xf32, #tpu.memory_space<vmem>>, vector<1x8x128xf32>,
    %c8_i32 = arith.constant 8 : i32
    %c0_192 = arith.constant 0 : index
    %c0_193 = arith.constant 0 : index
    %c0_194 = arith.constant 0 : index
    %379 = vector.load %arg9[%c0_192, %c0_193, %c0_194] : memref<8x8x128xf32, #tpu.memory_space<vmem>>, vector<8x8x128xf32>
    %380 = vector.shape_cast %379 : vector<8x8x128xf32> to vector<64x128xf32>
    %381 = arith.truncf %380 : vector<64x128xf32> to vector<64x128xbf16>
    %c0_195 = arith.constant 0 : index
    %c0_196 = arith.constant 0 : index
    %382 = vector.load %arg4[%c0_195, %c0_196] : memref<128x128xbf16, #tpu.memory_space<vmem>>, vector<128x128xbf16>
    %cst_197 = arith.constant dense<0.000000e+00> : vector<64x128xf32>
    %383 = tpu.matmul %381, %382, %cst_197 {dimension_numbers = #tpu.dot_dimension_numbers<[1], [0], [0], [1], [0, 0, 1, 1], [], []>} : vector<64x128xbf16>, vector<128x128xbf16>, vector<64x128xf32> -> vector<64x128xf32>
    %c0_198 = arith.constant 0 : index
    %c0_199 = arith.constant 0 : index
    %384 = vector.load %arg5[%c0_198, %c0_199] : memref<1x128xf32, #tpu.memory_space<vmem>>, vector<1x128xf32>
    %385 = vector.broadcast %384 : vector<1x128xf32> to vector<64x128xf32>
    %386 = arith.addf %383, %385 : vector<64x128xf32>
    %387 = vector.shape_cast %386 : vector<64x128xf32> to vector<8x8x128xf32>
    %c0_200 = arith.constant 0 : index
    %c0_201 = arith.constant 0 : index
    %c0_202 = arith.constant 0 : index
    %388 = vector.load %arg6[%c0_200, %c0_201, %c0_202] : memref<8x8x128xf32, #tpu.memory_space<vmem>>, vector<8x8x128xf32>
    tpu.vector_store %arg6[%c0_200, %c0_201, %c0_202], %387 {strides = array<i32>} : memref<8x8x128xf32, #tpu.memory_space<vmem>>, vector<8x8x128xf32>,
    return
  }
  func.func @transform_0(%arg0: i32, %arg1: i32) -> (i32, i32, i32) {
    %c0_i32 = arith.constant 0 : i32
    %c0_i32_0 = arith.constant 0 : i32
    return %arg1, %arg0, %c0_i32 : i32, i32, i32
  }
  func.func @transform_1(%arg0: i32, %arg1: i32) -> (i32, i32) {
    %c0_i32 = arith.constant 0 : i32
    %c0_i32_0 = arith.constant 0 : i32
    %c0_i32_1 = arith.constant 0 : i32
    return %c0_i32, %c0_i32_0 : i32, i32
  }
  func.func @transform_2(%arg0: i32, %arg1: i32) -> (i32, i32) {
    %c0_i32 = arith.constant 0 : i32
    %c0_i32_0 = arith.constant 0 : i32
    %c0_i32_1 = arith.constant 0 : i32
    return %c0_i32, %c0_i32_0 : i32, i32
  }
  func.func @transform_3(%arg0: i32, %arg1: i32) -> (i32, i32) {
    %c0_i32 = arith.constant 0 : i32
    %c0_i32_0 = arith.constant 0 : i32
    %c0_i32_1 = arith.constant 0 : i32
    return %c0_i32, %c0_i32_0 : i32, i32
  }
  func.func @transform_4(%arg0: i32, %arg1: i32) -> (i32, i32, i32) {
    %c0_i32 = arith.constant 0 : i32
    %c0_i32_0 = arith.constant 0 : i32
    return %arg1, %arg0, %c0_i32 : i32, i32, i32
  }
}

module attributes {stable_mosaic.version = 11 : i64} {
  func.func @input_proj_kernel(%arg0: i32, %arg1: memref<8x8x16xf32, #tpu.memory_space<vmem>>, %arg2: memref<16x512xbf16, #tpu.memory_space<vmem>>, %arg3: memref<1x512xf32, #tpu.memory_space<vmem>>, %arg4: memref<8x8x512xbf16, #tpu.memory_space<vmem>>) attributes {dimension_semantics = [#tpu.dimension_semantics<parallel>], iteration_bounds = array<i64: 1>, scalar_prefetch = 0 : i64, scratch_operands = 0 : i64, tpu.core_type = #tpu.core_type<tc>, window_params = [{transform_indices = @transform_0, window_bounds = array<i64: 8, 8, 16>}, {pipeline_mode = #tpu.pipeline_mode<synchronous>, transform_indices = @transform_1, window_bounds = array<i64: 16, 512>}, {pipeline_mode = #tpu.pipeline_mode<synchronous>, transform_indices = @transform_2, window_bounds = array<i64: 1, 512>}, {transform_indices = @transform_3, window_bounds = array<i64: 8, 8, 512>}]} {
    %c0 = arith.constant 0 : index
    %c0_0 = arith.constant 0 : index
    %c0_1 = arith.constant 0 : index
    %0 = vector.load %arg1[%c0, %c0_0, %c0_1] : memref<8x8x16xf32, #tpu.memory_space<vmem>>, vector<8x8x16xf32>
    %1 = vector.shape_cast %0 : vector<8x8x16xf32> to vector<64x16xf32>
    %2 = arith.truncf %1 : vector<64x16xf32> to vector<64x16xbf16>
    %c0_2 = arith.constant 0 : index
    %c0_3 = arith.constant 0 : index
    %3 = vector.load %arg2[%c0_2, %c0_3] : memref<16x512xbf16, #tpu.memory_space<vmem>>, vector<16x512xbf16>
    %cst = arith.constant dense<0.000000e+00> : vector<64x512xf32>
    %4 = tpu.matmul %2, %3, %cst {dimension_numbers = #tpu.dot_dimension_numbers<[1], [0], [0], [1], [0, 0, 1, 1], [], []>} : vector<64x16xbf16>, vector<16x512xbf16>, vector<64x512xf32> -> vector<64x512xf32>
    %c0_4 = arith.constant 0 : index
    %c0_5 = arith.constant 0 : index
    %5 = vector.load %arg3[%c0_4, %c0_5] : memref<1x512xf32, #tpu.memory_space<vmem>>, vector<1x512xf32>
    %6 = vector.broadcast %5 : vector<1x512xf32> to vector<64x512xf32>
    %7 = arith.addf %4, %6 : vector<64x512xf32>
    %8 = vector.shape_cast %7 : vector<64x512xf32> to vector<8x8x512xf32>
    %9 = arith.truncf %8 : vector<8x8x512xf32> to vector<8x8x512xbf16>
    %c0_6 = arith.constant 0 : index
    %c0_7 = arith.constant 0 : index
    %c0_8 = arith.constant 0 : index
    %10 = vector.load %arg4[%c0_6, %c0_7, %c0_8] : memref<8x8x512xbf16, #tpu.memory_space<vmem>>, vector<8x8x512xbf16>
    tpu.vector_store %arg4[%c0_6, %c0_7, %c0_8], %9 {strides = array<i32>} : memref<8x8x512xbf16, #tpu.memory_space<vmem>>, vector<8x8x512xbf16>,
    return
  }
  func.func @transform_0(%arg0: i32) -> (i32, i32, i32) {
    %c0_i32 = arith.constant 0 : i32
    %c0_i32_0 = arith.constant 0 : i32
    %c0_i32_1 = arith.constant 0 : i32
    return %arg0, %c0_i32, %c0_i32_0 : i32, i32, i32
  }
  func.func @transform_1(%arg0: i32) -> (i32, i32) {
    %c0_i32 = arith.constant 0 : i32
    %c0_i32_0 = arith.constant 0 : i32
    %c0_i32_1 = arith.constant 0 : i32
    return %c0_i32, %c0_i32_0 : i32, i32
  }
  func.func @transform_2(%arg0: i32) -> (i32, i32) {
    %c0_i32 = arith.constant 0 : i32
    %c0_i32_0 = arith.constant 0 : i32
    %c0_i32_1 = arith.constant 0 : i32
    return %c0_i32, %c0_i32_0 : i32, i32
  }
  func.func @transform_3(%arg0: i32) -> (i32, i32, i32) {
    %c0_i32 = arith.constant 0 : i32
    %c0_i32_0 = arith.constant 0 : i32
    %c0_i32_1 = arith.constant 0 : i32
    return %arg0, %c0_i32, %c0_i32_0 : i32, i32, i32
  }
}

module attributes {stable_mosaic.version = 11 : i64} {
  func.func @lstm_recurrence_kernel(%arg0: i32, %arg1: i32, %arg2: memref<8x8x512xbf16, #tpu.memory_space<vmem>>, %arg3: memref<128x512xbf16, #tpu.memory_space<vmem>>, %arg4: memref<128x128xbf16, #tpu.memory_space<vmem>>, %arg5: memref<1x128xf32, #tpu.memory_space<vmem>>, %arg6: memref<8x8x128xf32, #tpu.memory_space<vmem>>, %arg7: memref<8x128xf32, #tpu.memory_space<vmem>>, %arg8: memref<8x128xf32, #tpu.memory_space<vmem>>, %arg9: memref<8x8x128xf32, #tpu.memory_space<vmem>>) attributes {dimension_semantics = [#tpu.dimension_semantics<parallel>, #tpu.dimension_semantics<arbitrary>], iteration_bounds = array<i64: 1, 1>, scalar_prefetch = 0 : i64, scratch_operands = 3 : i64, tpu.core_type = #tpu.core_type<tc>, window_params = [{transform_indices = @transform_0, window_bounds = array<i64: 8, 8, 512>}, {pipeline_mode = #tpu.pipeline_mode<synchronous>, transform_indices = @transform_1, window_bounds = array<i64: 128, 512>}, {pipeline_mode = #tpu.pipeline_mode<synchronous>, transform_indices = @transform_2, window_bounds = array<i64: 128, 128>}, {pipeline_mode = #tpu.pipeline_mode<synchronous>, transform_indices = @transform_3, window_bounds = array<i64: 1, 128>}, {transform_indices = @transform_4, window_bounds = array<i64: 8, 8, 128>}]} {
    %c0_i32 = arith.constant 0 : i32
    %0 = arith.cmpi eq, %arg1, %c0_i32 : i32
    %1 = arith.extui %0 : i1 to i32
    %c0_i32_0 = arith.constant 0 : i32
    %2 = arith.cmpi ne, %1, %c0_i32_0 : i32
    scf.if %2 {
      %cst_203 = arith.constant 0.000000e+00 : f32
      %389 = vector.broadcast %cst_203 : f32 to vector<8x128xf32>
      %c0_204 = arith.constant 0 : index
      %c0_205 = arith.constant 0 : index
      %390 = vector.load %arg7[%c0_204, %c0_205] : memref<8x128xf32, #tpu.memory_space<vmem>>, vector<8x128xf32>
      tpu.vector_store %arg7[%c0_204, %c0_205], %389 {strides = array<i32>} : memref<8x128xf32, #tpu.memory_space<vmem>>, vector<8x128xf32>,
      %cst_206 = arith.constant 0.000000e+00 : f32
      %391 = vector.broadcast %cst_206 : f32 to vector<8x128xf32>
      %c0_207 = arith.constant 0 : index
      %c0_208 = arith.constant 0 : index
      %392 = vector.load %arg8[%c0_207, %c0_208] : memref<8x128xf32, #tpu.memory_space<vmem>>, vector<8x128xf32>
      tpu.vector_store %arg8[%c0_207, %c0_208], %391 {strides = array<i32>} : memref<8x128xf32, #tpu.memory_space<vmem>>, vector<8x128xf32>,
    } else {
    }
    %c0_i32_1 = arith.constant 0 : i32
    %c0 = arith.constant 0 : index
    %c0_2 = arith.constant 0 : index
    %3 = vector.load %arg7[%c0, %c0_2] : memref<8x128xf32, #tpu.memory_space<vmem>>, vector<8x128xf32>
    %c0_3 = arith.constant 0 : index
    %c0_4 = arith.constant 0 : index
    %4 = vector.load %arg8[%c0_3, %c0_4] : memref<8x128xf32, #tpu.memory_space<vmem>>, vector<8x128xf32>
    %5 = arith.index_cast %c0_i32_1 : i32 to index
    %c0_5 = arith.constant 0 : index
    %c0_6 = arith.constant 0 : index
    %6 = vector.load %arg2[%5, %c0_5, %c0_6] : memref<8x8x512xbf16, #tpu.memory_space<vmem>>, vector<1x8x512xbf16>
    %7 = vector.shape_cast %6 : vector<1x8x512xbf16> to vector<8x512xbf16>
    %8 = arith.extf %7 : vector<8x512xbf16> to vector<8x512xf32>
    %9 = arith.truncf %3 : vector<8x128xf32> to vector<8x128xbf16>
    %c0_7 = arith.constant 0 : index
    %c0_8 = arith.constant 0 : index
    %10 = vector.load %arg3[%c0_7, %c0_8] : memref<128x512xbf16, #tpu.memory_space<vmem>>, vector<128x512xbf16>
    %cst = arith.constant dense<0.000000e+00> : vector<8x512xf32>
    %11 = tpu.matmul %9, %10, %cst {dimension_numbers = #tpu.dot_dimension_numbers<[1], [0], [0], [1], [0, 0, 1, 1], [], []>} : vector<8x128xbf16>, vector<128x512xbf16>, vector<8x512xf32> -> vector<8x512xf32>
    %12 = arith.addf %8, %11 : vector<8x512xf32>
    %13 = vector.extract_strided_slice %12 {offsets = [0, 0], sizes = [8, 128], strides = [1, 1]} : vector<8x512xf32> to vector<8x128xf32>
    %cst_9 = arith.constant 5.000000e-01 : f32
    %14 = vector.broadcast %cst_9 : f32 to vector<8x128xf32>
    %15 = arith.mulf %14, %13 : vector<8x128xf32>
    %16 = math.tanh %15 : vector<8x128xf32>
    %cst_10 = arith.constant 5.000000e-01 : f32
    %17 = vector.broadcast %cst_10 : f32 to vector<8x128xf32>
    %18 = arith.mulf %17, %16 : vector<8x128xf32>
    %cst_11 = arith.constant 5.000000e-01 : f32
    %19 = vector.broadcast %cst_11 : f32 to vector<8x128xf32>
    %20 = arith.addf %18, %19 : vector<8x128xf32>
    %21 = vector.extract_strided_slice %12 {offsets = [0, 128], sizes = [8, 128], strides = [1, 1]} : vector<8x512xf32> to vector<8x128xf32>
    %cst_12 = arith.constant 5.000000e-01 : f32
    %22 = vector.broadcast %cst_12 : f32 to vector<8x128xf32>
    %23 = arith.mulf %22, %21 : vector<8x128xf32>
    %24 = math.tanh %23 : vector<8x128xf32>
    %cst_13 = arith.constant 5.000000e-01 : f32
    %25 = vector.broadcast %cst_13 : f32 to vector<8x128xf32>
    %26 = arith.mulf %25, %24 : vector<8x128xf32>
    %cst_14 = arith.constant 5.000000e-01 : f32
    %27 = vector.broadcast %cst_14 : f32 to vector<8x128xf32>
    %28 = arith.addf %26, %27 : vector<8x128xf32>
    %29 = vector.extract_strided_slice %12 {offsets = [0, 256], sizes = [8, 128], strides = [1, 1]} : vector<8x512xf32> to vector<8x128xf32>
    %30 = math.tanh %29 : vector<8x128xf32>
    %31 = vector.extract_strided_slice %12 {offsets = [0, 384], sizes = [8, 128], strides = [1, 1]} : vector<8x512xf32> to vector<8x128xf32>
    %cst_15 = arith.constant 5.000000e-01 : f32
    %32 = vector.broadcast %cst_15 : f32 to vector<8x128xf32>
    %33 = arith.mulf %32, %31 : vector<8x128xf32>
    %34 = math.tanh %33 : vector<8x128xf32>
    %cst_16 = arith.constant 5.000000e-01 : f32
    %35 = vector.broadcast %cst_16 : f32 to vector<8x128xf32>
    %36 = arith.mulf %35, %34 : vector<8x128xf32>
    %cst_17 = arith.constant 5.000000e-01 : f32
    %37 = vector.broadcast %cst_17 : f32 to vector<8x128xf32>
    %38 = arith.addf %36, %37 : vector<8x128xf32>
    %39 = arith.mulf %28, %4 : vector<8x128xf32>
    %40 = arith.mulf %20, %30 : vector<8x128xf32>
    %41 = arith.addf %39, %40 : vector<8x128xf32>
    %42 = math.tanh %41 : vector<8x128xf32>
    %43 = arith.mulf %38, %42 : vector<8x128xf32>
    %c0_18 = arith.constant 0 : index
    %c0_19 = arith.constant 0 : index
    %44 = vector.load %arg8[%c0_18, %c0_19] : memref<8x128xf32, #tpu.memory_space<vmem>>, vector<8x128xf32>
    tpu.vector_store %arg8[%c0_18, %c0_19], %41 {strides = array<i32>} : memref<8x128xf32, #tpu.memory_space<vmem>>, vector<8x128xf32>,
    %c0_20 = arith.constant 0 : index
    %c0_21 = arith.constant 0 : index
    %45 = vector.load %arg7[%c0_20, %c0_21] : memref<8x128xf32, #tpu.memory_space<vmem>>, vector<8x128xf32>
    tpu.vector_store %arg7[%c0_20, %c0_21], %43 {strides = array<i32>} : memref<8x128xf32, #tpu.memory_space<vmem>>, vector<8x128xf32>,
    %46 = arith.index_cast %c0_i32_1 : i32 to index
    %c0_22 = arith.constant 0 : index
    %c0_23 = arith.constant 0 : index
    %47 = vector.load %arg9[%46, %c0_22, %c0_23] : memref<8x8x128xf32, #tpu.memory_space<vmem>>, vector<1x8x128xf32>
    %48 = vector.shape_cast %47 : vector<1x8x128xf32> to vector<8x128xf32>
    %49 = vector.shape_cast %43 : vector<8x128xf32> to vector<1x8x128xf32>
    tpu.vector_store %arg9[%46, %c0_22, %c0_23], %49 {strides = array<i32>} : memref<8x8x128xf32, #tpu.memory_space<vmem>>, vector<1x8x128xf32>,
    %c1_i32 = arith.constant 1 : i32
    %c0_24 = arith.constant 0 : index
    %c0_25 = arith.constant 0 : index
    %50 = vector.load %arg7[%c0_24, %c0_25] : memref<8x128xf32, #tpu.memory_space<vmem>>, vector<8x128xf32>
    %c0_26 = arith.constant 0 : index
    %c0_27 = arith.constant 0 : index
    %51 = vector.load %arg8[%c0_26, %c0_27] : memref<8x128xf32, #tpu.memory_space<vmem>>, vector<8x128xf32>
    %52 = arith.index_cast %c1_i32 : i32 to index
    %c0_28 = arith.constant 0 : index
    %c0_29 = arith.constant 0 : index
    %53 = vector.load %arg2[%52, %c0_28, %c0_29] : memref<8x8x512xbf16, #tpu.memory_space<vmem>>, vector<1x8x512xbf16>
    %54 = vector.shape_cast %53 : vector<1x8x512xbf16> to vector<8x512xbf16>
    %55 = arith.extf %54 : vector<8x512xbf16> to vector<8x512xf32>
    %56 = arith.truncf %50 : vector<8x128xf32> to vector<8x128xbf16>
    %c0_30 = arith.constant 0 : index
    %c0_31 = arith.constant 0 : index
    %57 = vector.load %arg3[%c0_30, %c0_31] : memref<128x512xbf16, #tpu.memory_space<vmem>>, vector<128x512xbf16>
    %cst_32 = arith.constant dense<0.000000e+00> : vector<8x512xf32>
    %58 = tpu.matmul %56, %57, %cst_32 {dimension_numbers = #tpu.dot_dimension_numbers<[1], [0], [0], [1], [0, 0, 1, 1], [], []>} : vector<8x128xbf16>, vector<128x512xbf16>, vector<8x512xf32> -> vector<8x512xf32>
    %59 = arith.addf %55, %58 : vector<8x512xf32>
    %60 = vector.extract_strided_slice %59 {offsets = [0, 0], sizes = [8, 128], strides = [1, 1]} : vector<8x512xf32> to vector<8x128xf32>
    %cst_33 = arith.constant 5.000000e-01 : f32
    %61 = vector.broadcast %cst_33 : f32 to vector<8x128xf32>
    %62 = arith.mulf %61, %60 : vector<8x128xf32>
    %63 = math.tanh %62 : vector<8x128xf32>
    %cst_34 = arith.constant 5.000000e-01 : f32
    %64 = vector.broadcast %cst_34 : f32 to vector<8x128xf32>
    %65 = arith.mulf %64, %63 : vector<8x128xf32>
    %cst_35 = arith.constant 5.000000e-01 : f32
    %66 = vector.broadcast %cst_35 : f32 to vector<8x128xf32>
    %67 = arith.addf %65, %66 : vector<8x128xf32>
    %68 = vector.extract_strided_slice %59 {offsets = [0, 128], sizes = [8, 128], strides = [1, 1]} : vector<8x512xf32> to vector<8x128xf32>
    %cst_36 = arith.constant 5.000000e-01 : f32
    %69 = vector.broadcast %cst_36 : f32 to vector<8x128xf32>
    %70 = arith.mulf %69, %68 : vector<8x128xf32>
    %71 = math.tanh %70 : vector<8x128xf32>
    %cst_37 = arith.constant 5.000000e-01 : f32
    %72 = vector.broadcast %cst_37 : f32 to vector<8x128xf32>
    %73 = arith.mulf %72, %71 : vector<8x128xf32>
    %cst_38 = arith.constant 5.000000e-01 : f32
    %74 = vector.broadcast %cst_38 : f32 to vector<8x128xf32>
    %75 = arith.addf %73, %74 : vector<8x128xf32>
    %76 = vector.extract_strided_slice %59 {offsets = [0, 256], sizes = [8, 128], strides = [1, 1]} : vector<8x512xf32> to vector<8x128xf32>
    %77 = math.tanh %76 : vector<8x128xf32>
    %78 = vector.extract_strided_slice %59 {offsets = [0, 384], sizes = [8, 128], strides = [1, 1]} : vector<8x512xf32> to vector<8x128xf32>
    %cst_39 = arith.constant 5.000000e-01 : f32
    %79 = vector.broadcast %cst_39 : f32 to vector<8x128xf32>
    %80 = arith.mulf %79, %78 : vector<8x128xf32>
    %81 = math.tanh %80 : vector<8x128xf32>
    %cst_40 = arith.constant 5.000000e-01 : f32
    %82 = vector.broadcast %cst_40 : f32 to vector<8x128xf32>
    %83 = arith.mulf %82, %81 : vector<8x128xf32>
    %cst_41 = arith.constant 5.000000e-01 : f32
    %84 = vector.broadcast %cst_41 : f32 to vector<8x128xf32>
    %85 = arith.addf %83, %84 : vector<8x128xf32>
    %86 = arith.mulf %75, %51 : vector<8x128xf32>
    %87 = arith.mulf %67, %77 : vector<8x128xf32>
    %88 = arith.addf %86, %87 : vector<8x128xf32>
    %89 = math.tanh %88 : vector<8x128xf32>
    %90 = arith.mulf %85, %89 : vector<8x128xf32>
    %c0_42 = arith.constant 0 : index
    %c0_43 = arith.constant 0 : index
    %91 = vector.load %arg8[%c0_42, %c0_43] : memref<8x128xf32, #tpu.memory_space<vmem>>, vector<8x128xf32>
    tpu.vector_store %arg8[%c0_42, %c0_43], %88 {strides = array<i32>} : memref<8x128xf32, #tpu.memory_space<vmem>>, vector<8x128xf32>,
    %c0_44 = arith.constant 0 : index
    %c0_45 = arith.constant 0 : index
    %92 = vector.load %arg7[%c0_44, %c0_45] : memref<8x128xf32, #tpu.memory_space<vmem>>, vector<8x128xf32>
    tpu.vector_store %arg7[%c0_44, %c0_45], %90 {strides = array<i32>} : memref<8x128xf32, #tpu.memory_space<vmem>>, vector<8x128xf32>,
    %93 = arith.index_cast %c1_i32 : i32 to index
    %c0_46 = arith.constant 0 : index
    %c0_47 = arith.constant 0 : index
    %94 = vector.load %arg9[%93, %c0_46, %c0_47] : memref<8x8x128xf32, #tpu.memory_space<vmem>>, vector<1x8x128xf32>
    %95 = vector.shape_cast %94 : vector<1x8x128xf32> to vector<8x128xf32>
    %96 = vector.shape_cast %90 : vector<8x128xf32> to vector<1x8x128xf32>
    tpu.vector_store %arg9[%93, %c0_46, %c0_47], %96 {strides = array<i32>} : memref<8x8x128xf32, #tpu.memory_space<vmem>>, vector<1x8x128xf32>,
    %c2_i32 = arith.constant 2 : i32
    %c0_48 = arith.constant 0 : index
    %c0_49 = arith.constant 0 : index
    %97 = vector.load %arg7[%c0_48, %c0_49] : memref<8x128xf32, #tpu.memory_space<vmem>>, vector<8x128xf32>
    %c0_50 = arith.constant 0 : index
    %c0_51 = arith.constant 0 : index
    %98 = vector.load %arg8[%c0_50, %c0_51] : memref<8x128xf32, #tpu.memory_space<vmem>>, vector<8x128xf32>
    %99 = arith.index_cast %c2_i32 : i32 to index
    %c0_52 = arith.constant 0 : index
    %c0_53 = arith.constant 0 : index
    %100 = vector.load %arg2[%99, %c0_52, %c0_53] : memref<8x8x512xbf16, #tpu.memory_space<vmem>>, vector<1x8x512xbf16>
    %101 = vector.shape_cast %100 : vector<1x8x512xbf16> to vector<8x512xbf16>
    %102 = arith.extf %101 : vector<8x512xbf16> to vector<8x512xf32>
    %103 = arith.truncf %97 : vector<8x128xf32> to vector<8x128xbf16>
    %c0_54 = arith.constant 0 : index
    %c0_55 = arith.constant 0 : index
    %104 = vector.load %arg3[%c0_54, %c0_55] : memref<128x512xbf16, #tpu.memory_space<vmem>>, vector<128x512xbf16>
    %cst_56 = arith.constant dense<0.000000e+00> : vector<8x512xf32>
    %105 = tpu.matmul %103, %104, %cst_56 {dimension_numbers = #tpu.dot_dimension_numbers<[1], [0], [0], [1], [0, 0, 1, 1], [], []>} : vector<8x128xbf16>, vector<128x512xbf16>, vector<8x512xf32> -> vector<8x512xf32>
    %106 = arith.addf %102, %105 : vector<8x512xf32>
    %107 = vector.extract_strided_slice %106 {offsets = [0, 0], sizes = [8, 128], strides = [1, 1]} : vector<8x512xf32> to vector<8x128xf32>
    %cst_57 = arith.constant 5.000000e-01 : f32
    %108 = vector.broadcast %cst_57 : f32 to vector<8x128xf32>
    %109 = arith.mulf %108, %107 : vector<8x128xf32>
    %110 = math.tanh %109 : vector<8x128xf32>
    %cst_58 = arith.constant 5.000000e-01 : f32
    %111 = vector.broadcast %cst_58 : f32 to vector<8x128xf32>
    %112 = arith.mulf %111, %110 : vector<8x128xf32>
    %cst_59 = arith.constant 5.000000e-01 : f32
    %113 = vector.broadcast %cst_59 : f32 to vector<8x128xf32>
    %114 = arith.addf %112, %113 : vector<8x128xf32>
    %115 = vector.extract_strided_slice %106 {offsets = [0, 128], sizes = [8, 128], strides = [1, 1]} : vector<8x512xf32> to vector<8x128xf32>
    %cst_60 = arith.constant 5.000000e-01 : f32
    %116 = vector.broadcast %cst_60 : f32 to vector<8x128xf32>
    %117 = arith.mulf %116, %115 : vector<8x128xf32>
    %118 = math.tanh %117 : vector<8x128xf32>
    %cst_61 = arith.constant 5.000000e-01 : f32
    %119 = vector.broadcast %cst_61 : f32 to vector<8x128xf32>
    %120 = arith.mulf %119, %118 : vector<8x128xf32>
    %cst_62 = arith.constant 5.000000e-01 : f32
    %121 = vector.broadcast %cst_62 : f32 to vector<8x128xf32>
    %122 = arith.addf %120, %121 : vector<8x128xf32>
    %123 = vector.extract_strided_slice %106 {offsets = [0, 256], sizes = [8, 128], strides = [1, 1]} : vector<8x512xf32> to vector<8x128xf32>
    %124 = math.tanh %123 : vector<8x128xf32>
    %125 = vector.extract_strided_slice %106 {offsets = [0, 384], sizes = [8, 128], strides = [1, 1]} : vector<8x512xf32> to vector<8x128xf32>
    %cst_63 = arith.constant 5.000000e-01 : f32
    %126 = vector.broadcast %cst_63 : f32 to vector<8x128xf32>
    %127 = arith.mulf %126, %125 : vector<8x128xf32>
    %128 = math.tanh %127 : vector<8x128xf32>
    %cst_64 = arith.constant 5.000000e-01 : f32
    %129 = vector.broadcast %cst_64 : f32 to vector<8x128xf32>
    %130 = arith.mulf %129, %128 : vector<8x128xf32>
    %cst_65 = arith.constant 5.000000e-01 : f32
    %131 = vector.broadcast %cst_65 : f32 to vector<8x128xf32>
    %132 = arith.addf %130, %131 : vector<8x128xf32>
    %133 = arith.mulf %122, %98 : vector<8x128xf32>
    %134 = arith.mulf %114, %124 : vector<8x128xf32>
    %135 = arith.addf %133, %134 : vector<8x128xf32>
    %136 = math.tanh %135 : vector<8x128xf32>
    %137 = arith.mulf %132, %136 : vector<8x128xf32>
    %c0_66 = arith.constant 0 : index
    %c0_67 = arith.constant 0 : index
    %138 = vector.load %arg8[%c0_66, %c0_67] : memref<8x128xf32, #tpu.memory_space<vmem>>, vector<8x128xf32>
    tpu.vector_store %arg8[%c0_66, %c0_67], %135 {strides = array<i32>} : memref<8x128xf32, #tpu.memory_space<vmem>>, vector<8x128xf32>,
    %c0_68 = arith.constant 0 : index
    %c0_69 = arith.constant 0 : index
    %139 = vector.load %arg7[%c0_68, %c0_69] : memref<8x128xf32, #tpu.memory_space<vmem>>, vector<8x128xf32>
    tpu.vector_store %arg7[%c0_68, %c0_69], %137 {strides = array<i32>} : memref<8x128xf32, #tpu.memory_space<vmem>>, vector<8x128xf32>,
    %140 = arith.index_cast %c2_i32 : i32 to index
    %c0_70 = arith.constant 0 : index
    %c0_71 = arith.constant 0 : index
    %141 = vector.load %arg9[%140, %c0_70, %c0_71] : memref<8x8x128xf32, #tpu.memory_space<vmem>>, vector<1x8x128xf32>
    %142 = vector.shape_cast %141 : vector<1x8x128xf32> to vector<8x128xf32>
    %143 = vector.shape_cast %137 : vector<8x128xf32> to vector<1x8x128xf32>
    tpu.vector_store %arg9[%140, %c0_70, %c0_71], %143 {strides = array<i32>} : memref<8x8x128xf32, #tpu.memory_space<vmem>>, vector<1x8x128xf32>,
    %c3_i32 = arith.constant 3 : i32
    %c0_72 = arith.constant 0 : index
    %c0_73 = arith.constant 0 : index
    %144 = vector.load %arg7[%c0_72, %c0_73] : memref<8x128xf32, #tpu.memory_space<vmem>>, vector<8x128xf32>
    %c0_74 = arith.constant 0 : index
    %c0_75 = arith.constant 0 : index
    %145 = vector.load %arg8[%c0_74, %c0_75] : memref<8x128xf32, #tpu.memory_space<vmem>>, vector<8x128xf32>
    %146 = arith.index_cast %c3_i32 : i32 to index
    %c0_76 = arith.constant 0 : index
    %c0_77 = arith.constant 0 : index
    %147 = vector.load %arg2[%146, %c0_76, %c0_77] : memref<8x8x512xbf16, #tpu.memory_space<vmem>>, vector<1x8x512xbf16>
    %148 = vector.shape_cast %147 : vector<1x8x512xbf16> to vector<8x512xbf16>
    %149 = arith.extf %148 : vector<8x512xbf16> to vector<8x512xf32>
    %150 = arith.truncf %144 : vector<8x128xf32> to vector<8x128xbf16>
    %c0_78 = arith.constant 0 : index
    %c0_79 = arith.constant 0 : index
    %151 = vector.load %arg3[%c0_78, %c0_79] : memref<128x512xbf16, #tpu.memory_space<vmem>>, vector<128x512xbf16>
    %cst_80 = arith.constant dense<0.000000e+00> : vector<8x512xf32>
    %152 = tpu.matmul %150, %151, %cst_80 {dimension_numbers = #tpu.dot_dimension_numbers<[1], [0], [0], [1], [0, 0, 1, 1], [], []>} : vector<8x128xbf16>, vector<128x512xbf16>, vector<8x512xf32> -> vector<8x512xf32>
    %153 = arith.addf %149, %152 : vector<8x512xf32>
    %154 = vector.extract_strided_slice %153 {offsets = [0, 0], sizes = [8, 128], strides = [1, 1]} : vector<8x512xf32> to vector<8x128xf32>
    %cst_81 = arith.constant 5.000000e-01 : f32
    %155 = vector.broadcast %cst_81 : f32 to vector<8x128xf32>
    %156 = arith.mulf %155, %154 : vector<8x128xf32>
    %157 = math.tanh %156 : vector<8x128xf32>
    %cst_82 = arith.constant 5.000000e-01 : f32
    %158 = vector.broadcast %cst_82 : f32 to vector<8x128xf32>
    %159 = arith.mulf %158, %157 : vector<8x128xf32>
    %cst_83 = arith.constant 5.000000e-01 : f32
    %160 = vector.broadcast %cst_83 : f32 to vector<8x128xf32>
    %161 = arith.addf %159, %160 : vector<8x128xf32>
    %162 = vector.extract_strided_slice %153 {offsets = [0, 128], sizes = [8, 128], strides = [1, 1]} : vector<8x512xf32> to vector<8x128xf32>
    %cst_84 = arith.constant 5.000000e-01 : f32
    %163 = vector.broadcast %cst_84 : f32 to vector<8x128xf32>
    %164 = arith.mulf %163, %162 : vector<8x128xf32>
    %165 = math.tanh %164 : vector<8x128xf32>
    %cst_85 = arith.constant 5.000000e-01 : f32
    %166 = vector.broadcast %cst_85 : f32 to vector<8x128xf32>
    %167 = arith.mulf %166, %165 : vector<8x128xf32>
    %cst_86 = arith.constant 5.000000e-01 : f32
    %168 = vector.broadcast %cst_86 : f32 to vector<8x128xf32>
    %169 = arith.addf %167, %168 : vector<8x128xf32>
    %170 = vector.extract_strided_slice %153 {offsets = [0, 256], sizes = [8, 128], strides = [1, 1]} : vector<8x512xf32> to vector<8x128xf32>
    %171 = math.tanh %170 : vector<8x128xf32>
    %172 = vector.extract_strided_slice %153 {offsets = [0, 384], sizes = [8, 128], strides = [1, 1]} : vector<8x512xf32> to vector<8x128xf32>
    %cst_87 = arith.constant 5.000000e-01 : f32
    %173 = vector.broadcast %cst_87 : f32 to vector<8x128xf32>
    %174 = arith.mulf %173, %172 : vector<8x128xf32>
    %175 = math.tanh %174 : vector<8x128xf32>
    %cst_88 = arith.constant 5.000000e-01 : f32
    %176 = vector.broadcast %cst_88 : f32 to vector<8x128xf32>
    %177 = arith.mulf %176, %175 : vector<8x128xf32>
    %cst_89 = arith.constant 5.000000e-01 : f32
    %178 = vector.broadcast %cst_89 : f32 to vector<8x128xf32>
    %179 = arith.addf %177, %178 : vector<8x128xf32>
    %180 = arith.mulf %169, %145 : vector<8x128xf32>
    %181 = arith.mulf %161, %171 : vector<8x128xf32>
    %182 = arith.addf %180, %181 : vector<8x128xf32>
    %183 = math.tanh %182 : vector<8x128xf32>
    %184 = arith.mulf %179, %183 : vector<8x128xf32>
    %c0_90 = arith.constant 0 : index
    %c0_91 = arith.constant 0 : index
    %185 = vector.load %arg8[%c0_90, %c0_91] : memref<8x128xf32, #tpu.memory_space<vmem>>, vector<8x128xf32>
    tpu.vector_store %arg8[%c0_90, %c0_91], %182 {strides = array<i32>} : memref<8x128xf32, #tpu.memory_space<vmem>>, vector<8x128xf32>,
    %c0_92 = arith.constant 0 : index
    %c0_93 = arith.constant 0 : index
    %186 = vector.load %arg7[%c0_92, %c0_93] : memref<8x128xf32, #tpu.memory_space<vmem>>, vector<8x128xf32>
    tpu.vector_store %arg7[%c0_92, %c0_93], %184 {strides = array<i32>} : memref<8x128xf32, #tpu.memory_space<vmem>>, vector<8x128xf32>,
    %187 = arith.index_cast %c3_i32 : i32 to index
    %c0_94 = arith.constant 0 : index
    %c0_95 = arith.constant 0 : index
    %188 = vector.load %arg9[%187, %c0_94, %c0_95] : memref<8x8x128xf32, #tpu.memory_space<vmem>>, vector<1x8x128xf32>
    %189 = vector.shape_cast %188 : vector<1x8x128xf32> to vector<8x128xf32>
    %190 = vector.shape_cast %184 : vector<8x128xf32> to vector<1x8x128xf32>
    tpu.vector_store %arg9[%187, %c0_94, %c0_95], %190 {strides = array<i32>} : memref<8x8x128xf32, #tpu.memory_space<vmem>>, vector<1x8x128xf32>,
    %c4_i32 = arith.constant 4 : i32
    %c0_96 = arith.constant 0 : index
    %c0_97 = arith.constant 0 : index
    %191 = vector.load %arg7[%c0_96, %c0_97] : memref<8x128xf32, #tpu.memory_space<vmem>>, vector<8x128xf32>
    %c0_98 = arith.constant 0 : index
    %c0_99 = arith.constant 0 : index
    %192 = vector.load %arg8[%c0_98, %c0_99] : memref<8x128xf32, #tpu.memory_space<vmem>>, vector<8x128xf32>
    %193 = arith.index_cast %c4_i32 : i32 to index
    %c0_100 = arith.constant 0 : index
    %c0_101 = arith.constant 0 : index
    %194 = vector.load %arg2[%193, %c0_100, %c0_101] : memref<8x8x512xbf16, #tpu.memory_space<vmem>>, vector<1x8x512xbf16>
    %195 = vector.shape_cast %194 : vector<1x8x512xbf16> to vector<8x512xbf16>
    %196 = arith.extf %195 : vector<8x512xbf16> to vector<8x512xf32>
    %197 = arith.truncf %191 : vector<8x128xf32> to vector<8x128xbf16>
    %c0_102 = arith.constant 0 : index
    %c0_103 = arith.constant 0 : index
    %198 = vector.load %arg3[%c0_102, %c0_103] : memref<128x512xbf16, #tpu.memory_space<vmem>>, vector<128x512xbf16>
    %cst_104 = arith.constant dense<0.000000e+00> : vector<8x512xf32>
    %199 = tpu.matmul %197, %198, %cst_104 {dimension_numbers = #tpu.dot_dimension_numbers<[1], [0], [0], [1], [0, 0, 1, 1], [], []>} : vector<8x128xbf16>, vector<128x512xbf16>, vector<8x512xf32> -> vector<8x512xf32>
    %200 = arith.addf %196, %199 : vector<8x512xf32>
    %201 = vector.extract_strided_slice %200 {offsets = [0, 0], sizes = [8, 128], strides = [1, 1]} : vector<8x512xf32> to vector<8x128xf32>
    %cst_105 = arith.constant 5.000000e-01 : f32
    %202 = vector.broadcast %cst_105 : f32 to vector<8x128xf32>
    %203 = arith.mulf %202, %201 : vector<8x128xf32>
    %204 = math.tanh %203 : vector<8x128xf32>
    %cst_106 = arith.constant 5.000000e-01 : f32
    %205 = vector.broadcast %cst_106 : f32 to vector<8x128xf32>
    %206 = arith.mulf %205, %204 : vector<8x128xf32>
    %cst_107 = arith.constant 5.000000e-01 : f32
    %207 = vector.broadcast %cst_107 : f32 to vector<8x128xf32>
    %208 = arith.addf %206, %207 : vector<8x128xf32>
    %209 = vector.extract_strided_slice %200 {offsets = [0, 128], sizes = [8, 128], strides = [1, 1]} : vector<8x512xf32> to vector<8x128xf32>
    %cst_108 = arith.constant 5.000000e-01 : f32
    %210 = vector.broadcast %cst_108 : f32 to vector<8x128xf32>
    %211 = arith.mulf %210, %209 : vector<8x128xf32>
    %212 = math.tanh %211 : vector<8x128xf32>
    %cst_109 = arith.constant 5.000000e-01 : f32
    %213 = vector.broadcast %cst_109 : f32 to vector<8x128xf32>
    %214 = arith.mulf %213, %212 : vector<8x128xf32>
    %cst_110 = arith.constant 5.000000e-01 : f32
    %215 = vector.broadcast %cst_110 : f32 to vector<8x128xf32>
    %216 = arith.addf %214, %215 : vector<8x128xf32>
    %217 = vector.extract_strided_slice %200 {offsets = [0, 256], sizes = [8, 128], strides = [1, 1]} : vector<8x512xf32> to vector<8x128xf32>
    %218 = math.tanh %217 : vector<8x128xf32>
    %219 = vector.extract_strided_slice %200 {offsets = [0, 384], sizes = [8, 128], strides = [1, 1]} : vector<8x512xf32> to vector<8x128xf32>
    %cst_111 = arith.constant 5.000000e-01 : f32
    %220 = vector.broadcast %cst_111 : f32 to vector<8x128xf32>
    %221 = arith.mulf %220, %219 : vector<8x128xf32>
    %222 = math.tanh %221 : vector<8x128xf32>
    %cst_112 = arith.constant 5.000000e-01 : f32
    %223 = vector.broadcast %cst_112 : f32 to vector<8x128xf32>
    %224 = arith.mulf %223, %222 : vector<8x128xf32>
    %cst_113 = arith.constant 5.000000e-01 : f32
    %225 = vector.broadcast %cst_113 : f32 to vector<8x128xf32>
    %226 = arith.addf %224, %225 : vector<8x128xf32>
    %227 = arith.mulf %216, %192 : vector<8x128xf32>
    %228 = arith.mulf %208, %218 : vector<8x128xf32>
    %229 = arith.addf %227, %228 : vector<8x128xf32>
    %230 = math.tanh %229 : vector<8x128xf32>
    %231 = arith.mulf %226, %230 : vector<8x128xf32>
    %c0_114 = arith.constant 0 : index
    %c0_115 = arith.constant 0 : index
    %232 = vector.load %arg8[%c0_114, %c0_115] : memref<8x128xf32, #tpu.memory_space<vmem>>, vector<8x128xf32>
    tpu.vector_store %arg8[%c0_114, %c0_115], %229 {strides = array<i32>} : memref<8x128xf32, #tpu.memory_space<vmem>>, vector<8x128xf32>,
    %c0_116 = arith.constant 0 : index
    %c0_117 = arith.constant 0 : index
    %233 = vector.load %arg7[%c0_116, %c0_117] : memref<8x128xf32, #tpu.memory_space<vmem>>, vector<8x128xf32>
    tpu.vector_store %arg7[%c0_116, %c0_117], %231 {strides = array<i32>} : memref<8x128xf32, #tpu.memory_space<vmem>>, vector<8x128xf32>,
    %234 = arith.index_cast %c4_i32 : i32 to index
    %c0_118 = arith.constant 0 : index
    %c0_119 = arith.constant 0 : index
    %235 = vector.load %arg9[%234, %c0_118, %c0_119] : memref<8x8x128xf32, #tpu.memory_space<vmem>>, vector<1x8x128xf32>
    %236 = vector.shape_cast %235 : vector<1x8x128xf32> to vector<8x128xf32>
    %237 = vector.shape_cast %231 : vector<8x128xf32> to vector<1x8x128xf32>
    tpu.vector_store %arg9[%234, %c0_118, %c0_119], %237 {strides = array<i32>} : memref<8x8x128xf32, #tpu.memory_space<vmem>>, vector<1x8x128xf32>,
    %c5_i32 = arith.constant 5 : i32
    %c0_120 = arith.constant 0 : index
    %c0_121 = arith.constant 0 : index
    %238 = vector.load %arg7[%c0_120, %c0_121] : memref<8x128xf32, #tpu.memory_space<vmem>>, vector<8x128xf32>
    %c0_122 = arith.constant 0 : index
    %c0_123 = arith.constant 0 : index
    %239 = vector.load %arg8[%c0_122, %c0_123] : memref<8x128xf32, #tpu.memory_space<vmem>>, vector<8x128xf32>
    %240 = arith.index_cast %c5_i32 : i32 to index
    %c0_124 = arith.constant 0 : index
    %c0_125 = arith.constant 0 : index
    %241 = vector.load %arg2[%240, %c0_124, %c0_125] : memref<8x8x512xbf16, #tpu.memory_space<vmem>>, vector<1x8x512xbf16>
    %242 = vector.shape_cast %241 : vector<1x8x512xbf16> to vector<8x512xbf16>
    %243 = arith.extf %242 : vector<8x512xbf16> to vector<8x512xf32>
    %244 = arith.truncf %238 : vector<8x128xf32> to vector<8x128xbf16>
    %c0_126 = arith.constant 0 : index
    %c0_127 = arith.constant 0 : index
    %245 = vector.load %arg3[%c0_126, %c0_127] : memref<128x512xbf16, #tpu.memory_space<vmem>>, vector<128x512xbf16>
    %cst_128 = arith.constant dense<0.000000e+00> : vector<8x512xf32>
    %246 = tpu.matmul %244, %245, %cst_128 {dimension_numbers = #tpu.dot_dimension_numbers<[1], [0], [0], [1], [0, 0, 1, 1], [], []>} : vector<8x128xbf16>, vector<128x512xbf16>, vector<8x512xf32> -> vector<8x512xf32>
    %247 = arith.addf %243, %246 : vector<8x512xf32>
    %248 = vector.extract_strided_slice %247 {offsets = [0, 0], sizes = [8, 128], strides = [1, 1]} : vector<8x512xf32> to vector<8x128xf32>
    %cst_129 = arith.constant 5.000000e-01 : f32
    %249 = vector.broadcast %cst_129 : f32 to vector<8x128xf32>
    %250 = arith.mulf %249, %248 : vector<8x128xf32>
    %251 = math.tanh %250 : vector<8x128xf32>
    %cst_130 = arith.constant 5.000000e-01 : f32
    %252 = vector.broadcast %cst_130 : f32 to vector<8x128xf32>
    %253 = arith.mulf %252, %251 : vector<8x128xf32>
    %cst_131 = arith.constant 5.000000e-01 : f32
    %254 = vector.broadcast %cst_131 : f32 to vector<8x128xf32>
    %255 = arith.addf %253, %254 : vector<8x128xf32>
    %256 = vector.extract_strided_slice %247 {offsets = [0, 128], sizes = [8, 128], strides = [1, 1]} : vector<8x512xf32> to vector<8x128xf32>
    %cst_132 = arith.constant 5.000000e-01 : f32
    %257 = vector.broadcast %cst_132 : f32 to vector<8x128xf32>
    %258 = arith.mulf %257, %256 : vector<8x128xf32>
    %259 = math.tanh %258 : vector<8x128xf32>
    %cst_133 = arith.constant 5.000000e-01 : f32
    %260 = vector.broadcast %cst_133 : f32 to vector<8x128xf32>
    %261 = arith.mulf %260, %259 : vector<8x128xf32>
    %cst_134 = arith.constant 5.000000e-01 : f32
    %262 = vector.broadcast %cst_134 : f32 to vector<8x128xf32>
    %263 = arith.addf %261, %262 : vector<8x128xf32>
    %264 = vector.extract_strided_slice %247 {offsets = [0, 256], sizes = [8, 128], strides = [1, 1]} : vector<8x512xf32> to vector<8x128xf32>
    %265 = math.tanh %264 : vector<8x128xf32>
    %266 = vector.extract_strided_slice %247 {offsets = [0, 384], sizes = [8, 128], strides = [1, 1]} : vector<8x512xf32> to vector<8x128xf32>
    %cst_135 = arith.constant 5.000000e-01 : f32
    %267 = vector.broadcast %cst_135 : f32 to vector<8x128xf32>
    %268 = arith.mulf %267, %266 : vector<8x128xf32>
    %269 = math.tanh %268 : vector<8x128xf32>
    %cst_136 = arith.constant 5.000000e-01 : f32
    %270 = vector.broadcast %cst_136 : f32 to vector<8x128xf32>
    %271 = arith.mulf %270, %269 : vector<8x128xf32>
    %cst_137 = arith.constant 5.000000e-01 : f32
    %272 = vector.broadcast %cst_137 : f32 to vector<8x128xf32>
    %273 = arith.addf %271, %272 : vector<8x128xf32>
    %274 = arith.mulf %263, %239 : vector<8x128xf32>
    %275 = arith.mulf %255, %265 : vector<8x128xf32>
    %276 = arith.addf %274, %275 : vector<8x128xf32>
    %277 = math.tanh %276 : vector<8x128xf32>
    %278 = arith.mulf %273, %277 : vector<8x128xf32>
    %c0_138 = arith.constant 0 : index
    %c0_139 = arith.constant 0 : index
    %279 = vector.load %arg8[%c0_138, %c0_139] : memref<8x128xf32, #tpu.memory_space<vmem>>, vector<8x128xf32>
    tpu.vector_store %arg8[%c0_138, %c0_139], %276 {strides = array<i32>} : memref<8x128xf32, #tpu.memory_space<vmem>>, vector<8x128xf32>,
    %c0_140 = arith.constant 0 : index
    %c0_141 = arith.constant 0 : index
    %280 = vector.load %arg7[%c0_140, %c0_141] : memref<8x128xf32, #tpu.memory_space<vmem>>, vector<8x128xf32>
    tpu.vector_store %arg7[%c0_140, %c0_141], %278 {strides = array<i32>} : memref<8x128xf32, #tpu.memory_space<vmem>>, vector<8x128xf32>,
    %281 = arith.index_cast %c5_i32 : i32 to index
    %c0_142 = arith.constant 0 : index
    %c0_143 = arith.constant 0 : index
    %282 = vector.load %arg9[%281, %c0_142, %c0_143] : memref<8x8x128xf32, #tpu.memory_space<vmem>>, vector<1x8x128xf32>
    %283 = vector.shape_cast %282 : vector<1x8x128xf32> to vector<8x128xf32>
    %284 = vector.shape_cast %278 : vector<8x128xf32> to vector<1x8x128xf32>
    tpu.vector_store %arg9[%281, %c0_142, %c0_143], %284 {strides = array<i32>} : memref<8x8x128xf32, #tpu.memory_space<vmem>>, vector<1x8x128xf32>,
    %c6_i32 = arith.constant 6 : i32
    %c0_144 = arith.constant 0 : index
    %c0_145 = arith.constant 0 : index
    %285 = vector.load %arg7[%c0_144, %c0_145] : memref<8x128xf32, #tpu.memory_space<vmem>>, vector<8x128xf32>
    %c0_146 = arith.constant 0 : index
    %c0_147 = arith.constant 0 : index
    %286 = vector.load %arg8[%c0_146, %c0_147] : memref<8x128xf32, #tpu.memory_space<vmem>>, vector<8x128xf32>
    %287 = arith.index_cast %c6_i32 : i32 to index
    %c0_148 = arith.constant 0 : index
    %c0_149 = arith.constant 0 : index
    %288 = vector.load %arg2[%287, %c0_148, %c0_149] : memref<8x8x512xbf16, #tpu.memory_space<vmem>>, vector<1x8x512xbf16>
    %289 = vector.shape_cast %288 : vector<1x8x512xbf16> to vector<8x512xbf16>
    %290 = arith.extf %289 : vector<8x512xbf16> to vector<8x512xf32>
    %291 = arith.truncf %285 : vector<8x128xf32> to vector<8x128xbf16>
    %c0_150 = arith.constant 0 : index
    %c0_151 = arith.constant 0 : index
    %292 = vector.load %arg3[%c0_150, %c0_151] : memref<128x512xbf16, #tpu.memory_space<vmem>>, vector<128x512xbf16>
    %cst_152 = arith.constant dense<0.000000e+00> : vector<8x512xf32>
    %293 = tpu.matmul %291, %292, %cst_152 {dimension_numbers = #tpu.dot_dimension_numbers<[1], [0], [0], [1], [0, 0, 1, 1], [], []>} : vector<8x128xbf16>, vector<128x512xbf16>, vector<8x512xf32> -> vector<8x512xf32>
    %294 = arith.addf %290, %293 : vector<8x512xf32>
    %295 = vector.extract_strided_slice %294 {offsets = [0, 0], sizes = [8, 128], strides = [1, 1]} : vector<8x512xf32> to vector<8x128xf32>
    %cst_153 = arith.constant 5.000000e-01 : f32
    %296 = vector.broadcast %cst_153 : f32 to vector<8x128xf32>
    %297 = arith.mulf %296, %295 : vector<8x128xf32>
    %298 = math.tanh %297 : vector<8x128xf32>
    %cst_154 = arith.constant 5.000000e-01 : f32
    %299 = vector.broadcast %cst_154 : f32 to vector<8x128xf32>
    %300 = arith.mulf %299, %298 : vector<8x128xf32>
    %cst_155 = arith.constant 5.000000e-01 : f32
    %301 = vector.broadcast %cst_155 : f32 to vector<8x128xf32>
    %302 = arith.addf %300, %301 : vector<8x128xf32>
    %303 = vector.extract_strided_slice %294 {offsets = [0, 128], sizes = [8, 128], strides = [1, 1]} : vector<8x512xf32> to vector<8x128xf32>
    %cst_156 = arith.constant 5.000000e-01 : f32
    %304 = vector.broadcast %cst_156 : f32 to vector<8x128xf32>
    %305 = arith.mulf %304, %303 : vector<8x128xf32>
    %306 = math.tanh %305 : vector<8x128xf32>
    %cst_157 = arith.constant 5.000000e-01 : f32
    %307 = vector.broadcast %cst_157 : f32 to vector<8x128xf32>
    %308 = arith.mulf %307, %306 : vector<8x128xf32>
    %cst_158 = arith.constant 5.000000e-01 : f32
    %309 = vector.broadcast %cst_158 : f32 to vector<8x128xf32>
    %310 = arith.addf %308, %309 : vector<8x128xf32>
    %311 = vector.extract_strided_slice %294 {offsets = [0, 256], sizes = [8, 128], strides = [1, 1]} : vector<8x512xf32> to vector<8x128xf32>
    %312 = math.tanh %311 : vector<8x128xf32>
    %313 = vector.extract_strided_slice %294 {offsets = [0, 384], sizes = [8, 128], strides = [1, 1]} : vector<8x512xf32> to vector<8x128xf32>
    %cst_159 = arith.constant 5.000000e-01 : f32
    %314 = vector.broadcast %cst_159 : f32 to vector<8x128xf32>
    %315 = arith.mulf %314, %313 : vector<8x128xf32>
    %316 = math.tanh %315 : vector<8x128xf32>
    %cst_160 = arith.constant 5.000000e-01 : f32
    %317 = vector.broadcast %cst_160 : f32 to vector<8x128xf32>
    %318 = arith.mulf %317, %316 : vector<8x128xf32>
    %cst_161 = arith.constant 5.000000e-01 : f32
    %319 = vector.broadcast %cst_161 : f32 to vector<8x128xf32>
    %320 = arith.addf %318, %319 : vector<8x128xf32>
    %321 = arith.mulf %310, %286 : vector<8x128xf32>
    %322 = arith.mulf %302, %312 : vector<8x128xf32>
    %323 = arith.addf %321, %322 : vector<8x128xf32>
    %324 = math.tanh %323 : vector<8x128xf32>
    %325 = arith.mulf %320, %324 : vector<8x128xf32>
    %c0_162 = arith.constant 0 : index
    %c0_163 = arith.constant 0 : index
    %326 = vector.load %arg8[%c0_162, %c0_163] : memref<8x128xf32, #tpu.memory_space<vmem>>, vector<8x128xf32>
    tpu.vector_store %arg8[%c0_162, %c0_163], %323 {strides = array<i32>} : memref<8x128xf32, #tpu.memory_space<vmem>>, vector<8x128xf32>,
    %c0_164 = arith.constant 0 : index
    %c0_165 = arith.constant 0 : index
    %327 = vector.load %arg7[%c0_164, %c0_165] : memref<8x128xf32, #tpu.memory_space<vmem>>, vector<8x128xf32>
    tpu.vector_store %arg7[%c0_164, %c0_165], %325 {strides = array<i32>} : memref<8x128xf32, #tpu.memory_space<vmem>>, vector<8x128xf32>,
    %328 = arith.index_cast %c6_i32 : i32 to index
    %c0_166 = arith.constant 0 : index
    %c0_167 = arith.constant 0 : index
    %329 = vector.load %arg9[%328, %c0_166, %c0_167] : memref<8x8x128xf32, #tpu.memory_space<vmem>>, vector<1x8x128xf32>
    %330 = vector.shape_cast %329 : vector<1x8x128xf32> to vector<8x128xf32>
    %331 = vector.shape_cast %325 : vector<8x128xf32> to vector<1x8x128xf32>
    tpu.vector_store %arg9[%328, %c0_166, %c0_167], %331 {strides = array<i32>} : memref<8x8x128xf32, #tpu.memory_space<vmem>>, vector<1x8x128xf32>,
    %c7_i32 = arith.constant 7 : i32
    %c0_168 = arith.constant 0 : index
    %c0_169 = arith.constant 0 : index
    %332 = vector.load %arg7[%c0_168, %c0_169] : memref<8x128xf32, #tpu.memory_space<vmem>>, vector<8x128xf32>
    %c0_170 = arith.constant 0 : index
    %c0_171 = arith.constant 0 : index
    %333 = vector.load %arg8[%c0_170, %c0_171] : memref<8x128xf32, #tpu.memory_space<vmem>>, vector<8x128xf32>
    %334 = arith.index_cast %c7_i32 : i32 to index
    %c0_172 = arith.constant 0 : index
    %c0_173 = arith.constant 0 : index
    %335 = vector.load %arg2[%334, %c0_172, %c0_173] : memref<8x8x512xbf16, #tpu.memory_space<vmem>>, vector<1x8x512xbf16>
    %336 = vector.shape_cast %335 : vector<1x8x512xbf16> to vector<8x512xbf16>
    %337 = arith.extf %336 : vector<8x512xbf16> to vector<8x512xf32>
    %338 = arith.truncf %332 : vector<8x128xf32> to vector<8x128xbf16>
    %c0_174 = arith.constant 0 : index
    %c0_175 = arith.constant 0 : index
    %339 = vector.load %arg3[%c0_174, %c0_175] : memref<128x512xbf16, #tpu.memory_space<vmem>>, vector<128x512xbf16>
    %cst_176 = arith.constant dense<0.000000e+00> : vector<8x512xf32>
    %340 = tpu.matmul %338, %339, %cst_176 {dimension_numbers = #tpu.dot_dimension_numbers<[1], [0], [0], [1], [0, 0, 1, 1], [], []>} : vector<8x128xbf16>, vector<128x512xbf16>, vector<8x512xf32> -> vector<8x512xf32>
    %341 = arith.addf %337, %340 : vector<8x512xf32>
    %342 = vector.extract_strided_slice %341 {offsets = [0, 0], sizes = [8, 128], strides = [1, 1]} : vector<8x512xf32> to vector<8x128xf32>
    %cst_177 = arith.constant 5.000000e-01 : f32
    %343 = vector.broadcast %cst_177 : f32 to vector<8x128xf32>
    %344 = arith.mulf %343, %342 : vector<8x128xf32>
    %345 = math.tanh %344 : vector<8x128xf32>
    %cst_178 = arith.constant 5.000000e-01 : f32
    %346 = vector.broadcast %cst_178 : f32 to vector<8x128xf32>
    %347 = arith.mulf %346, %345 : vector<8x128xf32>
    %cst_179 = arith.constant 5.000000e-01 : f32
    %348 = vector.broadcast %cst_179 : f32 to vector<8x128xf32>
    %349 = arith.addf %347, %348 : vector<8x128xf32>
    %350 = vector.extract_strided_slice %341 {offsets = [0, 128], sizes = [8, 128], strides = [1, 1]} : vector<8x512xf32> to vector<8x128xf32>
    %cst_180 = arith.constant 5.000000e-01 : f32
    %351 = vector.broadcast %cst_180 : f32 to vector<8x128xf32>
    %352 = arith.mulf %351, %350 : vector<8x128xf32>
    %353 = math.tanh %352 : vector<8x128xf32>
    %cst_181 = arith.constant 5.000000e-01 : f32
    %354 = vector.broadcast %cst_181 : f32 to vector<8x128xf32>
    %355 = arith.mulf %354, %353 : vector<8x128xf32>
    %cst_182 = arith.constant 5.000000e-01 : f32
    %356 = vector.broadcast %cst_182 : f32 to vector<8x128xf32>
    %357 = arith.addf %355, %356 : vector<8x128xf32>
    %358 = vector.extract_strided_slice %341 {offsets = [0, 256], sizes = [8, 128], strides = [1, 1]} : vector<8x512xf32> to vector<8x128xf32>
    %359 = math.tanh %358 : vector<8x128xf32>
    %360 = vector.extract_strided_slice %341 {offsets = [0, 384], sizes = [8, 128], strides = [1, 1]} : vector<8x512xf32> to vector<8x128xf32>
    %cst_183 = arith.constant 5.000000e-01 : f32
    %361 = vector.broadcast %cst_183 : f32 to vector<8x128xf32>
    %362 = arith.mulf %361, %360 : vector<8x128xf32>
    %363 = math.tanh %362 : vector<8x128xf32>
    %cst_184 = arith.constant 5.000000e-01 : f32
    %364 = vector.broadcast %cst_184 : f32 to vector<8x128xf32>
    %365 = arith.mulf %364, %363 : vector<8x128xf32>
    %cst_185 = arith.constant 5.000000e-01 : f32
    %366 = vector.broadcast %cst_185 : f32 to vector<8x128xf32>
    %367 = arith.addf %365, %366 : vector<8x128xf32>
    %368 = arith.mulf %357, %333 : vector<8x128xf32>
    %369 = arith.mulf %349, %359 : vector<8x128xf32>
    %370 = arith.addf %368, %369 : vector<8x128xf32>
    %371 = math.tanh %370 : vector<8x128xf32>
    %372 = arith.mulf %367, %371 : vector<8x128xf32>
    %c0_186 = arith.constant 0 : index
    %c0_187 = arith.constant 0 : index
    %373 = vector.load %arg8[%c0_186, %c0_187] : memref<8x128xf32, #tpu.memory_space<vmem>>, vector<8x128xf32>
    tpu.vector_store %arg8[%c0_186, %c0_187], %370 {strides = array<i32>} : memref<8x128xf32, #tpu.memory_space<vmem>>, vector<8x128xf32>,
    %c0_188 = arith.constant 0 : index
    %c0_189 = arith.constant 0 : index
    %374 = vector.load %arg7[%c0_188, %c0_189] : memref<8x128xf32, #tpu.memory_space<vmem>>, vector<8x128xf32>
    tpu.vector_store %arg7[%c0_188, %c0_189], %372 {strides = array<i32>} : memref<8x128xf32, #tpu.memory_space<vmem>>, vector<8x128xf32>,
    %375 = arith.index_cast %c7_i32 : i32 to index
    %c0_190 = arith.constant 0 : index
    %c0_191 = arith.constant 0 : index
    %376 = vector.load %arg9[%375, %c0_190, %c0_191] : memref<8x8x128xf32, #tpu.memory_space<vmem>>, vector<1x8x128xf32>
    %377 = vector.shape_cast %376 : vector<1x8x128xf32> to vector<8x128xf32>
    %378 = vector.shape_cast %372 : vector<8x128xf32> to vector<1x8x128xf32>
    tpu.vector_store %arg9[%375, %c0_190, %c0_191], %378 {strides = array<i32>} : memref<8x8x128xf32, #tpu.memory_space<vmem>>, vector<1x8x128xf32>,
    %c8_i32 = arith.constant 8 : i32
    %c0_192 = arith.constant 0 : index
    %c0_193 = arith.constant 0 : index
    %c0_194 = arith.constant 0 : index
    %379 = vector.load %arg9[%c0_192, %c0_193, %c0_194] : memref<8x8x128xf32, #tpu.memory_space<vmem>>, vector<8x8x128xf32>
    %380 = vector.shape_cast %379 : vector<8x8x128xf32> to vector<64x128xf32>
    %381 = arith.truncf %380 : vector<64x128xf32> to vector<64x128xbf16>
    %c0_195 = arith.constant 0 : index
    %c0_196 = arith.constant 0 : index
    %382 = vector.load %arg4[%c0_195, %c0_196] : memref<128x128xbf16, #tpu.memory_space<vmem>>, vector<128x128xbf16>
    %cst_197 = arith.constant dense<0.000000e+00> : vector<64x128xf32>
    %383 = tpu.matmul %381, %382, %cst_197 {dimension_numbers = #tpu.dot_dimension_numbers<[1], [0], [0], [1], [0, 0, 1, 1], [], []>} : vector<64x128xbf16>, vector<128x128xbf16>, vector<64x128xf32> -> vector<64x128xf32>
    %c0_198 = arith.constant 0 : index
    %c0_199 = arith.constant 0 : index
    %384 = vector.load %arg5[%c0_198, %c0_199] : memref<1x128xf32, #tpu.memory_space<vmem>>, vector<1x128xf32>
    %385 = vector.broadcast %384 : vector<1x128xf32> to vector<64x128xf32>
    %386 = arith.addf %383, %385 : vector<64x128xf32>
    %387 = vector.shape_cast %386 : vector<64x128xf32> to vector<8x8x128xf32>
    %c0_200 = arith.constant 0 : index
    %c0_201 = arith.constant 0 : index
    %c0_202 = arith.constant 0 : index
    %388 = vector.load %arg6[%c0_200, %c0_201, %c0_202] : memref<8x8x128xf32, #tpu.memory_space<vmem>>, vector<8x8x128xf32>
    tpu.vector_store %arg6[%c0_200, %c0_201, %c0_202], %387 {strides = array<i32>} : memref<8x8x128xf32, #tpu.memory_space<vmem>>, vector<8x8x128xf32>,
    return
  }
  func.func @transform_0(%arg0: i32, %arg1: i32) -> (i32, i32, i32) {
    %c0_i32 = arith.constant 0 : i32
    %c0_i32_0 = arith.constant 0 : i32
    return %arg1, %arg0, %c0_i32 : i32, i32, i32
  }
  func.func @transform_1(%arg0: i32, %arg1: i32) -> (i32, i32) {
    %c0_i32 = arith.constant 0 : i32
    %c0_i32_0 = arith.constant 0 : i32
    %c0_i32_1 = arith.constant 0 : i32
    return %c0_i32, %c0_i32_0 : i32, i32
  }
  func.func @transform_2(%arg0: i32, %arg1: i32) -> (i32, i32) {
    %c0_i32 = arith.constant 0 : i32
    %c0_i32_0 = arith.constant 0 : i32
    %c0_i32_1 = arith.constant 0 : i32
    return %c0_i32, %c0_i32_0 : i32, i32
  }
  func.func @transform_3(%arg0: i32, %arg1: i32) -> (i32, i32) {
    %c0_i32 = arith.constant 0 : i32
    %c0_i32_0 = arith.constant 0 : i32
    %c0_i32_1 = arith.constant 0 : i32
    return %c0_i32, %c0_i32_0 : i32, i32
  }
  func.func @transform_4(%arg0: i32, %arg1: i32) -> (i32, i32, i32) {
    %c0_i32 = arith.constant 0 : i32
    %c0_i32_0 = arith.constant 0 : i32
    return %arg1, %arg0, %c0_i32 : i32, i32, i32
  }
}

</mosaic_0001>

<bundles_post_ra>
// kernel: simple_lstm_forward.2
= control target key start
LH: loop header
LB: loop body
LE: loop exit
PB: predicated region body
PF: predicated region fallthrough
CT: control target
= control target key end

     0   :  { %v431_v1 = vmov 0   ;;  %vm73_vm0 = vcmask 130048   ;;  %v33_v17 = vlaneseq  ;;  %s587_s1 = inlined_call_operand.vmem [shape: bf16[16,512], index: 1, kind: input, shape index: {}]   ;;  %s588_s0 = inlined_call_operand.vmem [shape: f32[8,8,16], index: 0, kind: input, shape index: {}]   ;;  %s589_s2 = inlined_call_operand.vmem [shape: f32[1,512], index: 2, kind: input, shape index: {}]   ;;  %s590_s3 = inlined_call_operand.vmem [shape: bf16[8,8,512], index: 3, kind: output, shape index: {}]  }
   0x1   :  { %v425_v0 = vld [vmem:[%s587_s1 + $0x4] ss:$16 sps:$4 sm:$0xff]   ;;  %118 = vmatprep.mubr.bf16.mxu0 %v431_v1  ;;  %191 = vmatprep.mubr.bf16.mxu1 %v431_v1  ;;  %v427_v2 = vld [vmem:[%s587_s1 + $0xc] ss:$16 sps:$4 sm:$0xff]   ;;  %v429_v3 = vld [vmem:[%s587_s1] ss:$16 sps:$4 sm:$0xff]  }
   0x2   :  { %86 = vmatprep.subr.bf16.mxu0 %v425_v0  ;;  %v430_v4 = vld [vmem:[%s587_s1 + $0x8] ss:$16 sps:$4 sm:$0xff]   ;;  %v15_v5 = vld [vmem:[%s588_s0] sm:$0xff]  ;;  %159 = vmatprep.subr.bf16.mxu1 %v427_v2  ;;  %v17_v8 = vld [vmem:[%s588_s0 + $0x10] sm:$0xff]  ;;  %v34_v18 = vshrl.u32 %v33_v17, 7 }
   0x3   :  { %v16_v6 = vld [vmem:[%s588_s0 + $0x8] sm:$0xff]  ;;  %87 = vmatpush1.bf16.msra.mxu0 %v429_v3  ;;  %160 = vmatpush1.bf16.msra.mxu1 %v430_v4  ;;  %v18_v9 = vld [vmem:[%s588_s0 + $0x18] sm:$0xff]  ;;  %v19_v11 = vld [vmem:[%s588_s0 + $0x20] sm:$0xff] }
   0x4   :  { %v23_v7 = vpack.c.bf16 %v16_v6, %v15_v5  ;;  %v24_v10 = vpack.c.bf16 %v18_v9, %v17_v8  ;;  %v20_v12 = vld [vmem:[%s588_s0 + $0x28] sm:$0xff]  ;;  %v21_v14 = vld [vmem:[%s588_s0 + $0x30] sm:$0xff]  ;;  %v22_v15 = vld [vmem:[%s588_s0 + $0x38] sm:$0xff]  ;;  %v35_v19 = vsub.s32 0, %v34_v18  ;;  %v43_v20 = vsub.s32 2, %v34_v18 }
   0x5   :  { %v25_v13 = vpack.c.bf16 %v20_v12, %v19_v11  ;;  %v26_v16 = vpack.c.bf16 %v22_v15, %v21_v14  ;;  %v31_v21 = vld [vmem:[%s589_s2] sm:$0xf]  ;;  %v39_v22 = vsub.s32 1, %v34_v18  ;;  %v47_v23 = vsub.s32 3, %v34_v18 }
   0x6   :  { %384 = vmatmul.mubr.msk.bf16.vlgmr.msra.gmra.mrb[0].mxu0 %vm73_vm0, %v23_v7  ;;  %388 = vmatmul.mubr.msk.bf16.vlgmr.msra.gmra.mrb[0].mxu1 %vm73_vm0, %v23_v7  ;;  %v499_v24 = vrot.slane %v31_v21, %v35_v19  ;;  %v501_v25 = vrot.slane %v31_v21, %v43_v20 }
   0x7   :  { %128 = vmatprep.mubr.bf16.mxu0 %v431_v1  ;;  %201 = vmatprep.mubr.bf16.mxu1 %v431_v1  ;;  %v503_v26 = vrot.slane %v31_v21, %v39_v22  ;;  %v505_v27 = vrot.slane %v31_v21, %v47_v23 }
   0xe   :  { %385 = vmatmul.mubr.msk.bf16.gmra.mrb[4].mxu0 %vm73_vm0, %v24_v10  ;;  %389 = vmatmul.mubr.msk.bf16.gmra.mrb[4].mxu1 %vm73_vm0, %v24_v10 }
   0xf   :  { %138 = vmatprep.mubr.bf16.mxu0 %v431_v1  ;;  %211 = vmatprep.mubr.bf16.mxu1 %v431_v1 }
  0x16   :  { %386 = vmatmul.mubr.msk.bf16.gmra.mrb[8].mxu0 %vm73_vm0, %v25_v13  ;;  %390 = vmatmul.mubr.msk.bf16.gmra.mrb[8].mxu1 %vm73_vm0, %v25_v13 }
  0x17   :  { %148 = vmatprep.mubr.bf16.mxu0 %v431_v1  ;;  %221 = vmatprep.mubr.bf16.mxu1 %v431_v1 }
  0x1e   :  { %387 = vmatmul.mubr.msk.bf16.gmra.mrb[12].mxu0 %vm73_vm0, %v26_v16  ;;  %391 = vmatmul.mubr.msk.bf16.gmra.mrb[12].mxu1 %vm73_vm0, %v26_v16 }
  0xd9   :  { %v120_v28 = vpop.f32.mrb[0].mxu0  ;;  %v193_v29 = vpop.f32.mrb[0].mxu1 }
  0xda   :  { %v121_v30 = vadd.f32 %v120_v28, %v499_v24  ;;  %v194_v31 = vadd.f32 %v193_v29, %v501_v25  ;;  %v122_v32 = vpop.f32.mrb[1].mxu0  ;;  %v195_v33 = vpop.f32.mrb[1].mxu1 }
  0xdb   :  { %v123_v34 = vadd.f32 %v122_v32, %v503_v26  ;;  %v196_v35 = vadd.f32 %v195_v33, %v505_v27  ;;  %v124_v36 = vpop.f32.mrb[2].mxu0  ;;  %v197_v37 = vpop.f32.mrb[2].mxu1 }
  0xdc   :  { %v125_v38 = vadd.f32 %v124_v36, %v499_v24  ;;  %v198_v39 = vadd.f32 %v197_v37, %v501_v25  ;;  %v126_v40 = vpop.f32.mrb[3].mxu0  ;;  %v199_v41 = vpop.f32.mrb[3].mxu1 }
  0xdd   :  { %v408_v42 = vpack.c.bf16 %v123_v34, %v121_v30  ;;  %v409_v43 = vpack.c.bf16 %v196_v35, %v194_v31  ;;  %v127_v44 = vadd.f32 %v126_v40, %v503_v26  ;;  %v200_v45 = vadd.f32 %v199_v41, %v505_v27 }
  0xdf   :  { %360 = vst [vmem:[%s590_s3] sm:$0xff] %v408_v42  ;;  %361 = vst [vmem:[%s590_s3 + $0x8] sm:$0xff] %v409_v43  ;;  %v410_v46 = vpack.c.bf16 %v127_v44, %v125_v38  ;;  %v411_v47 = vpack.c.bf16 %v200_v45, %v198_v39 }
  0xe1   :  { %362 = vst [vmem:[%s590_s3 + $0x10] sm:$0xff] %v410_v46  ;;  %363 = vst [vmem:[%s590_s3 + $0x18] sm:$0xff] %v411_v47  ;;  %v130_v48 = vpop.f32.mrb[4].mxu0  ;;  %v203_v49 = vpop.f32.mrb[4].mxu1 }
  0xe2   :  { %v131_v50 = vadd.f32 %v130_v48, %v499_v24  ;;  %v204_v51 = vadd.f32 %v203_v49, %v501_v25  ;;  %v132_v52 = vpop.f32.mrb[5].mxu0  ;;  %v205_v53 = vpop.f32.mrb[5].mxu1 }
  0xe3   :  { %v133_v54 = vadd.f32 %v132_v52, %v503_v26  ;;  %v206_v55 = vadd.f32 %v205_v53, %v505_v27  ;;  %v134_v56 = vpop.f32.mrb[6].mxu0  ;;  %v207_v57 = vpop.f32.mrb[6].mxu1 }
  0xe4   :  { %v135_v58 = vadd.f32 %v134_v56, %v499_v24  ;;  %v208_v59 = vadd.f32 %v207_v57, %v501_v25  ;;  %v136_v60 = vpop.f32.mrb[7].mxu0  ;;  %v209_v61 = vpop.f32.mrb[7].mxu1 }
  0xe5   :  { %v412_v62 = vpack.c.bf16 %v133_v54, %v131_v50  ;;  %v413_v63 = vpack.c.bf16 %v206_v55, %v204_v51  ;;  %v137_v0 = vadd.f32 %v136_v60, %v503_v26  ;;  %v210_v1 = vadd.f32 %v209_v61, %v505_v27 }
  0xe7   :  { %364 = vst [vmem:[%s590_s3 + $0x20] sm:$0xff] %v412_v62  ;;  %365 = vst [vmem:[%s590_s3 + $0x28] sm:$0xff] %v413_v63  ;;  %v414_v2 = vpack.c.bf16 %v137_v0, %v135_v58  ;;  %v415_v3 = vpack.c.bf16 %v210_v1, %v208_v59 }
  0xe9   :  { %366 = vst [vmem:[%s590_s3 + $0x30] sm:$0xff] %v414_v2  ;;  %367 = vst [vmem:[%s590_s3 + $0x38] sm:$0xff] %v415_v3  ;;  %v140_v4 = vpop.f32.mrb[8].mxu0  ;;  %v213_v5 = vpop.f32.mrb[8].mxu1 }
  0xea   :  { %v141_v6 = vadd.f32 %v140_v4, %v499_v24  ;;  %v214_v7 = vadd.f32 %v213_v5, %v501_v25  ;;  %v142_v8 = vpop.f32.mrb[9].mxu0  ;;  %v215_v9 = vpop.f32.mrb[9].mxu1 }
  0xeb   :  { %v143_v10 = vadd.f32 %v142_v8, %v503_v26  ;;  %v216_v11 = vadd.f32 %v215_v9, %v505_v27  ;;  %v144_v12 = vpop.f32.mrb[10].mxu0  ;;  %v217_v13 = vpop.f32.mrb[10].mxu1 }
  0xec   :  { %v145_v14 = vadd.f32 %v144_v12, %v499_v24  ;;  %v218_v15 = vadd.f32 %v217_v13, %v501_v25  ;;  %v146_v16 = vpop.f32.mrb[11].mxu0  ;;  %v219_v17 = vpop.f32.mrb[11].mxu1 }
  0xed   :  { %v416_v18 = vpack.c.bf16 %v143_v10, %v141_v6  ;;  %v417_v19 = vpack.c.bf16 %v216_v11, %v214_v7  ;;  %v147_v20 = vadd.f32 %v146_v16, %v503_v26  ;;  %v220_v21 = vadd.f32 %v219_v17, %v505_v27 }
  0xef   :  { %368 = vst [vmem:[%s590_s3 + $0x40] sm:$0xff] %v416_v18  ;;  %369 = vst [vmem:[%s590_s3 + $0x48] sm:$0xff] %v417_v19  ;;  %v418_v22 = vpack.c.bf16 %v147_v20, %v145_v14  ;;  %v419_v23 = vpack.c.bf16 %v220_v21, %v218_v15 }
  0xf1   :  { %370 = vst [vmem:[%s590_s3 + $0x50] sm:$0xff] %v418_v22  ;;  %371 = vst [vmem:[%s590_s3 + $0x58] sm:$0xff] %v419_v23  ;;  %v150_v28 = vpop.f32.mrb[12].mxu0  ;;  %v223_v29 = vpop.f32.mrb[12].mxu1 }
  0xf2   :  { %v151_v30 = vadd.f32 %v150_v28, %v499_v24  ;;  %v224_v31 = vadd.f32 %v223_v29, %v501_v25  ;;  %v152_v32 = vpop.f32.mrb[13].mxu0  ;;  %v225_v33 = vpop.f32.mrb[13].mxu1 }
  0xf3   :  { %v153_v34 = vadd.f32 %v152_v32, %v503_v26  ;;  %v226_v35 = vadd.f32 %v225_v33, %v505_v27  ;;  %v154_v36 = vpop.f32.mrb[14].mxu0  ;;  %v227_v37 = vpop.f32.mrb[14].mxu1 }
  0xf4   :  { %v155_v38 = vadd.f32 %v154_v36, %v499_v24  ;;  %v228_v39 = vadd.f32 %v227_v37, %v501_v25  ;;  %v156_v40 = vpop.f32.mrb[15].mxu0  ;;  %v229_v41 = vpop.f32.mrb[15].mxu1 }
  0xf5   :  { %v420_v42 = vpack.c.bf16 %v153_v34, %v151_v30  ;;  %v421_v43 = vpack.c.bf16 %v226_v35, %v224_v31  ;;  %v157_v44 = vadd.f32 %v156_v40, %v503_v26  ;;  %v230_v45 = vadd.f32 %v229_v41, %v505_v27 }
  0xf7   :  { %372 = vst [vmem:[%s590_s3 + $0x60] sm:$0xff] %v420_v42  ;;  %373 = vst [vmem:[%s590_s3 + $0x68] sm:$0xff] %v421_v43  ;;  %v422_v46 = vpack.c.bf16 %v157_v44, %v155_v38  ;;  %v423_v24 = vpack.c.bf16 %v230_v45, %v228_v39 }
  0xf9   :  { %374 = vst [vmem:[%s590_s3 + $0x70] sm:$0xff] %v422_v46  ;;  %375 = vst [vmem:[%s590_s3 + $0x78] sm:$0xff] %v423_v24 }

// kernel: simple_lstm_forward.3
= control target key start
LH: loop header
LB: loop body
LE: loop exit
PB: predicated region body
PF: predicated region fallthrough
CT: control target
= control target key end

     0   :  { %v3163_v1 = vmov 0   ;;  %v3164_v20 = vmov 0.0|0.0   ;;  %s3944_s1 = inlined_call_operand.vmem [shape: bf16[128,512], index: 1, kind: input, shape index: {}]   ;;  %s3945_s0 = inlined_call_operand.vmem [shape: bf16[8,8,512], index: 0, kind: input, shape index: {}]   ;;  %s3946_s2 = inlined_call_operand.vmem [shape: bf16[128,128], index: 2, kind: input, shape index: {}]   ;;  %s3947_s3 = inlined_call_operand.vmem [shape: f32[1,128], index: 3, kind: input, shape index: {}]   ;;  %s3948_s4 = inlined_call_operand.vmem [shape: f32[8,8,128], index: 4, kind: output, shape index: {}]  }
   0x1   :  { %v3193_v0 = vld [vmem:[%s3944_s1 + $0x4] ss:$16 sps:$4 sm:$0xff]   ;;  %257 = vmatprep.mubr.bf16.mxu1 %v3163_v1  ;;  %566 = vmatprep.mubr.bf16.mxu0 %v3163_v1  ;;  %v3200_v2 = vld [vmem:[%s3944_s1] ss:$16 sps:$4 sm:$0xff]   ;;  %v3301_v17 = vld [vmem:[%s3944_s1 + $0xc] ss:$16 sps:$4 sm:$0xff]  }
   0x2   :  { %225 = vmatprep.subr.bf16.mxu1 %v3193_v0  ;;  %v3206_v3 = vld [vmem:[%s3944_s1 + $0x24] ss:$16 sps:$4 sm:$0xff]   ;;  %534 = vmatprep.subr.bf16.mxu0 %v3193_v0  ;;  %v3213_v4 = vld [vmem:[%s3944_s1 + $0x20] ss:$16 sps:$4 sm:$0xff]   ;;  %v3310_v18 = vld [vmem:[%s3944_s1 + $0x8] ss:$16 sps:$4 sm:$0xff]  }
   0x3   :  { %226 = vmatpush1.bf16.msra.mxu1 %v3200_v2  ;;  %535 = vmatpush1.bf16.msra.mxu0 %v3200_v2  ;;  %v3220_v5 = vld [vmem:[%s3944_s1 + $0x44] ss:$16 sps:$4 sm:$0xff]   ;;  %v3227_v6 = vld [vmem:[%s3944_s1 + $0x40] ss:$16 sps:$4 sm:$0xff]   ;;  %v3318_v19 = vld [vmem:[%s3944_s1 + $0x2c] ss:$16 sps:$4 sm:$0xff]  }
   0x4   :  { %227 = vmatprep.subr.bf16.mxu1 %v3206_v3  ;;  %536 = vmatprep.subr.bf16.mxu0 %v3206_v3  ;;  %v3234_v7 = vld [vmem:[%s3944_s1 + $0x64] ss:$16 sps:$4 sm:$0xff]   ;;  %v3241_v8 = vld [vmem:[%s3944_s1 + $0x60] ss:$16 sps:$4 sm:$0xff]   ;;  %v3325_v21 = vld [vmem:[%s3944_s1 + $0x28] ss:$16 sps:$4 sm:$0xff]  }
   0x5   :  { %v3248_v9 = vld [vmem:[%s3944_s1 + $0x84] ss:$16 sps:$4 sm:$0xff]   ;;  %v3255_v10 = vld [vmem:[%s3944_s1 + $0x80] ss:$16 sps:$4 sm:$0xff]   ;;  %v3332_v22 = vld [vmem:[%s3944_s1 + $0x4c] ss:$16 sps:$4 sm:$0xff]  }
   0x6   :  { %v3262_v11 = vld [vmem:[%s3944_s1 + $0xa4] ss:$16 sps:$4 sm:$0xff]   ;;  %v3269_v12 = vld [vmem:[%s3944_s1 + $0xa0] ss:$16 sps:$4 sm:$0xff]   ;;  %v3338_v23 = vld [vmem:[%s3944_s1 + $0x48] ss:$16 sps:$4 sm:$0xff]  }
   0x7   :  { %228 = vmatpush1.bf16.msra.mxu1 %v3213_v4  ;;  %537 = vmatpush1.bf16.msra.mxu0 %v3213_v4  ;;  %v3276_v13 = vld [vmem:[%s3944_s1 + $0xc4] ss:$16 sps:$4 sm:$0xff]   ;;  %v3282_v14 = vld [vmem:[%s3944_s1 + $0xc0] ss:$16 sps:$4 sm:$0xff]   ;;  %v3344_v24 = vld [vmem:[%s3944_s1 + $0x6c] ss:$16 sps:$4 sm:$0xff]  }
   0x8   :  { %229 = vmatprep.subr.bf16.mxu1 %v3220_v5  ;;  %538 = vmatprep.subr.bf16.mxu0 %v3220_v5  ;;  %v3287_v15 = vld [vmem:[%s3944_s1 + $0xe4] ss:$16 sps:$4 sm:$0xff]   ;;  %v3296_v16 = vld [vmem:[%s3944_s1 + $0xe0] ss:$16 sps:$4 sm:$0xff]   ;;  %v3350_v25 = vld [vmem:[%s3944_s1 + $0x68] ss:$16 sps:$4 sm:$0xff]  }
   0x9   :  { %v3356_v26 = vld [vmem:[%s3944_s1 + $0x8c] ss:$16 sps:$4 sm:$0xff]   ;;  %v3362_v27 = vld [vmem:[%s3944_s1 + $0x88] ss:$16 sps:$4 sm:$0xff]   ;;  %v26_v38 = vld [vmem:[%s3945_s0] sm:$0xff] }
   0xa   :  { %v3368_v28 = vld [vmem:[%s3944_s1 + $0xac] ss:$16 sps:$4 sm:$0xff]   ;;  %v3374_v29 = vld [vmem:[%s3944_s1 + $0xa8] ss:$16 sps:$4 sm:$0xff]   ;;  %v29_v39 = vunpack.c.h.bf16 %v26_v38  ;;  %v28_v40 = vunpack.c.l.bf16 %v26_v38 }
   0xb   :  { %230 = vmatpush1.bf16.msra.mxu1 %v3227_v6  ;;  %539 = vmatpush1.bf16.msra.mxu0 %v3227_v6  ;;  %v3380_v30 = vld [vmem:[%s3944_s1 + $0xcc] ss:$16 sps:$4 sm:$0xff]   ;;  %v3386_v31 = vld [vmem:[%s3944_s1 + $0xc8] ss:$16 sps:$4 sm:$0xff]  }
   0xc   :  { %231 = vmatprep.subr.bf16.mxu1 %v3234_v7  ;;  %540 = vmatprep.subr.bf16.mxu0 %v3234_v7  ;;  %v3392_v32 = vld [vmem:[%s3944_s1 + $0xec] ss:$16 sps:$4 sm:$0xff]   ;;  %v3398_v33 = vld [vmem:[%s3944_s1 + $0xe8] ss:$16 sps:$4 sm:$0xff]  }
   0xd   :  { %v27_v45 = vld [vmem:[%s3945_s0 + $0x8] sm:$0xff] }
   0xe   :  { %v30_v46 = vunpack.c.l.bf16 %v27_v45  ;;  %v31_v47 = vunpack.c.h.bf16 %v27_v45 }
   0xf   :  { %232 = vmatpush1.bf16.msra.mxu1 %v3241_v8  ;;  %541 = vmatpush1.bf16.msra.mxu0 %v3241_v8 }
  0x10   :  { %233 = vmatprep.subr.bf16.mxu1 %v3248_v9  ;;  %542 = vmatprep.subr.bf16.mxu0 %v3248_v9 }
  0x13   :  { %234 = vmatpush1.bf16.msra.mxu1 %v3255_v10  ;;  %543 = vmatpush1.bf16.msra.mxu0 %v3255_v10 }
  0x14   :  { %235 = vmatprep.subr.bf16.mxu1 %v3262_v11  ;;  %544 = vmatprep.subr.bf16.mxu0 %v3262_v11 }
  0x17   :  { %236 = vmatpush1.bf16.msra.mxu1 %v3269_v12  ;;  %545 = vmatpush1.bf16.msra.mxu0 %v3269_v12 }
  0x18   :  { %237 = vmatprep.subr.bf16.mxu1 %v3276_v13  ;;  %546 = vmatprep.subr.bf16.mxu0 %v3276_v13 }
  0x1b   :  { %238 = vmatpush1.bf16.msra.mxu1 %v3282_v14  ;;  %547 = vmatpush1.bf16.msra.mxu0 %v3282_v14 }
  0x1c   :  { %239 = vmatprep.subr.bf16.mxu1 %v3287_v15  ;;  %548 = vmatprep.subr.bf16.mxu0 %v3287_v15 }
  0x1f   :  { %240 = vmatpush1.bf16.msra.mxu1 %v3296_v16  ;;  %549 = vmatpush1.bf16.msra.mxu0 %v3296_v16 }
  0x20   :  { %266 = vmatprep.subr.bf16.mxu1 %v3301_v17  ;;  %844 = vmatprep.subr.bf16.mxu0 %v3193_v0 }
  0x22   :  { %258 = vmatmul.mubr.bf16.vlgmr.msra.gmra.mrb[0].mxu1 %v3164_v20 }
  0x23   :  { %267 = vmatpush1.bf16.msra.mxu1 %v3310_v18  ;;  %298 = vmatprep.mubr.bf16.mxu1 %v3163_v1 }
  0x24   :  { %268 = vmatprep.subr.bf16.mxu1 %v3318_v19 }
  0x27   :  { %269 = vmatpush1.bf16.msra.mxu1 %v3325_v21 }
  0x28   :  { %270 = vmatprep.subr.bf16.mxu1 %v3332_v22 }
  0x2b   :  { %271 = vmatpush1.bf16.msra.mxu1 %v3338_v23 }
  0x2c   :  { %272 = vmatprep.subr.bf16.mxu1 %v3344_v24 }
  0x2f   :  { %273 = vmatpush1.bf16.msra.mxu1 %v3350_v25 }
  0x30   :  { %274 = vmatprep.subr.bf16.mxu1 %v3356_v26 }
  0x33   :  { %275 = vmatpush1.bf16.msra.mxu1 %v3362_v27 }
  0x34   :  { %276 = vmatprep.subr.bf16.mxu1 %v3368_v28 }
  0x37   :  { %277 = vmatpush1.bf16.msra.mxu1 %v3374_v29 }
  0x38   :  { %278 = vmatprep.subr.bf16.mxu1 %v3380_v30 }
  0x3b   :  { %279 = vmatpush1.bf16.msra.mxu1 %v3386_v31 }
  0x3c   :  { %280 = vmatprep.subr.bf16.mxu1 %v3392_v32 }
  0x3f   :  { %281 = vmatpush1.bf16.msra.mxu1 %v3398_v33 }
  0x40   :  { %575 = vmatprep.subr.bf16.mxu1 %v3301_v17 }
  0x42   :  { %299 = vmatmul.mubr.bf16.vlgmr.msra.gmra.mrb[4].mxu1 %v3164_v20 }
  0x43   :  { %576 = vmatpush1.bf16.msra.mxu1 %v3310_v18  ;;  %607 = vmatprep.mubr.bf16.mxu1 %v3163_v1 }
  0x44   :  { %577 = vmatprep.subr.bf16.mxu1 %v3318_v19 }
  0x47   :  { %578 = vmatpush1.bf16.msra.mxu1 %v3325_v21 }
  0x48   :  { %579 = vmatprep.subr.bf16.mxu1 %v3332_v22 }
  0x4b   :  { %580 = vmatpush1.bf16.msra.mxu1 %v3338_v23 }
  0x4c   :  { %581 = vmatprep.subr.bf16.mxu1 %v3344_v24 }
  0x4f   :  { %582 = vmatpush1.bf16.msra.mxu1 %v3350_v25 }
  0x50   :  { %583 = vmatprep.subr.bf16.mxu1 %v3356_v26 }
  0x53   :  { %584 = vmatpush1.bf16.msra.mxu1 %v3362_v27 }
  0x54   :  { %585 = vmatprep.subr.bf16.mxu1 %v3368_v28 }
  0x57   :  { %586 = vmatpush1.bf16.msra.mxu1 %v3374_v29 }
  0x58   :  { %587 = vmatprep.subr.bf16.mxu1 %v3380_v30 }
  0x5b   :  { %588 = vmatpush1.bf16.msra.mxu1 %v3386_v31 }
  0x5c   :  { %589 = vmatprep.subr.bf16.mxu1 %v3392_v32 }
  0x5f   :  { %590 = vmatpush1.bf16.msra.mxu1 %v3398_v33 }
  0x60   :  { %885 = vmatprep.subr.bf16.mxu1 %v3301_v17 }
  0xf5   :  { %v259_v34 = vpop.f32.mrb[0].mxu1 }
  0xf6   :  { %v261_v35 = vpop.f32.mrb[1].mxu1  ;;  %v307_v42 = vadd.f32 %v259_v34, %v28_v40  ;;  %v2694_v40 = vld [vmem:[%s3945_s0 + $0x10] sm:$0xff] }
  0xf7   :  { %v263_v36 = vpop.f32.mrb[2].mxu1  ;;  %v308_v41 = vadd.f32 %v261_v35, %v29_v39 }
  0xf8   :  { %v264_v37 = vpop.f32.mrb[3].mxu1  ;;  %v311_v44 = vmul.f32 0.5, %v307_v42  ;;  %v2695_v42 = vld [vmem:[%s3945_s0 + $0x18] sm:$0xff] }
  0xf9   :  { %v315_v43 = vmul.f32 0.5, %v308_v41  ;;  %v337_v41 = vunpack.c.l.bf16 %v2694_v40 }
  0xfb   :  { %3083 = vtanh.f32 %v315_v43  ;;  %v338_v43 = vunpack.c.h.bf16 %v2694_v40 }
  0xfc   :  { %3085 = vtanh.f32 %v311_v44 }
 0x105   :  { %v3084_v53 = vpop.eup %3083 }
 0x106   :  { %v3086_v55 = vpop.eup %3085  ;;  %v317_v56 = vmul.f32 0.5, %v3084_v53 }
 0x107   :  { %v313_v58 = vmul.f32 0.5, %v3086_v55 }
 0x108   :  { %v318_v59 = vadd.f32 0.5, %v317_v56 }
 0x109   :  { %v314_v60 = vadd.f32 0.5, %v313_v58 }
 0x10a   :  { %v324_v62 = vmul.f32 0.0, %v318_v59 }
 0x115   :  { %v300_v48 = vpop.f32.mrb[4].mxu1 }
 0x116   :  { %v309_v49 = vadd.f32 %v300_v48, %v30_v46  ;;  %v302_v50 = vpop.f32.mrb[5].mxu1 }
 0x117   :  { %v310_v51 = vadd.f32 %v302_v50, %v31_v47  ;;  %v304_v52 = vpop.f32.mrb[6].mxu1  ;;  %v339_v47 = vunpack.c.l.bf16 %v2695_v42 }
 0x118   :  { %3087 = vtanh.f32 %v309_v49  ;;  %v305_v54 = vpop.f32.mrb[7].mxu1 }
 0x119   :  { %v320_v57 = vmul.f32 0.5, %v310_v51 }
 0x11b   :  { %3089 = vtanh.f32 %v320_v57  ;;  %v340_v57 = vunpack.c.h.bf16 %v2695_v42 }
 0x122   :  { %v3088_v61 = vpop.eup %3087 }
 0x123   :  { %v325_v63 = vmul.f32 %v3088_v61, %v314_v60 }
 0x125   :  { %v3426_v20 = vadd.f32 %v325_v63, %v324_v62  ;;  %v3090_v34 = vpop.eup %3089 }
 0x126   :  { %v322_v35 = vmul.f32 0.5, %v3090_v34 }
 0x127   :  { %3091 = vtanh.f32 %v3426_v20 }
 0x128   :  { %v323_v36 = vadd.f32 0.5, %v322_v35 }
 0x131   :  { %v3092_v37 = vpop.eup %3091 }
 0x132   :  { %v3429_v38 = vmul.f32 %v3092_v37, %v323_v36 }
 0x134   :  { %v341_v39 = vpack.c.bf16 %v3429_v38, %v3429_v38 }
 0x136   :  { %567 = vmatmul.mubr.bf16.vlgmr.msra.gmra.mrb[0].mxu0 %v341_v39  ;;  %608 = vmatmul.mubr.bf16.vlgmr.msra.gmra.mrb[8].mxu1 %v341_v39 }
 0x137   :  { %845 = vmatpush1.bf16.msra.mxu0 %v3200_v2  ;;  %886 = vmatpush1.bf16.msra.mxu1 %v3310_v18 }
 0x138   :  { %846 = vmatprep.subr.bf16.mxu0 %v3206_v3  ;;  %887 = vmatprep.subr.bf16.mxu1 %v3318_v19 }
 0x139   :  { %876 = vmatprep.mubr.bf16.mxu0 %v3163_v1  ;;  %917 = vmatprep.mubr.bf16.mxu1 %v3163_v1 }
 0x13b   :  { %847 = vmatpush1.bf16.msra.mxu0 %v3213_v4  ;;  %888 = vmatpush1.bf16.msra.mxu1 %v3325_v21 }
 0x13c   :  { %848 = vmatprep.subr.bf16.mxu0 %v3220_v5  ;;  %889 = vmatprep.subr.bf16.mxu1 %v3332_v22 }
 0x13f   :  { %849 = vmatpush1.bf16.msra.mxu0 %v3227_v6  ;;  %890 = vmatpush1.bf16.msra.mxu1 %v3338_v23 }
 0x140   :  { %850 = vmatprep.subr.bf16.mxu0 %v3234_v7  ;;  %891 = vmatprep.subr.bf16.mxu1 %v3344_v24 }
 0x143   :  { %851 = vmatpush1.bf16.msra.mxu0 %v3241_v8  ;;  %892 = vmatpush1.bf16.msra.mxu1 %v3350_v25 }
 0x144   :  { %852 = vmatprep.subr.bf16.mxu0 %v3248_v9  ;;  %893 = vmatprep.subr.bf16.mxu1 %v3356_v26 }
 0x147   :  { %853 = vmatpush1.bf16.msra.mxu0 %v3255_v10  ;;  %894 = vmatpush1.bf16.msra.mxu1 %v3362_v27 }
 0x148   :  { %854 = vmatprep.subr.bf16.mxu0 %v3262_v11  ;;  %895 = vmatprep.subr.bf16.mxu1 %v3368_v28 }
 0x14b   :  { %855 = vmatpush1.bf16.msra.mxu0 %v3269_v12  ;;  %896 = vmatpush1.bf16.msra.mxu1 %v3374_v29 }
 0x14c   :  { %856 = vmatprep.subr.bf16.mxu0 %v3276_v13  ;;  %897 = vmatprep.subr.bf16.mxu1 %v3380_v30 }
 0x14f   :  { %857 = vmatpush1.bf16.msra.mxu0 %v3282_v14  ;;  %898 = vmatpush1.bf16.msra.mxu1 %v3386_v31 }
 0x150   :  { %858 = vmatprep.subr.bf16.mxu0 %v3287_v15  ;;  %899 = vmatprep.subr.bf16.mxu1 %v3392_v32 }
 0x153   :  { %859 = vmatpush1.bf16.msra.mxu0 %v3296_v16  ;;  %900 = vmatpush1.bf16.msra.mxu1 %v3398_v33 }
 0x154   :  { %1154 = vmatprep.subr.bf16.mxu0 %v3193_v0  ;;  %1195 = vmatprep.subr.bf16.mxu1 %v3301_v17 }
 0x209   :  { %v568_v44 = vpop.f32.mrb[0].mxu0  ;;  %v609_v45 = vpop.f32.mrb[8].mxu1 }
 0x20a   :  { %v616_v46 = vadd.f32 %v568_v44, %v337_v41  ;;  %v570_v48 = vpop.f32.mrb[1].mxu0  ;;  %v611_v49 = vpop.f32.mrb[9].mxu1  ;;  %v618_v56 = vadd.f32 %v609_v45, %v339_v47 }
 0x20b   :  { %v617_v50 = vadd.f32 %v570_v48, %v338_v43  ;;  %v572_v0 = vpop.f32.mrb[2].mxu0  ;;  %v613_v51 = vpop.f32.mrb[10].mxu1  ;;  %v619_v58 = vadd.f32 %v611_v49, %v340_v57  ;;  %v3570_v57 = vld [vmem:[%s3944_s1 + $0x40] ss:$16 sps:$4 sm:$0xff]  }
 0x20c   :  { %v620_v52 = vmul.f32 0.5, %v616_v46  ;;  %v573_v53 = vpop.f32.mrb[3].mxu0  ;;  %v614_v54 = vpop.f32.mrb[11].mxu1 }
 0x20d   :  { %v624_v55 = vmul.f32 0.5, %v617_v50  ;;  %v629_v59 = vmul.f32 0.5, %v619_v58  ;;  %v3536_v54 = vld [vmem:[%s3944_s1 + $0x4] ss:$16 sps:$4 sm:$0xff]   ;;  %v3575_v58 = vld [vmem:[%s3944_s1 + $0x48] ss:$16 sps:$4 sm:$0xff]  }
 0x20e   :  { %3093 = vtanh.f32 %v620_v52 }
 0x20f   :  { %3095 = vtanh.f32 %v624_v55  ;;  %v3541_v55 = vld [vmem:[%s3944_s1] ss:$16 sps:$4 sm:$0xff]  }
 0x210   :  { %3097 = vtanh.f32 %v618_v56  ;;  %v3565_v56 = vld [vmem:[%s3944_s1 + $0x4c] ss:$16 sps:$4 sm:$0xff]  }
 0x211   :  { %3099 = vtanh.f32 %v629_v59  ;;  %v3584_v59 = vld [vmem:[%s3944_s1 + $0x64] ss:$16 sps:$4 sm:$0xff]  }
 0x218   :  { %v3094_v60 = vpop.eup %3093 }
 0x219   :  { %v3096_v61 = vpop.eup %3095  ;;  %v622_v62 = vmul.f32 0.5, %v3094_v60  ;;  %v3589_v60 = vld [vmem:[%s3944_s1 + $0x6c] ss:$16 sps:$4 sm:$0xff]  }
 0x21a   :  { %v626_v63 = vmul.f32 0.5, %v3096_v61  ;;  %v3098_v35 = vpop.eup %3097  ;;  %v3594_v61 = vld [vmem:[%s3944_s1 + $0x60] ss:$16 sps:$4 sm:$0xff]  }
 0x21b   :  { %v623_v34 = vadd.f32 0.5, %v622_v62  ;;  %v3100_v41 = vpop.eup %3099  ;;  %v3599_v62 = vld [vmem:[%s3944_s1 + $0x68] ss:$16 sps:$4 sm:$0xff]  }
 0x21c   :  { %v627_v36 = vadd.f32 0.5, %v626_v63  ;;  %v631_v42 = vmul.f32 0.5, %v3100_v41  ;;  %v3608_v63 = vld [vmem:[%s3944_s1 + $0x84] ss:$16 sps:$4 sm:$0xff]   ;;  %v3647_v41 = vld [vmem:[%s3944_s1 + $0xa8] ss:$16 sps:$4 sm:$0xff]  }
 0x21d   :  { %v634_v37 = vmul.f32 %v3098_v35, %v623_v34  ;;  %v3613_v34 = vld [vmem:[%s3944_s1 + $0x8c] ss:$16 sps:$4 sm:$0xff]   ;;  %v3618_v35 = vld [vmem:[%s3944_s1 + $0x80] ss:$16 sps:$4 sm:$0xff]  }
 0x21e   :  { %v633_v39 = vmul.f32 %v627_v36, %v3426_v20  ;;  %v632_v43 = vadd.f32 0.5, %v631_v42  ;;  %v3623_v36 = vld [vmem:[%s3944_s1 + $0x88] ss:$16 sps:$4 sm:$0xff]   ;;  %v3656_v42 = vld [vmem:[%s3944_s1 + $0xc4] ss:$16 sps:$4 sm:$0xff]  }
 0x220   :  { %v3474_v40 = vadd.f32 %v634_v37, %v633_v39  ;;  %v3632_v37 = vld [vmem:[%s3944_s1 + $0xa4] ss:$16 sps:$4 sm:$0xff]   ;;  %v3637_v39 = vld [vmem:[%s3944_s1 + $0xac] ss:$16 sps:$4 sm:$0xff]  }
 0x222   :  { %3101 = vtanh.f32 %v3474_v40 }
 0x22c   :  { %v3102_v44 = vpop.eup %3101 }
 0x22d   :  { %v3477_v45 = vmul.f32 %v3102_v44, %v632_v43  ;;  %v3661_v43 = vld [vmem:[%s3944_s1 + $0xcc] ss:$16 sps:$4 sm:$0xff]   ;;  %v3666_v44 = vld [vmem:[%s3944_s1 + $0xc0] ss:$16 sps:$4 sm:$0xff]  }
 0x22f   :  { %v651_v46 = vpack.c.bf16 %v3477_v45, %v3477_v45 }
 0x231   :  { %877 = vmatmul.mubr.bf16.vlgmr.msra.gmra.mrb[4].mxu0 %v651_v46  ;;  %918 = vmatmul.mubr.bf16.vlgmr.msra.gmra.mrb[12].mxu1 %v651_v46  ;;  %v3671_v46 = vld [vmem:[%s3944_s1 + $0xc8] ss:$16 sps:$4 sm:$0xff]  }
 0x232   :  { %1155 = vmatpush1.bf16.msra.mxu0 %v3200_v2  ;;  %1196 = vmatpush1.bf16.msra.mxu1 %v3310_v18  ;;  %v2728_v2 = vld [vmem:[%s3945_s0 + $0x20] sm:$0xff] }
 0x233   :  { %1156 = vmatprep.subr.bf16.mxu0 %v3206_v3  ;;  %1197 = vmatprep.subr.bf16.mxu1 %v3318_v19  ;;  %v647_v3 = vunpack.c.l.bf16 %v2728_v2 }
 0x234   :  { %1186 = vmatprep.mubr.bf16.mxu0 %v3163_v1  ;;  %1227 = vmatprep.mubr.bf16.mxu1 %v3163_v1 }
 0x236   :  { %1157 = vmatpush1.bf16.msra.mxu0 %v3213_v4  ;;  %1198 = vmatpush1.bf16.msra.mxu1 %v3325_v21  ;;  %v2729_v4 = vld [vmem:[%s3945_s0 + $0x28] sm:$0xff] }
 0x237   :  { %1158 = vmatprep.subr.bf16.mxu0 %v3220_v5  ;;  %1199 = vmatprep.subr.bf16.mxu1 %v3332_v22  ;;  %v648_v5 = vunpack.c.h.bf16 %v2728_v2  ;;  %v3680_v2 = vld [vmem:[%s3944_s1 + $0xe4] ss:$16 sps:$4 sm:$0xff]  }
 0x23a   :  { %1159 = vmatpush1.bf16.msra.mxu0 %v3227_v6  ;;  %1200 = vmatpush1.bf16.msra.mxu1 %v3338_v23 }
 0x23b   :  { %1160 = vmatprep.subr.bf16.mxu0 %v3234_v7  ;;  %1201 = vmatprep.subr.bf16.mxu1 %v3344_v24  ;;  %v650_v24 = vunpack.c.h.bf16 %v2729_v4 }
 0x23e   :  { %1161 = vmatpush1.bf16.msra.mxu0 %v3241_v8  ;;  %1202 = vmatpush1.bf16.msra.mxu1 %v3350_v25 }
 0x23f   :  { %1162 = vmatprep.subr.bf16.mxu0 %v3248_v9  ;;  %1203 = vmatprep.subr.bf16.mxu1 %v3356_v26  ;;  %v649_v9 = vunpack.c.l.bf16 %v2729_v4  ;;  %v3690_v4 = vld [vmem:[%s3944_s1 + $0xe0] ss:$16 sps:$4 sm:$0xff]  }
 0x242   :  { %1163 = vmatpush1.bf16.msra.mxu0 %v3255_v10  ;;  %1204 = vmatpush1.bf16.msra.mxu1 %v3362_v27 }
 0x243   :  { %1164 = vmatprep.subr.bf16.mxu0 %v3262_v11  ;;  %1205 = vmatprep.subr.bf16.mxu1 %v3368_v28 }
 0x246   :  { %1165 = vmatpush1.bf16.msra.mxu0 %v3269_v12  ;;  %1206 = vmatpush1.bf16.msra.mxu1 %v3374_v29 }
 0x247   :  { %1166 = vmatprep.subr.bf16.mxu0 %v3276_v13  ;;  %1207 = vmatprep.subr.bf16.mxu1 %v3380_v30 }
 0x24a   :  { %1167 = vmatpush1.bf16.msra.mxu0 %v3282_v14  ;;  %1208 = vmatpush1.bf16.msra.mxu1 %v3386_v31 }
 0x24b   :  { %1168 = vmatprep.subr.bf16.mxu0 %v3287_v15  ;;  %1209 = vmatprep.subr.bf16.mxu1 %v3392_v32 }
 0x24e   :  { %1169 = vmatpush1.bf16.msra.mxu0 %v3296_v16  ;;  %1210 = vmatpush1.bf16.msra.mxu1 %v3398_v33 }
 0x24f   :  { %1505 = vmatprep.subr.bf16.mxu1 %v3301_v17  ;;  %1464 = vmatprep.subr.bf16.mxu0 %v3536_v54 }
 0x304   :  { %v878_v6 = vpop.f32.mrb[4].mxu0  ;;  %v919_v7 = vpop.f32.mrb[12].mxu1 }
 0x305   :  { %v926_v8 = vadd.f32 %v878_v6, %v647_v3  ;;  %v880_v10 = vpop.f32.mrb[5].mxu0  ;;  %v921_v11 = vpop.f32.mrb[13].mxu1  ;;  %v928_v23 = vadd.f32 %v919_v7, %v649_v9  ;;  %v3685_v3 = vld [vmem:[%s3944_s1 + $0xec] ss:$16 sps:$4 sm:$0xff]   ;;  %v2762_v6 = vld [vmem:[%s3945_s0 + $0x30] sm:$0xff] }
 0x306   :  { %v927_v12 = vadd.f32 %v880_v10, %v648_v5  ;;  %v882_v13 = vpop.f32.mrb[6].mxu0  ;;  %v923_v14 = vpop.f32.mrb[14].mxu1  ;;  %v929_v25 = vadd.f32 %v921_v11, %v650_v24  ;;  %v3695_v5 = vld [vmem:[%s3944_s1 + $0xe8] ss:$16 sps:$4 sm:$0xff]   ;;  %v957_v7 = vunpack.c.l.bf16 %v2762_v6  ;;  %v958_v9 = vunpack.c.h.bf16 %v2762_v6 }
 0x307   :  { %v930_v15 = vmul.f32 0.5, %v926_v8  ;;  %v883_v16 = vpop.f32.mrb[7].mxu0  ;;  %v924_v17 = vpop.f32.mrb[15].mxu1  ;;  %v2763_v8 = vld [vmem:[%s3945_s0 + $0x38] sm:$0xff] }
 0x308   :  { %v934_v22 = vmul.f32 0.5, %v927_v12  ;;  %v939_v26 = vmul.f32 0.5, %v929_v25  ;;  %v959_v13 = vunpack.c.l.bf16 %v2763_v8 }
 0x309   :  { %3103 = vtanh.f32 %v930_v15 }
 0x30a   :  { %3105 = vtanh.f32 %v934_v22 }
 0x30b   :  { %3107 = vtanh.f32 %v928_v23 }
 0x30c   :  { %3109 = vtanh.f32 %v939_v26 }
 0x313   :  { %v3104_v27 = vpop.eup %3103 }
 0x314   :  { %v3106_v28 = vpop.eup %3105  ;;  %v932_v29 = vmul.f32 0.5, %v3104_v27 }
 0x315   :  { %v936_v30 = vmul.f32 0.5, %v3106_v28  ;;  %v3108_v32 = vpop.eup %3107  ;;  %v960_v28 = vunpack.c.h.bf16 %v2763_v8 }
 0x316   :  { %v933_v31 = vadd.f32 0.5, %v932_v29  ;;  %v3110_v49 = vpop.eup %3109 }
 0x317   :  { %v937_v33 = vadd.f32 0.5, %v936_v30  ;;  %v941_v50 = vmul.f32 0.5, %v3110_v49 }
 0x318   :  { %v944_v20 = vmul.f32 %v3108_v32, %v933_v31 }
 0x319   :  { %v943_v47 = vmul.f32 %v937_v33, %v3474_v40  ;;  %v942_v0 = vadd.f32 0.5, %v941_v50  ;;  %v3642_v40 = vld [vmem:[%s3944_s1 + $0xa0] ss:$16 sps:$4 sm:$0xff]  }
 0x31b   :  { %v3521_v48 = vadd.f32 %v944_v20, %v943_v47 }
 0x31d   :  { %3111 = vtanh.f32 %v3521_v48 }
 0x327   :  { %v3112_v51 = vpop.eup %3111 }
 0x328   :  { %v3524_v52 = vmul.f32 %v3112_v51, %v942_v0 }
 0x32a   :  { %v961_v53 = vpack.c.bf16 %v3524_v52, %v3524_v52 }
 0x32c   :  { %1187 = vmatmul.mubr.bf16.vlgmr.msra.gmra.mrb[8].mxu0 %v961_v53  ;;  %1228 = vmatmul.mubr.bf16.vlgmr.msra.gmra.mrb[16].mxu1 %v961_v53 }
 0x32d   :  { %1506 = vmatpush1.bf16.msra.mxu1 %v3310_v18  ;;  %1496 = vmatprep.mubr.bf16.mxu0 %v3163_v1  ;;  %v3548_v18 = vld [vmem:[%s3944_s1 + $0x24] ss:$16 sps:$4 sm:$0xff]  }
 0x32e   :  { %1507 = vmatprep.subr.bf16.mxu1 %v3318_v19  ;;  %1537 = vmatprep.mubr.bf16.mxu1 %v3163_v1  ;;  %v3553_v19 = vld [vmem:[%s3944_s1 + $0x20] ss:$16 sps:$4 sm:$0xff]  }
 0x32f   :  { %1465 = vmatpush1.bf16.msra.mxu0 %v3541_v55 }
 0x330   :  { %1466 = vmatprep.subr.bf16.mxu0 %v3548_v18 }
 0x331   :  { %1508 = vmatpush1.bf16.msra.mxu1 %v3325_v21  ;;  %v3560_v21 = vld [vmem:[%s3944_s1 + $0x44] ss:$16 sps:$4 sm:$0xff]  }
 0x332   :  { %1509 = vmatprep.subr.bf16.mxu1 %v3565_v56 }
 0x333   :  { %1467 = vmatpush1.bf16.msra.mxu0 %v3553_v19 }
 0x334   :  { %1468 = vmatprep.subr.bf16.mxu0 %v3560_v21 }
 0x335   :  { %1510 = vmatpush1.bf16.msra.mxu1 %v3575_v58 }
 0x336   :  { %1511 = vmatprep.subr.bf16.mxu1 %v3589_v60 }
 0x337   :  { %1469 = vmatpush1.bf16.msra.mxu0 %v3570_v57 }
 0x338   :  { %1470 = vmatprep.subr.bf16.mxu0 %v3584_v59 }
 0x339   :  { %1512 = vmatpush1.bf16.msra.mxu1 %v3599_v62 }
 0x33a   :  { %1513 = vmatprep.subr.bf16.mxu1 %v3613_v34 }
 0x33b   :  { %1471 = vmatpush1.bf16.msra.mxu0 %v3594_v61 }
 0x33c   :  { %1472 = vmatprep.subr.bf16.mxu0 %v3608_v63 }
 0x33d   :  { %1514 = vmatpush1.bf16.msra.mxu1 %v3623_v36 }
 0x33e   :  { %1515 = vmatprep.subr.bf16.mxu1 %v3637_v39 }
 0x33f   :  { %1473 = vmatpush1.bf16.msra.mxu0 %v3618_v35 }
 0x340   :  { %1474 = vmatprep.subr.bf16.mxu0 %v3632_v37 }
 0x341   :  { %1516 = vmatpush1.bf16.msra.mxu1 %v3647_v41 }
 0x342   :  { %1517 = vmatprep.subr.bf16.mxu1 %v3661_v43 }
 0x343   :  { %1475 = vmatpush1.bf16.msra.mxu0 %v3642_v40 }
 0x344   :  { %1476 = vmatprep.subr.bf16.mxu0 %v3656_v42 }
 0x345   :  { %1518 = vmatpush1.bf16.msra.mxu1 %v3671_v46 }
 0x346   :  { %1519 = vmatprep.subr.bf16.mxu1 %v3685_v3 }
 0x347   :  { %1477 = vmatpush1.bf16.msra.mxu0 %v3666_v44 }
 0x348   :  { %1478 = vmatprep.subr.bf16.mxu0 %v3680_v2 }
 0x349   :  { %1520 = vmatpush1.bf16.msra.mxu1 %v3695_v5 }
 0x34b   :  { %1479 = vmatpush1.bf16.msra.mxu0 %v3690_v4 }
 0x34c   :  { %1774 = vmatprep.subr.bf16.mxu0 %v3536_v54 }
 0x3ff   :  { %v1188_v10 = vpop.f32.mrb[8].mxu0  ;;  %v1229_v11 = vpop.f32.mrb[16].mxu1 }
 0x400   :  { %v1236_v12 = vadd.f32 %v1188_v10, %v957_v7  ;;  %v1190_v14 = vpop.f32.mrb[9].mxu0  ;;  %v1231_v15 = vpop.f32.mrb[17].mxu1  ;;  %v1238_v27 = vadd.f32 %v1229_v11, %v959_v13  ;;  %v3749_v13 = vld [vmem:[%s3944_s1 + $0x2c] ss:$16 sps:$4 sm:$0xff]  }
 0x401   :  { %v1237_v16 = vadd.f32 %v1190_v14, %v958_v9  ;;  %v1192_v17 = vpop.f32.mrb[10].mxu0  ;;  %v1233_v22 = vpop.f32.mrb[18].mxu1  ;;  %v1239_v29 = vadd.f32 %v1231_v15, %v960_v28  ;;  %v3754_v14 = vld [vmem:[%s3944_s1 + $0x28] ss:$16 sps:$4 sm:$0xff]   ;;  %v2796_v15 = vld [vmem:[%s3945_s0 + $0x40] sm:$0xff] }
 0x402   :  { %v1240_v23 = vmul.f32 0.5, %v1236_v12  ;;  %v1193_v24 = vpop.f32.mrb[11].mxu0  ;;  %v1234_v25 = vpop.f32.mrb[19].mxu1  ;;  %v3742_v12 = vld [vmem:[%s3944_s1 + $0x8] ss:$16 sps:$4 sm:$0xff]   ;;  %v1268_v22 = vunpack.c.h.bf16 %v2796_v15 }
 0x403   :  { %v1244_v26 = vmul.f32 0.5, %v1237_v16  ;;  %v1249_v30 = vmul.f32 0.5, %v1239_v29  ;;  %v1267_v16 = vunpack.c.l.bf16 %v2796_v15  ;;  %v2797_v17 = vld [vmem:[%s3945_s0 + $0x48] sm:$0xff] }
 0x404   :  { %3113 = vtanh.f32 %v1240_v23 }
 0x405   :  { %3115 = vtanh.f32 %v1244_v26  ;;  %v1269_v26 = vunpack.c.l.bf16 %v2797_v17 }
 0x406   :  { %3117 = vtanh.f32 %v1238_v27 }
 0x407   :  { %3119 = vtanh.f32 %v1249_v30 }
 0x40e   :  { %v3114_v31 = vpop.eup %3113 }
 0x40f   :  { %v3116_v32 = vpop.eup %3115  ;;  %v1242_v33 = vmul.f32 0.5, %v3114_v31 }
 0x410   :  { %v1246_v20 = vmul.f32 0.5, %v3116_v32  ;;  %v3118_v49 = vpop.eup %3117 }
 0x411   :  { %v1243_v47 = vadd.f32 0.5, %v1242_v33  ;;  %v3120_v6 = vpop.eup %3119 }
 0x412   :  { %v1247_v50 = vadd.f32 0.5, %v1246_v20  ;;  %v1251_v7 = vmul.f32 0.5, %v3120_v6 }
 0x413   :  { %v1254_v0 = vmul.f32 %v3118_v49, %v1243_v47 }
 0x414   :  { %v1253_v51 = vmul.f32 %v1247_v50, %v3521_v48  ;;  %v1252_v8 = vadd.f32 0.5, %v1251_v7  ;;  %v3737_v48 = vld [vmem:[%s3944_s1 + $0xc] ss:$16 sps:$4 sm:$0xff]   ;;  %v1270_v50 = vunpack.c.h.bf16 %v2797_v17 }
 0x415   :  { %1815 = vmatprep.subr.bf16.mxu1 %v3737_v48 }
 0x416   :  { %v3709_v53 = vadd.f32 %v1254_v0, %v1253_v51 }
 0x418   :  { %3121 = vtanh.f32 %v3709_v53 }
 0x422   :  { %v3122_v9 = vpop.eup %3121 }
 0x423   :  { %v3712_v10 = vmul.f32 %v3122_v9, %v1252_v8 }
 0x425   :  { %v1271_v11 = vpack.c.bf16 %v3712_v10, %v3712_v10 }
 0x427   :  { %1497 = vmatmul.mubr.bf16.vlgmr.msra.gmra.mrb[12].mxu0 %v1271_v11  ;;  %1538 = vmatmul.mubr.bf16.vlgmr.msra.gmra.mrb[20].mxu1 %v1271_v11 }
 0x428   :  { %1775 = vmatpush1.bf16.msra.mxu0 %v3541_v55  ;;  %1806 = vmatprep.mubr.bf16.mxu0 %v3163_v1 }
 0x429   :  { %1776 = vmatprep.subr.bf16.mxu0 %v3548_v18  ;;  %1847 = vmatprep.mubr.bf16.mxu1 %v3163_v1 }
 0x42a   :  { %1816 = vmatpush1.bf16.msra.mxu1 %v3742_v12 }
 0x42b   :  { %1817 = vmatprep.subr.bf16.mxu1 %v3749_v13 }
 0x42c   :  { %1777 = vmatpush1.bf16.msra.mxu0 %v3553_v19 }
 0x42d   :  { %1778 = vmatprep.subr.bf16.mxu0 %v3560_v21 }
 0x42e   :  { %1818 = vmatpush1.bf16.msra.mxu1 %v3754_v14 }
 0x42f   :  { %1819 = vmatprep.subr.bf16.mxu1 %v3565_v56 }
 0x430   :  { %1779 = vmatpush1.bf16.msra.mxu0 %v3570_v57 }
 0x431   :  { %1780 = vmatprep.subr.bf16.mxu0 %v3584_v59 }
 0x432   :  { %1820 = vmatpush1.bf16.msra.mxu1 %v3575_v58 }
 0x433   :  { %1821 = vmatprep.subr.bf16.mxu1 %v3589_v60 }
 0x434   :  { %1781 = vmatpush1.bf16.msra.mxu0 %v3594_v61 }
 0x435   :  { %1782 = vmatprep.subr.bf16.mxu0 %v3608_v63 }
 0x436   :  { %1822 = vmatpush1.bf16.msra.mxu1 %v3599_v62 }
 0x437   :  { %1823 = vmatprep.subr.bf16.mxu1 %v3613_v34 }
 0x438   :  { %1783 = vmatpush1.bf16.msra.mxu0 %v3618_v35 }
 0x439   :  { %1784 = vmatprep.subr.bf16.mxu0 %v3632_v37 }
 0x43a   :  { %1824 = vmatpush1.bf16.msra.mxu1 %v3623_v36 }
 0x43b   :  { %1825 = vmatprep.subr.bf16.mxu1 %v3637_v39 }
 0x43c   :  { %1785 = vmatpush1.bf16.msra.mxu0 %v3642_v40 }
 0x43d   :  { %1786 = vmatprep.subr.bf16.mxu0 %v3656_v42 }
 0x43e   :  { %1826 = vmatpush1.bf16.msra.mxu1 %v3647_v41 }
 0x43f   :  { %1827 = vmatprep.subr.bf16.mxu1 %v3661_v43 }
 0x440   :  { %1787 = vmatpush1.bf16.msra.mxu0 %v3666_v44 }
 0x441   :  { %1788 = vmatprep.subr.bf16.mxu0 %v3680_v2 }
 0x442   :  { %1828 = vmatpush1.bf16.msra.mxu1 %v3671_v46 }
 0x443   :  { %1829 = vmatprep.subr.bf16.mxu1 %v3685_v3 }
 0x444   :  { %1789 = vmatpush1.bf16.msra.mxu0 %v3690_v4 }
 0x445   :  { %2084 = vmatprep.subr.bf16.mxu0 %v3536_v54 }
 0x446   :  { %1830 = vmatpush1.bf16.msra.mxu1 %v3695_v5 }
 0x447   :  { %2125 = vmatprep.subr.bf16.mxu1 %v3737_v48 }
 0x4fa   :  { %v1498_v23 = vpop.f32.mrb[12].mxu0  ;;  %v1539_v24 = vpop.f32.mrb[20].mxu1 }
 0x4fb   :  { %v1546_v25 = vadd.f32 %v1498_v23, %v1267_v16  ;;  %v1500_v27 = vpop.f32.mrb[13].mxu0  ;;  %v1541_v28 = vpop.f32.mrb[21].mxu1  ;;  %v1548_v49 = vadd.f32 %v1539_v24, %v1269_v26 }
 0x4fc   :  { %v1547_v29 = vadd.f32 %v1500_v27, %v1268_v22  ;;  %v1502_v30 = vpop.f32.mrb[14].mxu0  ;;  %v1543_v31 = vpop.f32.mrb[22].mxu1  ;;  %v1549_v0 = vadd.f32 %v1541_v28, %v1270_v50 }
 0x4fd   :  { %v1550_v32 = vmul.f32 0.5, %v1546_v25  ;;  %v1503_v33 = vpop.f32.mrb[15].mxu0  ;;  %v1544_v20 = vpop.f32.mrb[23].mxu1  ;;  %v2831_v31 = vld [vmem:[%s3945_s0 + $0x58] sm:$0xff] }
 0x4fe   :  { %v1554_v47 = vmul.f32 0.5, %v1547_v29  ;;  %v1559_v51 = vmul.f32 0.5, %v1549_v0 }
 0x4ff   :  { %3123 = vtanh.f32 %v1550_v32 }
 0x500   :  { %3125 = vtanh.f32 %v1554_v47 }
 0x501   :  { %3127 = vtanh.f32 %v1548_v49  ;;  %v1579_v49 = vunpack.c.l.bf16 %v2831_v31 }
 0x502   :  { %3129 = vtanh.f32 %v1559_v51 }
 0x509   :  { %v3124_v6 = vpop.eup %3123 }
 0x50a   :  { %v3126_v7 = vpop.eup %3125  ;;  %v1552_v8 = vmul.f32 0.5, %v3124_v6 }
 0x50b   :  { %v1556_v9 = vmul.f32 0.5, %v3126_v7  ;;  %v3128_v15 = vpop.eup %3127 }
 0x50c   :  { %v1553_v11 = vadd.f32 0.5, %v1552_v8  ;;  %v3130_v17 = vpop.eup %3129 }
 0x50d   :  { %v1557_v16 = vadd.f32 0.5, %v1556_v9  ;;  %v1561_v24 = vmul.f32 0.5, %v3130_v17 }
 0x50e   :  { %v1564_v22 = vmul.f32 %v3128_v15, %v1553_v11  ;;  %v1580_v15 = vunpack.c.h.bf16 %v2831_v31 }
 0x50f   :  { %v1563_v23 = vmul.f32 %v1557_v16, %v3709_v53  ;;  %v1562_v26 = vadd.f32 0.5, %v1561_v24  ;;  %v2830_v53 = vld [vmem:[%s3945_s0 + $0x50] sm:$0xff] }
 0x510   :  { %v1577_v30 = vunpack.c.l.bf16 %v2830_v53  ;;  %v1578_v32 = vunpack.c.h.bf16 %v2830_v53 }
 0x511   :  { %v3778_v25 = vadd.f32 %v1564_v22, %v1563_v23 }
 0x513   :  { %3131 = vtanh.f32 %v3778_v25 }
 0x51d   :  { %v3132_v27 = vpop.eup %3131 }
 0x51e   :  { %v3781_v28 = vmul.f32 %v3132_v27, %v1562_v26 }
 0x520   :  { %v1581_v29 = vpack.c.bf16 %v3781_v28, %v3781_v28 }
 0x522   :  { %1807 = vmatmul.mubr.bf16.vlgmr.msra.gmra.mrb[16].mxu0 %v1581_v29  ;;  %1848 = vmatmul.mubr.bf16.vlgmr.msra.gmra.mrb[24].mxu1 %v1581_v29 }
 0x523   :  { %2085 = vmatpush1.bf16.msra.mxu0 %v3541_v55  ;;  %2126 = vmatpush1.bf16.msra.mxu1 %v3742_v12 }
 0x524   :  { %2086 = vmatprep.subr.bf16.mxu0 %v3548_v18  ;;  %2127 = vmatprep.subr.bf16.mxu1 %v3749_v13 }
 0x525   :  { %2116 = vmatprep.mubr.bf16.mxu0 %v3163_v1  ;;  %2157 = vmatprep.mubr.bf16.mxu1 %v3163_v1 }
 0x527   :  { %2087 = vmatpush1.bf16.msra.mxu0 %v3553_v19  ;;  %2128 = vmatpush1.bf16.msra.mxu1 %v3754_v14 }
 0x528   :  { %2088 = vmatprep.subr.bf16.mxu0 %v3560_v21  ;;  %2129 = vmatprep.subr.bf16.mxu1 %v3565_v56 }
 0x52b   :  { %2089 = vmatpush1.bf16.msra.mxu0 %v3570_v57  ;;  %2130 = vmatpush1.bf16.msra.mxu1 %v3575_v58 }
 0x52c   :  { %2090 = vmatprep.subr.bf16.mxu0 %v3584_v59  ;;  %2131 = vmatprep.subr.bf16.mxu1 %v3589_v60 }
 0x52f   :  { %2091 = vmatpush1.bf16.msra.mxu0 %v3594_v61  ;;  %2132 = vmatpush1.bf16.msra.mxu1 %v3599_v62 }
 0x530   :  { %2092 = vmatprep.subr.bf16.mxu0 %v3608_v63  ;;  %2133 = vmatprep.subr.bf16.mxu1 %v3613_v34 }
 0x533   :  { %2093 = vmatpush1.bf16.msra.mxu0 %v3618_v35  ;;  %2134 = vmatpush1.bf16.msra.mxu1 %v3623_v36 }
 0x534   :  { %2094 = vmatprep.subr.bf16.mxu0 %v3632_v37  ;;  %2135 = vmatprep.subr.bf16.mxu1 %v3637_v39 }
 0x537   :  { %2095 = vmatpush1.bf16.msra.mxu0 %v3642_v40  ;;  %2136 = vmatpush1.bf16.msra.mxu1 %v3647_v41 }
 0x538   :  { %2096 = vmatprep.subr.bf16.mxu0 %v3656_v42  ;;  %2137 = vmatprep.subr.bf16.mxu1 %v3661_v43 }
 0x53b   :  { %2097 = vmatpush1.bf16.msra.mxu0 %v3666_v44  ;;  %2138 = vmatpush1.bf16.msra.mxu1 %v3671_v46 }
 0x53c   :  { %2098 = vmatprep.subr.bf16.mxu0 %v3680_v2  ;;  %2139 = vmatprep.subr.bf16.mxu1 %v3685_v3 }
 0x53f   :  { %2099 = vmatpush1.bf16.msra.mxu0 %v3690_v4  ;;  %2140 = vmatpush1.bf16.msra.mxu1 %v3695_v5 }
 0x540   :  { %2394 = vmatprep.subr.bf16.mxu0 %v3536_v54  ;;  %2435 = vmatprep.subr.bf16.mxu1 %v3737_v48 }
 0x5f5   :  { %v1808_v33 = vpop.f32.mrb[16].mxu0  ;;  %v1849_v20 = vpop.f32.mrb[24].mxu1 }
 0x5f6   :  { %v1856_v47 = vadd.f32 %v1808_v33, %v1577_v30  ;;  %v1810_v50 = vpop.f32.mrb[17].mxu0  ;;  %v1851_v0 = vpop.f32.mrb[25].mxu1  ;;  %v1858_v11 = vadd.f32 %v1849_v20, %v1579_v49 }
 0x5f7   :  { %v1857_v51 = vadd.f32 %v1810_v50, %v1578_v32  ;;  %v1812_v54 = vpop.f32.mrb[18].mxu0  ;;  %v1853_v6 = vpop.f32.mrb[26].mxu1  ;;  %v1859_v16 = vadd.f32 %v1851_v0, %v1580_v15  ;;  %v3077_v15 = vld [vmem:[%s3946_s2 + $0x10] sm:$0xff]  }
 0x5f8   :  { %v1860_v48 = vmul.f32 0.5, %v1856_v47  ;;  %v1813_v7 = vpop.f32.mrb[19].mxu0  ;;  %v1854_v8 = vpop.f32.mrb[27].mxu1 }
 0x5f9   :  { %v1864_v9 = vmul.f32 0.5, %v1857_v51  ;;  %v1869_v22 = vmul.f32 0.5, %v1859_v16  ;;  %v3078_v16 = vld [vmem:[%s3946_s2 + $0x18] sm:$0xff]  }
 0x5fa   :  { %3133 = vtanh.f32 %v1860_v48 }
 0x5fb   :  { %3135 = vtanh.f32 %v1864_v9  ;;  %v3076_v9 = vld [vmem:[%s3946_s2 + $0x8] sm:$0xff]  }
 0x5fc   :  { %3137 = vtanh.f32 %v1858_v11  ;;  %v2510_v11 = vpack.c.bf16 %v3477_v45, %v3429_v38  ;;  %v3079_v38 = vld [vmem:[%s3946_s2 + $0x20] sm:$0xff]   ;;  %v3080_v45 = vld [vmem:[%s3946_s2 + $0x28] sm:$0xff]  }
 0x5fd   :  { %3139 = vtanh.f32 %v1869_v22  ;;  %v3081_v22 = vld [vmem:[%s3946_s2 + $0x30] sm:$0xff]  }
 0x604   :  { %v3134_v23 = vpop.eup %3133 }
 0x605   :  { %v3136_v17 = vpop.eup %3135  ;;  %v1862_v24 = vmul.f32 0.5, %v3134_v23  ;;  %v3082_v23 = vld [vmem:[%s3946_s2 + $0x38] sm:$0xff]  }
 0x606   :  { %v1866_v26 = vmul.f32 0.5, %v3136_v17  ;;  %v3138_v29 = vpop.eup %3137  ;;  %v2511_v17 = vpack.c.bf16 %v3712_v10, %v3524_v52 }
 0x607   :  { %v1863_v27 = vadd.f32 0.5, %v1862_v24  ;;  %v3140_v31 = vpop.eup %3139 }
 0x608   :  { %v1867_v53 = vadd.f32 0.5, %v1866_v26  ;;  %v1871_v20 = vmul.f32 0.5, %v3140_v31  ;;  %v2898_v26 = vld [vmem:[%s3945_s0 + $0x70] sm:$0xff] }
 0x609   :  { %v1874_v30 = vmul.f32 %v3138_v29, %v1863_v27  ;;  %v2197_v27 = vunpack.c.l.bf16 %v2898_v26  ;;  %v2899_v29 = vld [vmem:[%s3945_s0 + $0x78] sm:$0xff] }
 0x60a   :  { %v1873_v32 = vmul.f32 %v1867_v53, %v3778_v25  ;;  %v1872_v47 = vadd.f32 0.5, %v1871_v20  ;;  %v2198_v53 = vunpack.c.h.bf16 %v2898_v26  ;;  %v2199_v31 = vunpack.c.l.bf16 %v2899_v29 }
 0x60c   :  { %v3826_v33 = vadd.f32 %v1874_v30, %v1873_v32 }
 0x60e   :  { %3141 = vtanh.f32 %v3826_v33 }
 0x618   :  { %v3142_v49 = vpop.eup %3141 }
 0x619   :  { %v3829_v50 = vmul.f32 %v3142_v49, %v1872_v47 }
 0x61b   :  { %v1891_v0 = vpack.c.bf16 %v3829_v50, %v3829_v50  ;;  %v2512_v24 = vpack.c.bf16 %v3829_v50, %v3781_v28 }
 0x61d   :  { %2117 = vmatmul.mubr.bf16.vlgmr.msra.gmra.mrb[20].mxu0 %v1891_v0  ;;  %2158 = vmatmul.mubr.bf16.vlgmr.msra.gmra.mrb[28].mxu1 %v1891_v0 }
 0x61e   :  { %2395 = vmatpush1.bf16.msra.mxu0 %v3541_v55  ;;  %2436 = vmatpush1.bf16.msra.mxu1 %v3742_v12  ;;  %v2864_v55 = vld [vmem:[%s3945_s0 + $0x60] sm:$0xff] }
 0x61f   :  { %2396 = vmatprep.subr.bf16.mxu0 %v3548_v18  ;;  %2437 = vmatprep.subr.bf16.mxu1 %v3749_v13  ;;  %v1887_v18 = vunpack.c.l.bf16 %v2864_v55 }
 0x620   :  { %2426 = vmatprep.mubr.bf16.mxu0 %v3163_v1  ;;  %2467 = vmatprep.mubr.bf16.mxu1 %v3163_v1  ;;  %v3075_v1 = vld [vmem:[%s3946_s2] sm:$0xff]  }
 0x622   :  { %2397 = vmatpush1.bf16.msra.mxu0 %v3553_v19  ;;  %2438 = vmatpush1.bf16.msra.mxu1 %v3754_v14  ;;  %v2865_v19 = vld [vmem:[%s3945_s0 + $0x68] sm:$0xff] }
 0x623   :  { %2398 = vmatprep.subr.bf16.mxu0 %v3560_v21  ;;  %2439 = vmatprep.subr.bf16.mxu1 %v3565_v56  ;;  %v1888_v21 = vunpack.c.h.bf16 %v2864_v55 }
 0x626   :  { %2399 = vmatpush1.bf16.msra.mxu0 %v3570_v57  ;;  %2440 = vmatpush1.bf16.msra.mxu1 %v3575_v58 }
 0x627   :  { %2400 = vmatprep.subr.bf16.mxu0 %v3584_v59  ;;  %2441 = vmatprep.subr.bf16.mxu1 %v3589_v60  ;;  %v1889_v59 = vunpack.c.l.bf16 %v2865_v19 }
 0x62a   :  { %2401 = vmatpush1.bf16.msra.mxu0 %v3594_v61  ;;  %2442 = vmatpush1.bf16.msra.mxu1 %v3599_v62 }
 0x62b   :  { %2402 = vmatprep.subr.bf16.mxu0 %v3608_v63  ;;  %2443 = vmatprep.subr.bf16.mxu1 %v3613_v34 }
 0x62e   :  { %2403 = vmatpush1.bf16.msra.mxu0 %v3618_v35  ;;  %2444 = vmatpush1.bf16.msra.mxu1 %v3623_v36 }
 0x62f   :  { %2404 = vmatprep.subr.bf16.mxu0 %v3632_v37  ;;  %2445 = vmatprep.subr.bf16.mxu1 %v3637_v39 }
 0x632   :  { %2405 = vmatpush1.bf16.msra.mxu0 %v3642_v40  ;;  %2446 = vmatpush1.bf16.msra.mxu1 %v3647_v41  ;;  %v1890_v41 = vunpack.c.h.bf16 %v2865_v19 }
 0x633   :  { %2406 = vmatprep.subr.bf16.mxu0 %v3656_v42  ;;  %2447 = vmatprep.subr.bf16.mxu1 %v3661_v43 }
 0x636   :  { %2407 = vmatpush1.bf16.msra.mxu0 %v3666_v44  ;;  %2448 = vmatpush1.bf16.msra.mxu1 %v3671_v46 }
 0x637   :  { %2408 = vmatprep.subr.bf16.mxu0 %v3680_v2  ;;  %2449 = vmatprep.subr.bf16.mxu1 %v3685_v3 }
 0x63a   :  { %2409 = vmatpush1.bf16.msra.mxu0 %v3690_v4  ;;  %2450 = vmatpush1.bf16.msra.mxu1 %v3695_v5 }
 0x63b   :  { %2953 = vmatprep.subr.bf16.mxu0 %v3075_v1 }
 0x6f0   :  { %v2118_v56 = vpop.f32.mrb[20].mxu0  ;;  %v2159_v57 = vpop.f32.mrb[28].mxu1 }
 0x6f1   :  { %v2166_v58 = vadd.f32 %v2118_v56, %v1887_v18  ;;  %v2120_v60 = vpop.f32.mrb[21].mxu0  ;;  %v2161_v61 = vpop.f32.mrb[29].mxu1  ;;  %v2168_v40 = vadd.f32 %v2159_v57, %v1889_v59  ;;  %v2200_v18 = vunpack.c.h.bf16 %v2899_v29 }
 0x6f2   :  { %v2167_v62 = vadd.f32 %v2120_v60, %v1888_v21  ;;  %v2122_v63 = vpop.f32.mrb[22].mxu0  ;;  %v2163_v34 = vpop.f32.mrb[30].mxu1  ;;  %v2169_v42 = vadd.f32 %v2161_v61, %v1890_v41 }
 0x6f3   :  { %v2170_v35 = vmul.f32 0.5, %v2166_v58  ;;  %v2123_v36 = vpop.f32.mrb[23].mxu0  ;;  %v2164_v37 = vpop.f32.mrb[31].mxu1 }
 0x6f4   :  { %v2174_v39 = vmul.f32 0.5, %v2167_v62  ;;  %v2179_v43 = vmul.f32 0.5, %v2169_v42 }
 0x6f5   :  { %3143 = vtanh.f32 %v2170_v35 }
 0x6f6   :  { %3145 = vtanh.f32 %v2174_v39  ;;  %v2932_v39 = vld [vmem:[%s3947_s3] ss:$0 sm:$0xff] }
 0x6f7   :  { %3147 = vtanh.f32 %v2168_v40 }
 0x6f8   :  { %3149 = vtanh.f32 %v2179_v43 }
 0x6ff   :  { %v3144_v44 = vpop.eup %3143 }
 0x700   :  { %v3146_v46 = vpop.eup %3145  ;;  %v2172_v2 = vmul.f32 0.5, %v3144_v44 }
 0x701   :  { %v2176_v3 = vmul.f32 0.5, %v3146_v46  ;;  %v3148_v5 = vpop.eup %3147 }
 0x702   :  { %v2173_v4 = vadd.f32 0.5, %v2172_v2  ;;  %v3150_v51 = vpop.eup %3149 }
 0x703   :  { %v2177_v12 = vadd.f32 0.5, %v2176_v3  ;;  %v2181_v54 = vmul.f32 0.5, %v3150_v51 }
 0x704   :  { %v2184_v13 = vmul.f32 %v3148_v5, %v2173_v4 }
 0x705   :  { %v2183_v14 = vmul.f32 %v2177_v12, %v3826_v33  ;;  %v2182_v6 = vadd.f32 0.5, %v2181_v54 }
 0x707   :  { %v3875_v25 = vadd.f32 %v2184_v13, %v2183_v14 }
 0x709   :  { %3151 = vtanh.f32 %v3875_v25 }
 0x713   :  { %v3152_v48 = vpop.eup %3151 }
 0x714   :  { %v3878_v7 = vmul.f32 %v3152_v48, %v2182_v6 }
 0x716   :  { %v2201_v8 = vpack.c.bf16 %v3878_v7, %v3878_v7 }
 0x718   :  { %2427 = vmatmul.mubr.bf16.vlgmr.msra.gmra.mrb[24].mxu0 %v2201_v8  ;;  %2468 = vmatmul.mubr.bf16.vlgmr.msra.gmra.mrb[32].mxu1 %v2201_v8 }
 0x719   :  { %2954 = vmatpush3.bf16.msra.mxu0 %v3075_v1  ;;  %2969 = vmatprep.mubr.bf16.mxu0 %v2510_v11 }
 0x71a   :  { %2955 = vmatprep.subr.bf16.mxu0 %v3076_v9 }
 0x71d   :  { %2956 = vmatpush3.bf16.msra.mxu0 %v3076_v9 }
 0x71e   :  { %2957 = vmatprep.subr.bf16.mxu0 %v3077_v15 }
 0x721   :  { %2958 = vmatpush3.bf16.msra.mxu0 %v3077_v15 }
 0x722   :  { %2959 = vmatprep.subr.bf16.mxu0 %v3078_v16 }
 0x725   :  { %2960 = vmatpush3.bf16.msra.mxu0 %v3078_v16 }
 0x726   :  { %2961 = vmatprep.subr.bf16.mxu0 %v3079_v38 }
 0x729   :  { %2962 = vmatpush3.bf16.msra.mxu0 %v3079_v38 }
 0x72a   :  { %2963 = vmatprep.subr.bf16.mxu0 %v3080_v45 }
 0x72d   :  { %2964 = vmatpush3.bf16.msra.mxu0 %v3080_v45 }
 0x72e   :  { %2965 = vmatprep.subr.bf16.mxu0 %v3081_v22 }
 0x731   :  { %2966 = vmatpush3.bf16.msra.mxu0 %v3081_v22 }
 0x732   :  { %2967 = vmatprep.subr.bf16.mxu0 %v3082_v23 }
 0x735   :  { %2968 = vmatpush3.bf16.msra.mxu0 %v3082_v23 }
 0x738   :  { %2970 = vmatmul.mubr.bf16.vlgmr.msra.gmra.mrb[28].mxu0 %v2511_v17 }
 0x739   :  { %2973 = vmatprep.mubr.bf16.mxu0 %v2512_v24 }
 0x7eb   :  { %v2428_v30 = vpop.f32.mrb[24].mxu0  ;;  %v2469_v32 = vpop.f32.mrb[32].mxu1 }
 0x7ec   :  { %v2476_v33 = vadd.f32 %v2428_v30, %v2197_v27  ;;  %v2430_v52 = vpop.f32.mrb[25].mxu0  ;;  %v2471_v10 = vpop.f32.mrb[33].mxu1  ;;  %v2478_v55 = vadd.f32 %v2469_v32, %v2199_v31 }
 0x7ed   :  { %v2477_v20 = vadd.f32 %v2430_v52, %v2198_v53  ;;  %v2432_v28 = vpop.f32.mrb[26].mxu0  ;;  %v2473_v47 = vpop.f32.mrb[34].mxu1  ;;  %v2479_v19 = vadd.f32 %v2471_v10, %v2200_v18 }
 0x7ee   :  { %v2480_v49 = vmul.f32 0.5, %v2476_v33  ;;  %v2433_v50 = vpop.f32.mrb[27].mxu0  ;;  %v2474_v0 = vpop.f32.mrb[35].mxu1 }
 0x7ef   :  { %v2484_v1 = vmul.f32 0.5, %v2477_v20  ;;  %v2489_v21 = vmul.f32 0.5, %v2479_v19 }
 0x7f0   :  { %3153 = vtanh.f32 %v2480_v49 }
 0x7f1   :  { %3155 = vtanh.f32 %v2484_v1 }
 0x7f2   :  { %3157 = vtanh.f32 %v2478_v55 }
 0x7f3   :  { %3159 = vtanh.f32 %v2489_v21 }
 0x7fa   :  { %v3154_v56 = vpop.eup %3153 }
 0x7fb   :  { %v3156_v57 = vpop.eup %3155  ;;  %v2482_v58 = vmul.f32 0.5, %v3154_v56 }
 0x7fc   :  { %v2486_v59 = vmul.f32 0.5, %v3156_v57  ;;  %v3158_v61 = vpop.eup %3157 }
 0x7fd   :  { %v2483_v60 = vadd.f32 0.5, %v2482_v58  ;;  %v3160_v36 = vpop.eup %3159 }
 0x7fe   :  { %v2487_v62 = vadd.f32 0.5, %v2486_v59  ;;  %v2491_v37 = vmul.f32 0.5, %v3160_v36 }
 0x7ff   :  { %v2494_v63 = vmul.f32 %v3158_v61, %v2483_v60 }
 0x800   :  { %v2493_v34 = vmul.f32 %v2487_v62, %v3875_v25  ;;  %v2492_v43 = vadd.f32 0.5, %v2491_v37 }
 0x802   :  { %v2495_v35 = vadd.f32 %v2494_v63, %v2493_v34 }
 0x804   :  { %3161 = vtanh.f32 %v2495_v35 }
 0x80b   :  { %v2971_v40 = vpop.f32.mrb[28].mxu0 }
 0x80c   :  { %v2628_v41 = vadd.f32 %v2971_v40, %v2932_v39  ;;  %v2619_v42 = vpop.f32.mrb[29].mxu0 }
 0x80d   :  { %v2620_v44 = vadd.f32 %v2932_v39, %v2619_v42  ;;  %v2972_v46 = vpop.f32.mrb[30].mxu0 }
 0x80e   :  { %v3162_v2 = vpop.eup %3161  ;;  %2652 = vst [vmem:[%s3948_s4 + $0x10] sm:$0xff] %v2628_v41  ;;  %v2631_v3 = vadd.f32 %v2972_v46, %v2932_v39  ;;  %v2622_v4 = vpop.f32.mrb[31].mxu0 }
 0x80f   :  { %2650 = vst [vmem:[%s3948_s4] sm:$0xff] %v2620_v44  ;;  %v2623_v5 = vadd.f32 %v2932_v39, %v2622_v4  ;;  %v2497_v12 = vmul.f32 %v3162_v2, %v2492_v43 }
 0x810   :  { %2653 = vst [vmem:[%s3948_s4 + $0x18] sm:$0xff] %v2631_v3 }
 0x811   :  { %2651 = vst [vmem:[%s3948_s4 + $0x8] sm:$0xff] %v2623_v5  ;;  %v2513_v13 = vpack.c.bf16 %v2497_v12, %v3878_v7 }
 0x813   :  { %2974 = vmatmul.mubr.bf16.gmra.mrb[32].mxu0 %v2513_v13 }
 0x8e6   :  { %v2975_v14 = vpop.f32.mrb[32].mxu0 }
 0x8e7   :  { %v2644_v25 = vadd.f32 %v2975_v14, %v2932_v39  ;;  %v2635_v51 = vpop.f32.mrb[33].mxu0 }
 0x8e8   :  { %v2636_v54 = vadd.f32 %v2932_v39, %v2635_v51  ;;  %v2976_v6 = vpop.f32.mrb[34].mxu0 }
 0x8e9   :  { %2656 = vst [vmem:[%s3948_s4 + $0x30] sm:$0xff] %v2644_v25  ;;  %v2647_v48 = vadd.f32 %v2976_v6, %v2932_v39  ;;  %v2638_v8 = vpop.f32.mrb[35].mxu0 }
 0x8ea   :  { %2654 = vst [vmem:[%s3948_s4 + $0x20] sm:$0xff] %v2636_v54  ;;  %v2639_v9 = vadd.f32 %v2932_v39, %v2638_v8 }
 0x8eb   :  { %2657 = vst [vmem:[%s3948_s4 + $0x38] sm:$0xff] %v2647_v48 }
 0x8ec   :  { %2655 = vst [vmem:[%s3948_s4 + $0x28] sm:$0xff] %v2639_v9 }

// kernel: simple_lstm_forward.2
= control target key start
LH: loop header
LB: loop body
LE: loop exit
PB: predicated region body
PF: predicated region fallthrough
CT: control target
= control target key end

     0   :  { %v431_v1 = vmov 0   ;;  %vm73_vm0 = vcmask 130048   ;;  %v33_v17 = vlaneseq  ;;  %s587_s1 = inlined_call_operand.vmem [shape: bf16[16,512], index: 1, kind: input, shape index: {}]   ;;  %s588_s0 = inlined_call_operand.vmem [shape: f32[8,8,16], index: 0, kind: input, shape index: {}]   ;;  %s589_s2 = inlined_call_operand.vmem [shape: f32[1,512], index: 2, kind: input, shape index: {}]   ;;  %s590_s3 = inlined_call_operand.vmem [shape: bf16[8,8,512], index: 3, kind: output, shape index: {}]  }
   0x1   :  { %v425_v0 = vld [vmem:[%s587_s1 + $0x4] ss:$16 sps:$4 sm:$0xff]   ;;  %118 = vmatprep.mubr.bf16.mxu0 %v431_v1  ;;  %191 = vmatprep.mubr.bf16.mxu1 %v431_v1  ;;  %v427_v2 = vld [vmem:[%s587_s1 + $0xc] ss:$16 sps:$4 sm:$0xff]   ;;  %v429_v3 = vld [vmem:[%s587_s1] ss:$16 sps:$4 sm:$0xff]  }
   0x2   :  { %86 = vmatprep.subr.bf16.mxu0 %v425_v0  ;;  %v430_v4 = vld [vmem:[%s587_s1 + $0x8] ss:$16 sps:$4 sm:$0xff]   ;;  %v15_v5 = vld [vmem:[%s588_s0] sm:$0xff]  ;;  %159 = vmatprep.subr.bf16.mxu1 %v427_v2  ;;  %v17_v8 = vld [vmem:[%s588_s0 + $0x10] sm:$0xff]  ;;  %v34_v18 = vshrl.u32 %v33_v17, 7 }
   0x3   :  { %v16_v6 = vld [vmem:[%s588_s0 + $0x8] sm:$0xff]  ;;  %87 = vmatpush1.bf16.msra.mxu0 %v429_v3  ;;  %160 = vmatpush1.bf16.msra.mxu1 %v430_v4  ;;  %v18_v9 = vld [vmem:[%s588_s0 + $0x18] sm:$0xff]  ;;  %v19_v11 = vld [vmem:[%s588_s0 + $0x20] sm:$0xff] }
   0x4   :  { %v23_v7 = vpack.c.bf16 %v16_v6, %v15_v5  ;;  %v24_v10 = vpack.c.bf16 %v18_v9, %v17_v8  ;;  %v20_v12 = vld [vmem:[%s588_s0 + $0x28] sm:$0xff]  ;;  %v21_v14 = vld [vmem:[%s588_s0 + $0x30] sm:$0xff]  ;;  %v22_v15 = vld [vmem:[%s588_s0 + $0x38] sm:$0xff]  ;;  %v35_v19 = vsub.s32 0, %v34_v18  ;;  %v43_v20 = vsub.s32 2, %v34_v18 }
   0x5   :  { %v25_v13 = vpack.c.bf16 %v20_v12, %v19_v11  ;;  %v26_v16 = vpack.c.bf16 %v22_v15, %v21_v14  ;;  %v31_v21 = vld [vmem:[%s589_s2] sm:$0xf]  ;;  %v39_v22 = vsub.s32 1, %v34_v18  ;;  %v47_v23 = vsub.s32 3, %v34_v18 }
   0x6   :  { %384 = vmatmul.mubr.msk.bf16.vlgmr.msra.gmra.mrb[0].mxu0 %vm73_vm0, %v23_v7  ;;  %388 = vmatmul.mubr.msk.bf16.vlgmr.msra.gmra.mrb[0].mxu1 %vm73_vm0, %v23_v7  ;;  %v499_v24 = vrot.slane %v31_v21, %v35_v19  ;;  %v501_v25 = vrot.slane %v31_v21, %v43_v20 }
   0x7   :  { %128 = vmatprep.mubr.bf16.mxu0 %v431_v1  ;;  %201 = vmatprep.mubr.bf16.mxu1 %v431_v1  ;;  %v503_v26 = vrot.slane %v31_v21, %v39_v22  ;;  %v505_v27 = vrot.slane %v31_v21, %v47_v23 }
   0xe   :  { %385 = vmatmul.mubr.msk.bf16.gmra.mrb[4].mxu0 %vm73_vm0, %v24_v10  ;;  %389 = vmatmul.mubr.msk.bf16.gmra.mrb[4].mxu1 %vm73_vm0, %v24_v10 }
   0xf   :  { %138 = vmatprep.mubr.bf16.mxu0 %v431_v1  ;;  %211 = vmatprep.mubr.bf16.mxu1 %v431_v1 }
  0x16   :  { %386 = vmatmul.mubr.msk.bf16.gmra.mrb[8].mxu0 %vm73_vm0, %v25_v13  ;;  %390 = vmatmul.mubr.msk.bf16.gmra.mrb[8].mxu1 %vm73_vm0, %v25_v13 }
  0x17   :  { %148 = vmatprep.mubr.bf16.mxu0 %v431_v1  ;;  %221 = vmatprep.mubr.bf16.mxu1 %v431_v1 }
  0x1e   :  { %387 = vmatmul.mubr.msk.bf16.gmra.mrb[12].mxu0 %vm73_vm0, %v26_v16  ;;  %391 = vmatmul.mubr.msk.bf16.gmra.mrb[12].mxu1 %vm73_vm0, %v26_v16 }
  0xd9   :  { %v120_v28 = vpop.f32.mrb[0].mxu0  ;;  %v193_v29 = vpop.f32.mrb[0].mxu1 }
  0xda   :  { %v121_v30 = vadd.f32 %v120_v28, %v499_v24  ;;  %v194_v31 = vadd.f32 %v193_v29, %v501_v25  ;;  %v122_v32 = vpop.f32.mrb[1].mxu0  ;;  %v195_v33 = vpop.f32.mrb[1].mxu1 }
  0xdb   :  { %v123_v34 = vadd.f32 %v122_v32, %v503_v26  ;;  %v196_v35 = vadd.f32 %v195_v33, %v505_v27  ;;  %v124_v36 = vpop.f32.mrb[2].mxu0  ;;  %v197_v37 = vpop.f32.mrb[2].mxu1 }
  0xdc   :  { %v125_v38 = vadd.f32 %v124_v36, %v499_v24  ;;  %v198_v39 = vadd.f32 %v197_v37, %v501_v25  ;;  %v126_v40 = vpop.f32.mrb[3].mxu0  ;;  %v199_v41 = vpop.f32.mrb[3].mxu1 }
  0xdd   :  { %v408_v42 = vpack.c.bf16 %v123_v34, %v121_v30  ;;  %v409_v43 = vpack.c.bf16 %v196_v35, %v194_v31  ;;  %v127_v44 = vadd.f32 %v126_v40, %v503_v26  ;;  %v200_v45 = vadd.f32 %v199_v41, %v505_v27 }
  0xdf   :  { %360 = vst [vmem:[%s590_s3] sm:$0xff] %v408_v42  ;;  %361 = vst [vmem:[%s590_s3 + $0x8] sm:$0xff] %v409_v43  ;;  %v410_v46 = vpack.c.bf16 %v127_v44, %v125_v38  ;;  %v411_v47 = vpack.c.bf16 %v200_v45, %v198_v39 }
  0xe1   :  { %362 = vst [vmem:[%s590_s3 + $0x10] sm:$0xff] %v410_v46  ;;  %363 = vst [vmem:[%s590_s3 + $0x18] sm:$0xff] %v411_v47  ;;  %v130_v48 = vpop.f32.mrb[4].mxu0  ;;  %v203_v49 = vpop.f32.mrb[4].mxu1 }
  0xe2   :  { %v131_v50 = vadd.f32 %v130_v48, %v499_v24  ;;  %v204_v51 = vadd.f32 %v203_v49, %v501_v25  ;;  %v132_v52 = vpop.f32.mrb[5].mxu0  ;;  %v205_v53 = vpop.f32.mrb[5].mxu1 }
  0xe3   :  { %v133_v54 = vadd.f32 %v132_v52, %v503_v26  ;;  %v206_v55 = vadd.f32 %v205_v53, %v505_v27  ;;  %v134_v56 = vpop.f32.mrb[6].mxu0  ;;  %v207_v57 = vpop.f32.mrb[6].mxu1 }
  0xe4   :  { %v135_v58 = vadd.f32 %v134_v56, %v499_v24  ;;  %v208_v59 = vadd.f32 %v207_v57, %v501_v25  ;;  %v136_v60 = vpop.f32.mrb[7].mxu0  ;;  %v209_v61 = vpop.f32.mrb[7].mxu1 }
  0xe5   :  { %v412_v62 = vpack.c.bf16 %v133_v54, %v131_v50  ;;  %v413_v63 = vpack.c.bf16 %v206_v55, %v204_v51  ;;  %v137_v0 = vadd.f32 %v136_v60, %v503_v26  ;;  %v210_v1 = vadd.f32 %v209_v61, %v505_v27 }
  0xe7   :  { %364 = vst [vmem:[%s590_s3 + $0x20] sm:$0xff] %v412_v62  ;;  %365 = vst [vmem:[%s590_s3 + $0x28] sm:$0xff] %v413_v63  ;;  %v414_v2 = vpack.c.bf16 %v137_v0, %v135_v58  ;;  %v415_v3 = vpack.c.bf16 %v210_v1, %v208_v59 }
  0xe9   :  { %366 = vst [vmem:[%s590_s3 + $0x30] sm:$0xff] %v414_v2  ;;  %367 = vst [vmem:[%s590_s3 + $0x38] sm:$0xff] %v415_v3  ;;  %v140_v4 = vpop.f32.mrb[8].mxu0  ;;  %v213_v5 = vpop.f32.mrb[8].mxu1 }
  0xea   :  { %v141_v6 = vadd.f32 %v140_v4, %v499_v24  ;;  %v214_v7 = vadd.f32 %v213_v5, %v501_v25  ;;  %v142_v8 = vpop.f32.mrb[9].mxu0  ;;  %v215_v9 = vpop.f32.mrb[9].mxu1 }
  0xeb   :  { %v143_v10 = vadd.f32 %v142_v8, %v503_v26  ;;  %v216_v11 = vadd.f32 %v215_v9, %v505_v27  ;;  %v144_v12 = vpop.f32.mrb[10].mxu0  ;;  %v217_v13 = vpop.f32.mrb[10].mxu1 }
  0xec   :  { %v145_v14 = vadd.f32 %v144_v12, %v499_v24  ;;  %v218_v15 = vadd.f32 %v217_v13, %v501_v25  ;;  %v146_v16 = vpop.f32.mrb[11].mxu0  ;;  %v219_v17 = vpop.f32.mrb[11].mxu1 }
  0xed   :  { %v416_v18 = vpack.c.bf16 %v143_v10, %v141_v6  ;;  %v417_v19 = vpack.c.bf16 %v216_v11, %v214_v7  ;;  %v147_v20 = vadd.f32 %v146_v16, %v503_v26  ;;  %v220_v21 = vadd.f32 %v219_v17, %v505_v27 }
  0xef   :  { %368 = vst [vmem:[%s590_s3 + $0x40] sm:$0xff] %v416_v18  ;;  %369 = vst [vmem:[%s590_s3 + $0x48] sm:$0xff] %v417_v19  ;;  %v418_v22 = vpack.c.bf16 %v147_v20, %v145_v14  ;;  %v419_v23 = vpack.c.bf16 %v220_v21, %v218_v15 }
  0xf1   :  { %370 = vst [vmem:[%s590_s3 + $0x50] sm:$0xff] %v418_v22  ;;  %371 = vst [vmem:[%s590_s3 + $0x58] sm:$0xff] %v419_v23  ;;  %v150_v28 = vpop.f32.mrb[12].mxu0  ;;  %v223_v29 = vpop.f32.mrb[12].mxu1 }
  0xf2   :  { %v151_v30 = vadd.f32 %v150_v28, %v499_v24  ;;  %v224_v31 = vadd.f32 %v223_v29, %v501_v25  ;;  %v152_v32 = vpop.f32.mrb[13].mxu0  ;;  %v225_v33 = vpop.f32.mrb[13].mxu1 }
  0xf3   :  { %v153_v34 = vadd.f32 %v152_v32, %v503_v26  ;;  %v226_v35 = vadd.f32 %v225_v33, %v505_v27  ;;  %v154_v36 = vpop.f32.mrb[14].mxu0  ;;  %v227_v37 = vpop.f32.mrb[14].mxu1 }
  0xf4   :  { %v155_v38 = vadd.f32 %v154_v36, %v499_v24  ;;  %v228_v39 = vadd.f32 %v227_v37, %v501_v25  ;;  %v156_v40 = vpop.f32.mrb[15].mxu0  ;;  %v229_v41 = vpop.f32.mrb[15].mxu1 }
  0xf5   :  { %v420_v42 = vpack.c.bf16 %v153_v34, %v151_v30  ;;  %v421_v43 = vpack.c.bf16 %v226_v35, %v224_v31  ;;  %v157_v44 = vadd.f32 %v156_v40, %v503_v26  ;;  %v230_v45 = vadd.f32 %v229_v41, %v505_v27 }
  0xf7   :  { %372 = vst [vmem:[%s590_s3 + $0x60] sm:$0xff] %v420_v42  ;;  %373 = vst [vmem:[%s590_s3 + $0x68] sm:$0xff] %v421_v43  ;;  %v422_v46 = vpack.c.bf16 %v157_v44, %v155_v38  ;;  %v423_v24 = vpack.c.bf16 %v230_v45, %v228_v39 }
  0xf9   :  { %374 = vst [vmem:[%s590_s3 + $0x70] sm:$0xff] %v422_v46  ;;  %375 = vst [vmem:[%s590_s3 + $0x78] sm:$0xff] %v423_v24 }

// kernel: simple_lstm_forward.3
= control target key start
LH: loop header
LB: loop body
LE: loop exit
PB: predicated region body
PF: predicated region fallthrough
CT: control target
= control target key end

     0   :  { %v3163_v1 = vmov 0   ;;  %v3164_v20 = vmov 0.0|0.0   ;;  %s3944_s1 = inlined_call_operand.vmem [shape: bf16[128,512], index: 1, kind: input, shape index: {}]   ;;  %s3945_s0 = inlined_call_operand.vmem [shape: bf16[8,8,512], index: 0, kind: input, shape index: {}]   ;;  %s3946_s2 = inlined_call_operand.vmem [shape: bf16[128,128], index: 2, kind: input, shape index: {}]   ;;  %s3947_s3 = inlined_call_operand.vmem [shape: f32[1,128], index: 3, kind: input, shape index: {}]   ;;  %s3948_s4 = inlined_call_operand.vmem [shape: f32[8,8,128], index: 4, kind: output, shape index: {}]  }
   0x1   :  { %v3193_v0 = vld [vmem:[%s3944_s1 + $0x4] ss:$16 sps:$4 sm:$0xff]   ;;  %257 = vmatprep.mubr.bf16.mxu1 %v3163_v1  ;;  %566 = vmatprep.mubr.bf16.mxu0 %v3163_v1  ;;  %v3200_v2 = vld [vmem:[%s3944_s1] ss:$16 sps:$4 sm:$0xff]   ;;  %v3301_v17 = vld [vmem:[%s3944_s1 + $0xc] ss:$16 sps:$4 sm:$0xff]  }
   0x2   :  { %225 = vmatprep.subr.bf16.mxu1 %v3193_v0  ;;  %v3206_v3 = vld [vmem:[%s3944_s1 + $0x24] ss:$16 sps:$4 sm:$0xff]   ;;  %534 = vmatprep.subr.bf16.mxu0 %v3193_v0  ;;  %v3213_v4 = vld [vmem:[%s3944_s1 + $0x20] ss:$16 sps:$4 sm:$0xff]   ;;  %v3310_v18 = vld [vmem:[%s3944_s1 + $0x8] ss:$16 sps:$4 sm:$0xff]  }
   0x3   :  { %226 = vmatpush1.bf16.msra.mxu1 %v3200_v2  ;;  %535 = vmatpush1.bf16.msra.mxu0 %v3200_v2  ;;  %v3220_v5 = vld [vmem:[%s3944_s1 + $0x44] ss:$16 sps:$4 sm:$0xff]   ;;  %v3227_v6 = vld [vmem:[%s3944_s1 + $0x40] ss:$16 sps:$4 sm:$0xff]   ;;  %v3318_v19 = vld [vmem:[%s3944_s1 + $0x2c] ss:$16 sps:$4 sm:$0xff]  }
   0x4   :  { %227 = vmatprep.subr.bf16.mxu1 %v3206_v3  ;;  %536 = vmatprep.subr.bf16.mxu0 %v3206_v3  ;;  %v3234_v7 = vld [vmem:[%s3944_s1 + $0x64] ss:$16 sps:$4 sm:$0xff]   ;;  %v3241_v8 = vld [vmem:[%s3944_s1 + $0x60] ss:$16 sps:$4 sm:$0xff]   ;;  %v3325_v21 = vld [vmem:[%s3944_s1 + $0x28] ss:$16 sps:$4 sm:$0xff]  }
   0x5   :  { %v3248_v9 = vld [vmem:[%s3944_s1 + $0x84] ss:$16 sps:$4 sm:$0xff]   ;;  %v3255_v10 = vld [vmem:[%s3944_s1 + $0x80] ss:$16 sps:$4 sm:$0xff]   ;;  %v3332_v22 = vld [vmem:[%s3944_s1 + $0x4c] ss:$16 sps:$4 sm:$0xff]  }
   0x6   :  { %v3262_v11 = vld [vmem:[%s3944_s1 + $0xa4] ss:$16 sps:$4 sm:$0xff]   ;;  %v3269_v12 = vld [vmem:[%s3944_s1 + $0xa0] ss:$16 sps:$4 sm:$0xff]   ;;  %v3338_v23 = vld [vmem:[%s3944_s1 + $0x48] ss:$16 sps:$4 sm:$0xff]  }
   0x7   :  { %228 = vmatpush1.bf16.msra.mxu1 %v3213_v4  ;;  %537 = vmatpush1.bf16.msra.mxu0 %v3213_v4  ;;  %v3276_v13 = vld [vmem:[%s3944_s1 + $0xc4] ss:$16 sps:$4 sm:$0xff]   ;;  %v3282_v14 = vld [vmem:[%s3944_s1 + $0xc0] ss:$16 sps:$4 sm:$0xff]   ;;  %v3344_v24 = vld [vmem:[%s3944_s1 + $0x6c] ss:$16 sps:$4 sm:$0xff]  }
   0x8   :  { %229 = vmatprep.subr.bf16.mxu1 %v3220_v5  ;;  %538 = vmatprep.subr.bf16.mxu0 %v3220_v5  ;;  %v3287_v15 = vld [vmem:[%s3944_s1 + $0xe4] ss:$16 sps:$4 sm:$0xff]   ;;  %v3296_v16 = vld [vmem:[%s3944_s1 + $0xe0] ss:$16 sps:$4 sm:$0xff]   ;;  %v3350_v25 = vld [vmem:[%s3944_s1 + $0x68] ss:$16 sps:$4 sm:$0xff]  }
   0x9   :  { %v3356_v26 = vld [vmem:[%s3944_s1 + $0x8c] ss:$16 sps:$4 sm:$0xff]   ;;  %v3362_v27 = vld [vmem:[%s3944_s1 + $0x88] ss:$16 sps:$4 sm:$0xff]   ;;  %v26_v38 = vld [vmem:[%s3945_s0] sm:$0xff] }
   0xa   :  { %v3368_v28 = vld [vmem:[%s3944_s1 + $0xac] ss:$16 sps:$4 sm:$0xff]   ;;  %v3374_v29 = vld [vmem:[%s3944_s1 + $0xa8] ss:$16 sps:$4 sm:$0xff]   ;;  %v29_v39 = vunpack.c.h.bf16 %v26_v38  ;;  %v28_v40 = vunpack.c.l.bf16 %v26_v38 }
   0xb   :  { %230 = vmatpush1.bf16.msra.mxu1 %v3227_v6  ;;  %539 = vmatpush1.bf16.msra.mxu0 %v3227_v6  ;;  %v3380_v30 = vld [vmem:[%s3944_s1 + $0xcc] ss:$16 sps:$4 sm:$0xff]   ;;  %v3386_v31 = vld [vmem:[%s3944_s1 + $0xc8] ss:$16 sps:$4 sm:$0xff]  }
   0xc   :  { %231 = vmatprep.subr.bf16.mxu1 %v3234_v7  ;;  %540 = vmatprep.subr.bf16.mxu0 %v3234_v7  ;;  %v3392_v32 = vld [vmem:[%s3944_s1 + $0xec] ss:$16 sps:$4 sm:$0xff]   ;;  %v3398_v33 = vld [vmem:[%s3944_s1 + $0xe8] ss:$16 sps:$4 sm:$0xff]  }
   0xd   :  { %v27_v45 = vld [vmem:[%s3945_s0 + $0x8] sm:$0xff] }
   0xe   :  { %v30_v46 = vunpack.c.l.bf16 %v27_v45  ;;  %v31_v47 = vunpack.c.h.bf16 %v27_v45 }
   0xf   :  { %232 = vmatpush1.bf16.msra.mxu1 %v3241_v8  ;;  %541 = vmatpush1.bf16.msra.mxu0 %v3241_v8 }
  0x10   :  { %233 = vmatprep.subr.bf16.mxu1 %v3248_v9  ;;  %542 = vmatprep.subr.bf16.mxu0 %v3248_v9 }
  0x13   :  { %234 = vmatpush1.bf16.msra.mxu1 %v3255_v10  ;;  %543 = vmatpush1.bf16.msra.mxu0 %v3255_v10 }
  0x14   :  { %235 = vmatprep.subr.bf16.mxu1 %v3262_v11  ;;  %544 = vmatprep.subr.bf16.mxu0 %v3262_v11 }
  0x17   :  { %236 = vmatpush1.bf16.msra.mxu1 %v3269_v12  ;;  %545 = vmatpush1.bf16.msra.mxu0 %v3269_v12 }
  0x18   :  { %237 = vmatprep.subr.bf16.mxu1 %v3276_v13  ;;  %546 = vmatprep.subr.bf16.mxu0 %v3276_v13 }
  0x1b   :  { %238 = vmatpush1.bf16.msra.mxu1 %v3282_v14  ;;  %547 = vmatpush1.bf16.msra.mxu0 %v3282_v14 }
  0x1c   :  { %239 = vmatprep.subr.bf16.mxu1 %v3287_v15  ;;  %548 = vmatprep.subr.bf16.mxu0 %v3287_v15 }
  0x1f   :  { %240 = vmatpush1.bf16.msra.mxu1 %v3296_v16  ;;  %549 = vmatpush1.bf16.msra.mxu0 %v3296_v16 }
  0x20   :  { %266 = vmatprep.subr.bf16.mxu1 %v3301_v17  ;;  %844 = vmatprep.subr.bf16.mxu0 %v3193_v0 }
  0x22   :  { %258 = vmatmul.mubr.bf16.vlgmr.msra.gmra.mrb[0].mxu1 %v3164_v20 }
  0x23   :  { %267 = vmatpush1.bf16.msra.mxu1 %v3310_v18  ;;  %298 = vmatprep.mubr.bf16.mxu1 %v3163_v1 }
  0x24   :  { %268 = vmatprep.subr.bf16.mxu1 %v3318_v19 }
  0x27   :  { %269 = vmatpush1.bf16.msra.mxu1 %v3325_v21 }
  0x28   :  { %270 = vmatprep.subr.bf16.mxu1 %v3332_v22 }
  0x2b   :  { %271 = vmatpush1.bf16.msra.mxu1 %v3338_v23 }
  0x2c   :  { %272 = vmatprep.subr.bf16.mxu1 %v3344_v24 }
  0x2f   :  { %273 = vmatpush1.bf16.msra.mxu1 %v3350_v25 }
  0x30   :  { %274 = vmatprep.subr.bf16.mxu1 %v3356_v26 }
  0x33   :  { %275 = vmatpush1.bf16.msra.mxu1 %v3362_v27 }
  0x34   :  { %276 = vmatprep.subr.bf16.mxu1 %v3368_v28 }
  0x37   :  { %277 = vmatpush1.bf16.msra.mxu1 %v3374_v29 }
  0x38   :  { %278 = vmatprep.subr.bf16.mxu1 %v3380_v30 }
  0x3b   :  { %279 = vmatpush1.bf16.msra.mxu1 %v3386_v31 }
  0x3c   :  { %280 = vmatprep.subr.bf16.mxu1 %v3392_v32 }
  0x3f   :  { %281 = vmatpush1.bf16.msra.mxu1 %v3398_v33 }
  0x40   :  { %575 = vmatprep.subr.bf16.mxu1 %v3301_v17 }
  0x42   :  { %299 = vmatmul.mubr.bf16.vlgmr.msra.gmra.mrb[4].mxu1 %v3164_v20 }
  0x43   :  { %576 = vmatpush1.bf16.msra.mxu1 %v3310_v18  ;;  %607 = vmatprep.mubr.bf16.mxu1 %v3163_v1 }
  0x44   :  { %577 = vmatprep.subr.bf16.mxu1 %v3318_v19 }
  0x47   :  { %578 = vmatpush1.bf16.msra.mxu1 %v3325_v21 }
  0x48   :  { %579 = vmatprep.subr.bf16.mxu1 %v3332_v22 }
  0x4b   :  { %580 = vmatpush1.bf16.msra.mxu1 %v3338_v23 }
  0x4c   :  { %581 = vmatprep.subr.bf16.mxu1 %v3344_v24 }
  0x4f   :  { %582 = vmatpush1.bf16.msra.mxu1 %v3350_v25 }
  0x50   :  { %583 = vmatprep.subr.bf16.mxu1 %v3356_v26 }
  0x53   :  { %584 = vmatpush1.bf16.msra.mxu1 %v3362_v27 }
  0x54   :  { %585 = vmatprep.subr.bf16.mxu1 %v3368_v28 }
  0x57   :  { %586 = vmatpush1.bf16.msra.mxu1 %v3374_v29 }
  0x58   :  { %587 = vmatprep.subr.bf16.mxu1 %v3380_v30 }
  0x5b   :  { %588 = vmatpush1.bf16.msra.mxu1 %v3386_v31 }
  0x5c   :  { %589 = vmatprep.subr.bf16.mxu1 %v3392_v32 }
  0x5f   :  { %590 = vmatpush1.bf16.msra.mxu1 %v3398_v33 }
  0x60   :  { %885 = vmatprep.subr.bf16.mxu1 %v3301_v17 }
  0xf5   :  { %v259_v34 = vpop.f32.mrb[0].mxu1 }
  0xf6   :  { %v261_v35 = vpop.f32.mrb[1].mxu1  ;;  %v307_v42 = vadd.f32 %v259_v34, %v28_v40  ;;  %v2694_v40 = vld [vmem:[%s3945_s0 + $0x10] sm:$0xff] }
  0xf7   :  { %v263_v36 = vpop.f32.mrb[2].mxu1  ;;  %v308_v41 = vadd.f32 %v261_v35, %v29_v39 }
  0xf8   :  { %v264_v37 = vpop.f32.mrb[3].mxu1  ;;  %v311_v44 = vmul.f32 0.5, %v307_v42  ;;  %v2695_v42 = vld [vmem:[%s3945_s0 + $0x18] sm:$0xff] }
  0xf9   :  { %v315_v43 = vmul.f32 0.5, %v308_v41  ;;  %v337_v41 = vunpack.c.l.bf16 %v2694_v40 }
  0xfb   :  { %3083 = vtanh.f32 %v315_v43  ;;  %v338_v43 = vunpack.c.h.bf16 %v2694_v40 }
  0xfc   :  { %3085 = vtanh.f32 %v311_v44 }
 0x105   :  { %v3084_v53 = vpop.eup %3083 }
 0x106   :  { %v3086_v55 = vpop.eup %3085  ;;  %v317_v56 = vmul.f32 0.5, %v3084_v53 }
 0x107   :  { %v313_v58 = vmul.f32 0.5, %v3086_v55 }
 0x108   :  { %v318_v59 = vadd.f32 0.5, %v317_v56 }
 0x109   :  { %v314_v60 = vadd.f32 0.5, %v313_v58 }
 0x10a   :  { %v324_v62 = vmul.f32 0.0, %v318_v59 }
 0x115   :  { %v300_v48 = vpop.f32.mrb[4].mxu1 }
 0x116   :  { %v309_v49 = vadd.f32 %v300_v48, %v30_v46  ;;  %v302_v50 = vpop.f32.mrb[5].mxu1 }
 0x117   :  { %v310_v51 = vadd.f32 %v302_v50, %v31_v47  ;;  %v304_v52 = vpop.f32.mrb[6].mxu1  ;;  %v339_v47 = vunpack.c.l.bf16 %v2695_v42 }
 0x118   :  { %3087 = vtanh.f32 %v309_v49  ;;  %v305_v54 = vpop.f32.mrb[7].mxu1 }
 0x119   :  { %v320_v57 = vmul.f32 0.5, %v310_v51 }
 0x11b   :  { %3089 = vtanh.f32 %v320_v57  ;;  %v340_v57 = vunpack.c.h.bf16 %v2695_v42 }
 0x122   :  { %v3088_v61 = vpop.eup %3087 }
 0x123   :  { %v325_v63 = vmul.f32 %v3088_v61, %v314_v60 }
 0x125   :  { %v3426_v20 = vadd.f32 %v325_v63, %v324_v62  ;;  %v3090_v34 = vpop.eup %3089 }
 0x126   :  { %v322_v35 = vmul.f32 0.5, %v3090_v34 }
 0x127   :  { %3091 = vtanh.f32 %v3426_v20 }
 0x128   :  { %v323_v36 = vadd.f32 0.5, %v322_v35 }
 0x131   :  { %v3092_v37 = vpop.eup %3091 }
 0x132   :  { %v3429_v38 = vmul.f32 %v3092_v37, %v323_v36 }
 0x134   :  { %v341_v39 = vpack.c.bf16 %v3429_v38, %v3429_v38 }
 0x136   :  { %567 = vmatmul.mubr.bf16.vlgmr.msra.gmra.mrb[0].mxu0 %v341_v39  ;;  %608 = vmatmul.mubr.bf16.vlgmr.msra.gmra.mrb[8].mxu1 %v341_v39 }
 0x137   :  { %845 = vmatpush1.bf16.msra.mxu0 %v3200_v2  ;;  %886 = vmatpush1.bf16.msra.mxu1 %v3310_v18 }
 0x138   :  { %846 = vmatprep.subr.bf16.mxu0 %v3206_v3  ;;  %887 = vmatprep.subr.bf16.mxu1 %v3318_v19 }
 0x139   :  { %876 = vmatprep.mubr.bf16.mxu0 %v3163_v1  ;;  %917 = vmatprep.mubr.bf16.mxu1 %v3163_v1 }
 0x13b   :  { %847 = vmatpush1.bf16.msra.mxu0 %v3213_v4  ;;  %888 = vmatpush1.bf16.msra.mxu1 %v3325_v21 }
 0x13c   :  { %848 = vmatprep.subr.bf16.mxu0 %v3220_v5  ;;  %889 = vmatprep.subr.bf16.mxu1 %v3332_v22 }
 0x13f   :  { %849 = vmatpush1.bf16.msra.mxu0 %v3227_v6  ;;  %890 = vmatpush1.bf16.msra.mxu1 %v3338_v23 }
 0x140   :  { %850 = vmatprep.subr.bf16.mxu0 %v3234_v7  ;;  %891 = vmatprep.subr.bf16.mxu1 %v3344_v24 }
 0x143   :  { %851 = vmatpush1.bf16.msra.mxu0 %v3241_v8  ;;  %892 = vmatpush1.bf16.msra.mxu1 %v3350_v25 }
 0x144   :  { %852 = vmatprep.subr.bf16.mxu0 %v3248_v9  ;;  %893 = vmatprep.subr.bf16.mxu1 %v3356_v26 }
 0x147   :  { %853 = vmatpush1.bf16.msra.mxu0 %v3255_v10  ;;  %894 = vmatpush1.bf16.msra.mxu1 %v3362_v27 }
 0x148   :  { %854 = vmatprep.subr.bf16.mxu0 %v3262_v11  ;;  %895 = vmatprep.subr.bf16.mxu1 %v3368_v28 }
 0x14b   :  { %855 = vmatpush1.bf16.msra.mxu0 %v3269_v12  ;;  %896 = vmatpush1.bf16.msra.mxu1 %v3374_v29 }
 0x14c   :  { %856 = vmatprep.subr.bf16.mxu0 %v3276_v13  ;;  %897 = vmatprep.subr.bf16.mxu1 %v3380_v30 }
 0x14f   :  { %857 = vmatpush1.bf16.msra.mxu0 %v3282_v14  ;;  %898 = vmatpush1.bf16.msra.mxu1 %v3386_v31 }
 0x150   :  { %858 = vmatprep.subr.bf16.mxu0 %v3287_v15  ;;  %899 = vmatprep.subr.bf16.mxu1 %v3392_v32 }
 0x153   :  { %859 = vmatpush1.bf16.msra.mxu0 %v3296_v16  ;;  %900 = vmatpush1.bf16.msra.mxu1 %v3398_v33 }
 0x154   :  { %1154 = vmatprep.subr.bf16.mxu0 %v3193_v0  ;;  %1195 = vmatprep.subr.bf16.mxu1 %v3301_v17 }
 0x209   :  { %v568_v44 = vpop.f32.mrb[0].mxu0  ;;  %v609_v45 = vpop.f32.mrb[8].mxu1 }
 0x20a   :  { %v616_v46 = vadd.f32 %v568_v44, %v337_v41  ;;  %v570_v48 = vpop.f32.mrb[1].mxu0  ;;  %v611_v49 = vpop.f32.mrb[9].mxu1  ;;  %v618_v56 = vadd.f32 %v609_v45, %v339_v47 }
 0x20b   :  { %v617_v50 = vadd.f32 %v570_v48, %v338_v43  ;;  %v572_v0 = vpop.f32.mrb[2].mxu0  ;;  %v613_v51 = vpop.f32.mrb[10].mxu1  ;;  %v619_v58 = vadd.f32 %v611_v49, %v340_v57  ;;  %v3570_v57 = vld [vmem:[%s3944_s1 + $0x40] ss:$16 sps:$4 sm:$0xff]  }
 0x20c   :  { %v620_v52 = vmul.f32 0.5, %v616_v46  ;;  %v573_v53 = vpop.f32.mrb[3].mxu0  ;;  %v614_v54 = vpop.f32.mrb[11].mxu1 }
 0x20d   :  { %v624_v55 = vmul.f32 0.5, %v617_v50  ;;  %v629_v59 = vmul.f32 0.5, %v619_v58  ;;  %v3536_v54 = vld [vmem:[%s3944_s1 + $0x4] ss:$16 sps:$4 sm:$0xff]   ;;  %v3575_v58 = vld [vmem:[%s3944_s1 + $0x48] ss:$16 sps:$4 sm:$0xff]  }
 0x20e   :  { %3093 = vtanh.f32 %v620_v52 }
 0x20f   :  { %3095 = vtanh.f32 %v624_v55  ;;  %v3541_v55 = vld [vmem:[%s3944_s1] ss:$16 sps:$4 sm:$0xff]  }
 0x210   :  { %3097 = vtanh.f32 %v618_v56  ;;  %v3565_v56 = vld [vmem:[%s3944_s1 + $0x4c] ss:$16 sps:$4 sm:$0xff]  }
 0x211   :  { %3099 = vtanh.f32 %v629_v59  ;;  %v3584_v59 = vld [vmem:[%s3944_s1 + $0x64] ss:$16 sps:$4 sm:$0xff]  }
 0x218   :  { %v3094_v60 = vpop.eup %3093 }
 0x219   :  { %v3096_v61 = vpop.eup %3095  ;;  %v622_v62 = vmul.f32 0.5, %v3094_v60  ;;  %v3589_v60 = vld [vmem:[%s3944_s1 + $0x6c] ss:$16 sps:$4 sm:$0xff]  }
 0x21a   :  { %v626_v63 = vmul.f32 0.5, %v3096_v61  ;;  %v3098_v35 = vpop.eup %3097  ;;  %v3594_v61 = vld [vmem:[%s3944_s1 + $0x60] ss:$16 sps:$4 sm:$0xff]  }
 0x21b   :  { %v623_v34 = vadd.f32 0.5, %v622_v62  ;;  %v3100_v41 = vpop.eup %3099  ;;  %v3599_v62 = vld [vmem:[%s3944_s1 + $0x68] ss:$16 sps:$4 sm:$0xff]  }
 0x21c   :  { %v627_v36 = vadd.f32 0.5, %v626_v63  ;;  %v631_v42 = vmul.f32 0.5, %v3100_v41  ;;  %v3608_v63 = vld [vmem:[%s3944_s1 + $0x84] ss:$16 sps:$4 sm:$0xff]   ;;  %v3647_v41 = vld [vmem:[%s3944_s1 + $0xa8] ss:$16 sps:$4 sm:$0xff]  }
 0x21d   :  { %v634_v37 = vmul.f32 %v3098_v35, %v623_v34  ;;  %v3613_v34 = vld [vmem:[%s3944_s1 + $0x8c] ss:$16 sps:$4 sm:$0xff]   ;;  %v3618_v35 = vld [vmem:[%s3944_s1 + $0x80] ss:$16 sps:$4 sm:$0xff]  }
 0x21e   :  { %v633_v39 = vmul.f32 %v627_v36, %v3426_v20  ;;  %v632_v43 = vadd.f32 0.5, %v631_v42  ;;  %v3623_v36 = vld [vmem:[%s3944_s1 + $0x88] ss:$16 sps:$4 sm:$0xff]   ;;  %v3656_v42 = vld [vmem:[%s3944_s1 + $0xc4] ss:$16 sps:$4 sm:$0xff]  }
 0x220   :  { %v3474_v40 = vadd.f32 %v634_v37, %v633_v39  ;;  %v3632_v37 = vld [vmem:[%s3944_s1 + $0xa4] ss:$16 sps:$4 sm:$0xff]   ;;  %v3637_v39 = vld [vmem:[%s3944_s1 + $0xac] ss:$16 sps:$4 sm:$0xff]  }
 0x222   :  { %3101 = vtanh.f32 %v3474_v40 }
 0x22c   :  { %v3102_v44 = vpop.eup %3101 }
 0x22d   :  { %v3477_v45 = vmul.f32 %v3102_v44, %v632_v43  ;;  %v3661_v43 = vld [vmem:[%s3944_s1 + $0xcc] ss:$16 sps:$4 sm:$0xff]   ;;  %v3666_v44 = vld [vmem:[%s3944_s1 + $0xc0] ss:$16 sps:$4 sm:$0xff]  }
 0x22f   :  { %v651_v46 = vpack.c.bf16 %v3477_v45, %v3477_v45 }
 0x231   :  { %877 = vmatmul.mubr.bf16.vlgmr.msra.gmra.mrb[4].mxu0 %v651_v46  ;;  %918 = vmatmul.mubr.bf16.vlgmr.msra.gmra.mrb[12].mxu1 %v651_v46  ;;  %v3671_v46 = vld [vmem:[%s3944_s1 + $0xc8] ss:$16 sps:$4 sm:$0xff]  }
 0x232   :  { %1155 = vmatpush1.bf16.msra.mxu0 %v3200_v2  ;;  %1196 = vmatpush1.bf16.msra.mxu1 %v3310_v18  ;;  %v2728_v2 = vld [vmem:[%s3945_s0 + $0x20] sm:$0xff] }
 0x233   :  { %1156 = vmatprep.subr.bf16.mxu0 %v3206_v3  ;;  %1197 = vmatprep.subr.bf16.mxu1 %v3318_v19  ;;  %v647_v3 = vunpack.c.l.bf16 %v2728_v2 }
 0x234   :  { %1186 = vmatprep.mubr.bf16.mxu0 %v3163_v1  ;;  %1227 = vmatprep.mubr.bf16.mxu1 %v3163_v1 }
 0x236   :  { %1157 = vmatpush1.bf16.msra.mxu0 %v3213_v4  ;;  %1198 = vmatpush1.bf16.msra.mxu1 %v3325_v21  ;;  %v2729_v4 = vld [vmem:[%s3945_s0 + $0x28] sm:$0xff] }
 0x237   :  { %1158 = vmatprep.subr.bf16.mxu0 %v3220_v5  ;;  %1199 = vmatprep.subr.bf16.mxu1 %v3332_v22  ;;  %v648_v5 = vunpack.c.h.bf16 %v2728_v2  ;;  %v3680_v2 = vld [vmem:[%s3944_s1 + $0xe4] ss:$16 sps:$4 sm:$0xff]  }
 0x23a   :  { %1159 = vmatpush1.bf16.msra.mxu0 %v3227_v6  ;;  %1200 = vmatpush1.bf16.msra.mxu1 %v3338_v23 }
 0x23b   :  { %1160 = vmatprep.subr.bf16.mxu0 %v3234_v7  ;;  %1201 = vmatprep.subr.bf16.mxu1 %v3344_v24  ;;  %v650_v24 = vunpack.c.h.bf16 %v2729_v4 }
 0x23e   :  { %1161 = vmatpush1.bf16.msra.mxu0 %v3241_v8  ;;  %1202 = vmatpush1.bf16.msra.mxu1 %v3350_v25 }
 0x23f   :  { %1162 = vmatprep.subr.bf16.mxu0 %v3248_v9  ;;  %1203 = vmatprep.subr.bf16.mxu1 %v3356_v26  ;;  %v649_v9 = vunpack.c.l.bf16 %v2729_v4  ;;  %v3690_v4 = vld [vmem:[%s3944_s1 + $0xe0] ss:$16 sps:$4 sm:$0xff]  }
 0x242   :  { %1163 = vmatpush1.bf16.msra.mxu0 %v3255_v10  ;;  %1204 = vmatpush1.bf16.msra.mxu1 %v3362_v27 }
 0x243   :  { %1164 = vmatprep.subr.bf16.mxu0 %v3262_v11  ;;  %1205 = vmatprep.subr.bf16.mxu1 %v3368_v28 }
 0x246   :  { %1165 = vmatpush1.bf16.msra.mxu0 %v3269_v12  ;;  %1206 = vmatpush1.bf16.msra.mxu1 %v3374_v29 }
 0x247   :  { %1166 = vmatprep.subr.bf16.mxu0 %v3276_v13  ;;  %1207 = vmatprep.subr.bf16.mxu1 %v3380_v30 }
 0x24a   :  { %1167 = vmatpush1.bf16.msra.mxu0 %v3282_v14  ;;  %1208 = vmatpush1.bf16.msra.mxu1 %v3386_v31 }
 0x24b   :  { %1168 = vmatprep.subr.bf16.mxu0 %v3287_v15  ;;  %1209 = vmatprep.subr.bf16.mxu1 %v3392_v32 }
 0x24e   :  { %1169 = vmatpush1.bf16.msra.mxu0 %v3296_v16  ;;  %1210 = vmatpush1.bf16.msra.mxu1 %v3398_v33 }
 0x24f   :  { %1505 = vmatprep.subr.bf16.mxu1 %v3301_v17  ;;  %1464 = vmatprep.subr.bf16.mxu0 %v3536_v54 }
 0x304   :  { %v878_v6 = vpop.f32.mrb[4].mxu0  ;;  %v919_v7 = vpop.f32.mrb[12].mxu1 }
 0x305   :  { %v926_v8 = vadd.f32 %v878_v6, %v647_v3  ;;  %v880_v10 = vpop.f32.mrb[5].mxu0  ;;  %v921_v11 = vpop.f32.mrb[13].mxu1  ;;  %v928_v23 = vadd.f32 %v919_v7, %v649_v9  ;;  %v3685_v3 = vld [vmem:[%s3944_s1 + $0xec] ss:$16 sps:$4 sm:$0xff]   ;;  %v2762_v6 = vld [vmem:[%s3945_s0 + $0x30] sm:$0xff] }
 0x306   :  { %v927_v12 = vadd.f32 %v880_v10, %v648_v5  ;;  %v882_v13 = vpop.f32.mrb[6].mxu0  ;;  %v923_v14 = vpop.f32.mrb[14].mxu1  ;;  %v929_v25 = vadd.f32 %v921_v11, %v650_v24  ;;  %v3695_v5 = vld [vmem:[%s3944_s1 + $0xe8] ss:$16 sps:$4 sm:$0xff]   ;;  %v957_v7 = vunpack.c.l.bf16 %v2762_v6  ;;  %v958_v9 = vunpack.c.h.bf16 %v2762_v6 }
 0x307   :  { %v930_v15 = vmul.f32 0.5, %v926_v8  ;;  %v883_v16 = vpop.f32.mrb[7].mxu0  ;;  %v924_v17 = vpop.f32.mrb[15].mxu1  ;;  %v2763_v8 = vld [vmem:[%s3945_s0 + $0x38] sm:$0xff] }
 0x308   :  { %v934_v22 = vmul.f32 0.5, %v927_v12  ;;  %v939_v26 = vmul.f32 0.5, %v929_v25  ;;  %v959_v13 = vunpack.c.l.bf16 %v2763_v8 }
 0x309   :  { %3103 = vtanh.f32 %v930_v15 }
 0x30a   :  { %3105 = vtanh.f32 %v934_v22 }
 0x30b   :  { %3107 = vtanh.f32 %v928_v23 }
 0x30c   :  { %3109 = vtanh.f32 %v939_v26 }
 0x313   :  { %v3104_v27 = vpop.eup %3103 }
 0x314   :  { %v3106_v28 = vpop.eup %3105  ;;  %v932_v29 = vmul.f32 0.5, %v3104_v27 }
 0x315   :  { %v936_v30 = vmul.f32 0.5, %v3106_v28  ;;  %v3108_v32 = vpop.eup %3107  ;;  %v960_v28 = vunpack.c.h.bf16 %v2763_v8 }
 0x316   :  { %v933_v31 = vadd.f32 0.5, %v932_v29  ;;  %v3110_v49 = vpop.eup %3109 }
 0x317   :  { %v937_v33 = vadd.f32 0.5, %v936_v30  ;;  %v941_v50 = vmul.f32 0.5, %v3110_v49 }
 0x318   :  { %v944_v20 = vmul.f32 %v3108_v32, %v933_v31 }
 0x319   :  { %v943_v47 = vmul.f32 %v937_v33, %v3474_v40  ;;  %v942_v0 = vadd.f32 0.5, %v941_v50  ;;  %v3642_v40 = vld [vmem:[%s3944_s1 + $0xa0] ss:$16 sps:$4 sm:$0xff]  }
 0x31b   :  { %v3521_v48 = vadd.f32 %v944_v20, %v943_v47 }
 0x31d   :  { %3111 = vtanh.f32 %v3521_v48 }
 0x327   :  { %v3112_v51 = vpop.eup %3111 }
 0x328   :  { %v3524_v52 = vmul.f32 %v3112_v51, %v942_v0 }
 0x32a   :  { %v961_v53 = vpack.c.bf16 %v3524_v52, %v3524_v52 }
 0x32c   :  { %1187 = vmatmul.mubr.bf16.vlgmr.msra.gmra.mrb[8].mxu0 %v961_v53  ;;  %1228 = vmatmul.mubr.bf16.vlgmr.msra.gmra.mrb[16].mxu1 %v961_v53 }
 0x32d   :  { %1506 = vmatpush1.bf16.msra.mxu1 %v3310_v18  ;;  %1496 = vmatprep.mubr.bf16.mxu0 %v3163_v1  ;;  %v3548_v18 = vld [vmem:[%s3944_s1 + $0x24] ss:$16 sps:$4 sm:$0xff]  }
 0x32e   :  { %1507 = vmatprep.subr.bf16.mxu1 %v3318_v19  ;;  %1537 = vmatprep.mubr.bf16.mxu1 %v3163_v1  ;;  %v3553_v19 = vld [vmem:[%s3944_s1 + $0x20] ss:$16 sps:$4 sm:$0xff]  }
 0x32f   :  { %1465 = vmatpush1.bf16.msra.mxu0 %v3541_v55 }
 0x330   :  { %1466 = vmatprep.subr.bf16.mxu0 %v3548_v18 }
 0x331   :  { %1508 = vmatpush1.bf16.msra.mxu1 %v3325_v21  ;;  %v3560_v21 = vld [vmem:[%s3944_s1 + $0x44] ss:$16 sps:$4 sm:$0xff]  }
 0x332   :  { %1509 = vmatprep.subr.bf16.mxu1 %v3565_v56 }
 0x333   :  { %1467 = vmatpush1.bf16.msra.mxu0 %v3553_v19 }
 0x334   :  { %1468 = vmatprep.subr.bf16.mxu0 %v3560_v21 }
 0x335   :  { %1510 = vmatpush1.bf16.msra.mxu1 %v3575_v58 }
 0x336   :  { %1511 = vmatprep.subr.bf16.mxu1 %v3589_v60 }
 0x337   :  { %1469 = vmatpush1.bf16.msra.mxu0 %v3570_v57 }
 0x338   :  { %1470 = vmatprep.subr.bf16.mxu0 %v3584_v59 }
 0x339   :  { %1512 = vmatpush1.bf16.msra.mxu1 %v3599_v62 }
 0x33a   :  { %1513 = vmatprep.subr.bf16.mxu1 %v3613_v34 }
 0x33b   :  { %1471 = vmatpush1.bf16.msra.mxu0 %v3594_v61 }
 0x33c   :  { %1472 = vmatprep.subr.bf16.mxu0 %v3608_v63 }
 0x33d   :  { %1514 = vmatpush1.bf16.msra.mxu1 %v3623_v36 }
 0x33e   :  { %1515 = vmatprep.subr.bf16.mxu1 %v3637_v39 }
 0x33f   :  { %1473 = vmatpush1.bf16.msra.mxu0 %v3618_v35 }
 0x340   :  { %1474 = vmatprep.subr.bf16.mxu0 %v3632_v37 }
 0x341   :  { %1516 = vmatpush1.bf16.msra.mxu1 %v3647_v41 }
 0x342   :  { %1517 = vmatprep.subr.bf16.mxu1 %v3661_v43 }
 0x343   :  { %1475 = vmatpush1.bf16.msra.mxu0 %v3642_v40 }
 0x344   :  { %1476 = vmatprep.subr.bf16.mxu0 %v3656_v42 }
 0x345   :  { %1518 = vmatpush1.bf16.msra.mxu1 %v3671_v46 }
 0x346   :  { %1519 = vmatprep.subr.bf16.mxu1 %v3685_v3 }
 0x347   :  { %1477 = vmatpush1.bf16.msra.mxu0 %v3666_v44 }
 0x348   :  { %1478 = vmatprep.subr.bf16.mxu0 %v3680_v2 }
 0x349   :  { %1520 = vmatpush1.bf16.msra.mxu1 %v3695_v5 }
 0x34b   :  { %1479 = vmatpush1.bf16.msra.mxu0 %v3690_v4 }
 0x34c   :  { %1774 = vmatprep.subr.bf16.mxu0 %v3536_v54 }
 0x3ff   :  { %v1188_v10 = vpop.f32.mrb[8].mxu0  ;;  %v1229_v11 = vpop.f32.mrb[16].mxu1 }
 0x400   :  { %v1236_v12 = vadd.f32 %v1188_v10, %v957_v7  ;;  %v1190_v14 = vpop.f32.mrb[9].mxu0  ;;  %v1231_v15 = vpop.f32.mrb[17].mxu1  ;;  %v1238_v27 = vadd.f32 %v1229_v11, %v959_v13  ;;  %v3749_v13 = vld [vmem:[%s3944_s1 + $0x2c] ss:$16 sps:$4 sm:$0xff]  }
 0x401   :  { %v1237_v16 = vadd.f32 %v1190_v14, %v958_v9  ;;  %v1192_v17 = vpop.f32.mrb[10].mxu0  ;;  %v1233_v22 = vpop.f32.mrb[18].mxu1  ;;  %v1239_v29 = vadd.f32 %v1231_v15, %v960_v28  ;;  %v3754_v14 = vld [vmem:[%s3944_s1 + $0x28] ss:$16 sps:$4 sm:$0xff]   ;;  %v2796_v15 = vld [vmem:[%s3945_s0 + $0x40] sm:$0xff] }
 0x402   :  { %v1240_v23 = vmul.f32 0.5, %v1236_v12  ;;  %v1193_v24 = vpop.f32.mrb[11].mxu0  ;;  %v1234_v25 = vpop.f32.mrb[19].mxu1  ;;  %v3742_v12 = vld [vmem:[%s3944_s1 + $0x8] ss:$16 sps:$4 sm:$0xff]   ;;  %v1268_v22 = vunpack.c.h.bf16 %v2796_v15 }
 0x403   :  { %v1244_v26 = vmul.f32 0.5, %v1237_v16  ;;  %v1249_v30 = vmul.f32 0.5, %v1239_v29  ;;  %v1267_v16 = vunpack.c.l.bf16 %v2796_v15  ;;  %v2797_v17 = vld [vmem:[%s3945_s0 + $0x48] sm:$0xff] }
 0x404   :  { %3113 = vtanh.f32 %v1240_v23 }
 0x405   :  { %3115 = vtanh.f32 %v1244_v26  ;;  %v1269_v26 = vunpack.c.l.bf16 %v2797_v17 }
 0x406   :  { %3117 = vtanh.f32 %v1238_v27 }
 0x407   :  { %3119 = vtanh.f32 %v1249_v30 }
 0x40e   :  { %v3114_v31 = vpop.eup %3113 }
 0x40f   :  { %v3116_v32 = vpop.eup %3115  ;;  %v1242_v33 = vmul.f32 0.5, %v3114_v31 }
 0x410   :  { %v1246_v20 = vmul.f32 0.5, %v3116_v32  ;;  %v3118_v49 = vpop.eup %3117 }
 0x411   :  { %v1243_v47 = vadd.f32 0.5, %v1242_v33  ;;  %v3120_v6 = vpop.eup %3119 }
 0x412   :  { %v1247_v50 = vadd.f32 0.5, %v1246_v20  ;;  %v1251_v7 = vmul.f32 0.5, %v3120_v6 }
 0x413   :  { %v1254_v0 = vmul.f32 %v3118_v49, %v1243_v47 }
 0x414   :  { %v1253_v51 = vmul.f32 %v1247_v50, %v3521_v48  ;;  %v1252_v8 = vadd.f32 0.5, %v1251_v7  ;;  %v3737_v48 = vld [vmem:[%s3944_s1 + $0xc] ss:$16 sps:$4 sm:$0xff]   ;;  %v1270_v50 = vunpack.c.h.bf16 %v2797_v17 }
 0x415   :  { %1815 = vmatprep.subr.bf16.mxu1 %v3737_v48 }
 0x416   :  { %v3709_v53 = vadd.f32 %v1254_v0, %v1253_v51 }
 0x418   :  { %3121 = vtanh.f32 %v3709_v53 }
 0x422   :  { %v3122_v9 = vpop.eup %3121 }
 0x423   :  { %v3712_v10 = vmul.f32 %v3122_v9, %v1252_v8 }
 0x425   :  { %v1271_v11 = vpack.c.bf16 %v3712_v10, %v3712_v10 }
 0x427   :  { %1497 = vmatmul.mubr.bf16.vlgmr.msra.gmra.mrb[12].mxu0 %v1271_v11  ;;  %1538 = vmatmul.mubr.bf16.vlgmr.msra.gmra.mrb[20].mxu1 %v1271_v11 }
 0x428   :  { %1775 = vmatpush1.bf16.msra.mxu0 %v3541_v55  ;;  %1806 = vmatprep.mubr.bf16.mxu0 %v3163_v1 }
 0x429   :  { %1776 = vmatprep.subr.bf16.mxu0 %v3548_v18  ;;  %1847 = vmatprep.mubr.bf16.mxu1 %v3163_v1 }
 0x42a   :  { %1816 = vmatpush1.bf16.msra.mxu1 %v3742_v12 }
 0x42b   :  { %1817 = vmatprep.subr.bf16.mxu1 %v3749_v13 }
 0x42c   :  { %1777 = vmatpush1.bf16.msra.mxu0 %v3553_v19 }
 0x42d   :  { %1778 = vmatprep.subr.bf16.mxu0 %v3560_v21 }
 0x42e   :  { %1818 = vmatpush1.bf16.msra.mxu1 %v3754_v14 }
 0x42f   :  { %1819 = vmatprep.subr.bf16.mxu1 %v3565_v56 }
 0x430   :  { %1779 = vmatpush1.bf16.msra.mxu0 %v3570_v57 }
 0x431   :  { %1780 = vmatprep.subr.bf16.mxu0 %v3584_v59 }
 0x432   :  { %1820 = vmatpush1.bf16.msra.mxu1 %v3575_v58 }
 0x433   :  { %1821 = vmatprep.subr.bf16.mxu1 %v3589_v60 }
 0x434   :  { %1781 = vmatpush1.bf16.msra.mxu0 %v3594_v61 }
 0x435   :  { %1782 = vmatprep.subr.bf16.mxu0 %v3608_v63 }
 0x436   :  { %1822 = vmatpush1.bf16.msra.mxu1 %v3599_v62 }
 0x437   :  { %1823 = vmatprep.subr.bf16.mxu1 %v3613_v34 }
 0x438   :  { %1783 = vmatpush1.bf16.msra.mxu0 %v3618_v35 }
 0x439   :  { %1784 = vmatprep.subr.bf16.mxu0 %v3632_v37 }
 0x43a   :  { %1824 = vmatpush1.bf16.msra.mxu1 %v3623_v36 }
 0x43b   :  { %1825 = vmatprep.subr.bf16.mxu1 %v3637_v39 }
 0x43c   :  { %1785 = vmatpush1.bf16.msra.mxu0 %v3642_v40 }
 0x43d   :  { %1786 = vmatprep.subr.bf16.mxu0 %v3656_v42 }
 0x43e   :  { %1826 = vmatpush1.bf16.msra.mxu1 %v3647_v41 }
 0x43f   :  { %1827 = vmatprep.subr.bf16.mxu1 %v3661_v43 }
 0x440   :  { %1787 = vmatpush1.bf16.msra.mxu0 %v3666_v44 }
 0x441   :  { %1788 = vmatprep.subr.bf16.mxu0 %v3680_v2 }
 0x442   :  { %1828 = vmatpush1.bf16.msra.mxu1 %v3671_v46 }
 0x443   :  { %1829 = vmatprep.subr.bf16.mxu1 %v3685_v3 }
 0x444   :  { %1789 = vmatpush1.bf16.msra.mxu0 %v3690_v4 }
 0x445   :  { %2084 = vmatprep.subr.bf16.mxu0 %v3536_v54 }
 0x446   :  { %1830 = vmatpush1.bf16.msra.mxu1 %v3695_v5 }
 0x447   :  { %2125 = vmatprep.subr.bf16.mxu1 %v3737_v48 }
 0x4fa   :  { %v1498_v23 = vpop.f32.mrb[12].mxu0  ;;  %v1539_v24 = vpop.f32.mrb[20].mxu1 }
 0x4fb   :  { %v1546_v25 = vadd.f32 %v1498_v23, %v1267_v16  ;;  %v1500_v27 = vpop.f32.mrb[13].mxu0  ;;  %v1541_v28 = vpop.f32.mrb[21].mxu1  ;;  %v1548_v49 = vadd.f32 %v1539_v24, %v1269_v26 }
 0x4fc   :  { %v1547_v29 = vadd.f32 %v1500_v27, %v1268_v22  ;;  %v1502_v30 = vpop.f32.mrb[14].mxu0  ;;  %v1543_v31 = vpop.f32.mrb[22].mxu1  ;;  %v1549_v0 = vadd.f32 %v1541_v28, %v1270_v50 }
 0x4fd   :  { %v1550_v32 = vmul.f32 0.5, %v1546_v25  ;;  %v1503_v33 = vpop.f32.mrb[15].mxu0  ;;  %v1544_v20 = vpop.f32.mrb[23].mxu1  ;;  %v2831_v31 = vld [vmem:[%s3945_s0 + $0x58] sm:$0xff] }
 0x4fe   :  { %v1554_v47 = vmul.f32 0.5, %v1547_v29  ;;  %v1559_v51 = vmul.f32 0.5, %v1549_v0 }
 0x4ff   :  { %3123 = vtanh.f32 %v1550_v32 }
 0x500   :  { %3125 = vtanh.f32 %v1554_v47 }
 0x501   :  { %3127 = vtanh.f32 %v1548_v49  ;;  %v1579_v49 = vunpack.c.l.bf16 %v2831_v31 }
 0x502   :  { %3129 = vtanh.f32 %v1559_v51 }
 0x509   :  { %v3124_v6 = vpop.eup %3123 }
 0x50a   :  { %v3126_v7 = vpop.eup %3125  ;;  %v1552_v8 = vmul.f32 0.5, %v3124_v6 }
 0x50b   :  { %v1556_v9 = vmul.f32 0.5, %v3126_v7  ;;  %v3128_v15 = vpop.eup %3127 }
 0x50c   :  { %v1553_v11 = vadd.f32 0.5, %v1552_v8  ;;  %v3130_v17 = vpop.eup %3129 }
 0x50d   :  { %v1557_v16 = vadd.f32 0.5, %v1556_v9  ;;  %v1561_v24 = vmul.f32 0.5, %v3130_v17 }
 0x50e   :  { %v1564_v22 = vmul.f32 %v3128_v15, %v1553_v11  ;;  %v1580_v15 = vunpack.c.h.bf16 %v2831_v31 }
 0x50f   :  { %v1563_v23 = vmul.f32 %v1557_v16, %v3709_v53  ;;  %v1562_v26 = vadd.f32 0.5, %v1561_v24  ;;  %v2830_v53 = vld [vmem:[%s3945_s0 + $0x50] sm:$0xff] }
 0x510   :  { %v1577_v30 = vunpack.c.l.bf16 %v2830_v53  ;;  %v1578_v32 = vunpack.c.h.bf16 %v2830_v53 }
 0x511   :  { %v3778_v25 = vadd.f32 %v1564_v22, %v1563_v23 }
 0x513   :  { %3131 = vtanh.f32 %v3778_v25 }
 0x51d   :  { %v3132_v27 = vpop.eup %3131 }
 0x51e   :  { %v3781_v28 = vmul.f32 %v3132_v27, %v1562_v26 }
 0x520   :  { %v1581_v29 = vpack.c.bf16 %v3781_v28, %v3781_v28 }
 0x522   :  { %1807 = vmatmul.mubr.bf16.vlgmr.msra.gmra.mrb[16].mxu0 %v1581_v29  ;;  %1848 = vmatmul.mubr.bf16.vlgmr.msra.gmra.mrb[24].mxu1 %v1581_v29 }
 0x523   :  { %2085 = vmatpush1.bf16.msra.mxu0 %v3541_v55  ;;  %2126 = vmatpush1.bf16.msra.mxu1 %v3742_v12 }
 0x524   :  { %2086 = vmatprep.subr.bf16.mxu0 %v3548_v18  ;;  %2127 = vmatprep.subr.bf16.mxu1 %v3749_v13 }
 0x525   :  { %2116 = vmatprep.mubr.bf16.mxu0 %v3163_v1  ;;  %2157 = vmatprep.mubr.bf16.mxu1 %v3163_v1 }
 0x527   :  { %2087 = vmatpush1.bf16.msra.mxu0 %v3553_v19  ;;  %2128 = vmatpush1.bf16.msra.mxu1 %v3754_v14 }
 0x528   :  { %2088 = vmatprep.subr.bf16.mxu0 %v3560_v21  ;;  %2129 = vmatprep.subr.bf16.mxu1 %v3565_v56 }
 0x52b   :  { %2089 = vmatpush1.bf16.msra.mxu0 %v3570_v57  ;;  %2130 = vmatpush1.bf16.msra.mxu1 %v3575_v58 }
 0x52c   :  { %2090 = vmatprep.subr.bf16.mxu0 %v3584_v59  ;;  %2131 = vmatprep.subr.bf16.mxu1 %v3589_v60 }
 0x52f   :  { %2091 = vmatpush1.bf16.msra.mxu0 %v3594_v61  ;;  %2132 = vmatpush1.bf16.msra.mxu1 %v3599_v62 }
 0x530   :  { %2092 = vmatprep.subr.bf16.mxu0 %v3608_v63  ;;  %2133 = vmatprep.subr.bf16.mxu1 %v3613_v34 }
 0x533   :  { %2093 = vmatpush1.bf16.msra.mxu0 %v3618_v35  ;;  %2134 = vmatpush1.bf16.msra.mxu1 %v3623_v36 }
 0x534   :  { %2094 = vmatprep.subr.bf16.mxu0 %v3632_v37  ;;  %2135 = vmatprep.subr.bf16.mxu1 %v3637_v39 }
 0x537   :  { %2095 = vmatpush1.bf16.msra.mxu0 %v3642_v40  ;;  %2136 = vmatpush1.bf16.msra.mxu1 %v3647_v41 }
 0x538   :  { %2096 = vmatprep.subr.bf16.mxu0 %v3656_v42  ;;  %2137 = vmatprep.subr.bf16.mxu1 %v3661_v43 }
 0x53b   :  { %2097 = vmatpush1.bf16.msra.mxu0 %v3666_v44  ;;  %2138 = vmatpush1.bf16.msra.mxu1 %v3671_v46 }
 0x53c   :  { %2098 = vmatprep.subr.bf16.mxu0 %v3680_v2  ;;  %2139 = vmatprep.subr.bf16.mxu1 %v3685_v3 }
 0x53f   :  { %2099 = vmatpush1.bf16.msra.mxu0 %v3690_v4  ;;  %2140 = vmatpush1.bf16.msra.mxu1 %v3695_v5 }
 0x540   :  { %2394 = vmatprep.subr.bf16.mxu0 %v3536_v54  ;;  %2435 = vmatprep.subr.bf16.mxu1 %v3737_v48 }
 0x5f5   :  { %v1808_v33 = vpop.f32.mrb[16].mxu0  ;;  %v1849_v20 = vpop.f32.mrb[24].mxu1 }
 0x5f6   :  { %v1856_v47 = vadd.f32 %v1808_v33, %v1577_v30  ;;  %v1810_v50 = vpop.f32.mrb[17].mxu0  ;;  %v1851_v0 = vpop.f32.mrb[25].mxu1  ;;  %v1858_v11 = vadd.f32 %v1849_v20, %v1579_v49 }
 0x5f7   :  { %v1857_v51 = vadd.f32 %v1810_v50, %v1578_v32  ;;  %v1812_v54 = vpop.f32.mrb[18].mxu0  ;;  %v1853_v6 = vpop.f32.mrb[26].mxu1  ;;  %v1859_v16 = vadd.f32 %v1851_v0, %v1580_v15  ;;  %v3077_v15 = vld [vmem:[%s3946_s2 + $0x10] sm:$0xff]  }
 0x5f8   :  { %v1860_v48 = vmul.f32 0.5, %v1856_v47  ;;  %v1813_v7 = vpop.f32.mrb[19].mxu0  ;;  %v1854_v8 = vpop.f32.mrb[27].mxu1 }
 0x5f9   :  { %v1864_v9 = vmul.f32 0.5, %v1857_v51  ;;  %v1869_v22 = vmul.f32 0.5, %v1859_v16  ;;  %v3078_v16 = vld [vmem:[%s3946_s2 + $0x18] sm:$0xff]  }
 0x5fa   :  { %3133 = vtanh.f32 %v1860_v48 }
 0x5fb   :  { %3135 = vtanh.f32 %v1864_v9  ;;  %v3076_v9 = vld [vmem:[%s3946_s2 + $0x8] sm:$0xff]  }
 0x5fc   :  { %3137 = vtanh.f32 %v1858_v11  ;;  %v2510_v11 = vpack.c.bf16 %v3477_v45, %v3429_v38  ;;  %v3079_v38 = vld [vmem:[%s3946_s2 + $0x20] sm:$0xff]   ;;  %v3080_v45 = vld [vmem:[%s3946_s2 + $0x28] sm:$0xff]  }
 0x5fd   :  { %3139 = vtanh.f32 %v1869_v22  ;;  %v3081_v22 = vld [vmem:[%s3946_s2 + $0x30] sm:$0xff]  }
 0x604   :  { %v3134_v23 = vpop.eup %3133 }
 0x605   :  { %v3136_v17 = vpop.eup %3135  ;;  %v1862_v24 = vmul.f32 0.5, %v3134_v23  ;;  %v3082_v23 = vld [vmem:[%s3946_s2 + $0x38] sm:$0xff]  }
 0x606   :  { %v1866_v26 = vmul.f32 0.5, %v3136_v17  ;;  %v3138_v29 = vpop.eup %3137  ;;  %v2511_v17 = vpack.c.bf16 %v3712_v10, %v3524_v52 }
 0x607   :  { %v1863_v27 = vadd.f32 0.5, %v1862_v24  ;;  %v3140_v31 = vpop.eup %3139 }
 0x608   :  { %v1867_v53 = vadd.f32 0.5, %v1866_v26  ;;  %v1871_v20 = vmul.f32 0.5, %v3140_v31  ;;  %v2898_v26 = vld [vmem:[%s3945_s0 + $0x70] sm:$0xff] }
 0x609   :  { %v1874_v30 = vmul.f32 %v3138_v29, %v1863_v27  ;;  %v2197_v27 = vunpack.c.l.bf16 %v2898_v26  ;;  %v2899_v29 = vld [vmem:[%s3945_s0 + $0x78] sm:$0xff] }
 0x60a   :  { %v1873_v32 = vmul.f32 %v1867_v53, %v3778_v25  ;;  %v1872_v47 = vadd.f32 0.5, %v1871_v20  ;;  %v2198_v53 = vunpack.c.h.bf16 %v2898_v26  ;;  %v2199_v31 = vunpack.c.l.bf16 %v2899_v29 }
 0x60c   :  { %v3826_v33 = vadd.f32 %v1874_v30, %v1873_v32 }
 0x60e   :  { %3141 = vtanh.f32 %v3826_v33 }
 0x618   :  { %v3142_v49 = vpop.eup %3141 }
 0x619   :  { %v3829_v50 = vmul.f32 %v3142_v49, %v1872_v47 }
 0x61b   :  { %v1891_v0 = vpack.c.bf16 %v3829_v50, %v3829_v50  ;;  %v2512_v24 = vpack.c.bf16 %v3829_v50, %v3781_v28 }
 0x61d   :  { %2117 = vmatmul.mubr.bf16.vlgmr.msra.gmra.mrb[20].mxu0 %v1891_v0  ;;  %2158 = vmatmul.mubr.bf16.vlgmr.msra.gmra.mrb[28].mxu1 %v1891_v0 }
 0x61e   :  { %2395 = vmatpush1.bf16.msra.mxu0 %v3541_v55  ;;  %2436 = vmatpush1.bf16.msra.mxu1 %v3742_v12  ;;  %v2864_v55 = vld [vmem:[%s3945_s0 + $0x60] sm:$0xff] }
 0x61f   :  { %2396 = vmatprep.subr.bf16.mxu0 %v3548_v18  ;;  %2437 = vmatprep.subr.bf16.mxu1 %v3749_v13  ;;  %v1887_v18 = vunpack.c.l.bf16 %v2864_v55 }
 0x620   :  { %2426 = vmatprep.mubr.bf16.mxu0 %v3163_v1  ;;  %2467 = vmatprep.mubr.bf16.mxu1 %v3163_v1  ;;  %v3075_v1 = vld [vmem:[%s3946_s2] sm:$0xff]  }
 0x622   :  { %2397 = vmatpush1.bf16.msra.mxu0 %v3553_v19  ;;  %2438 = vmatpush1.bf16.msra.mxu1 %v3754_v14  ;;  %v2865_v19 = vld [vmem:[%s3945_s0 + $0x68] sm:$0xff] }
 0x623   :  { %2398 = vmatprep.subr.bf16.mxu0 %v3560_v21  ;;  %2439 = vmatprep.subr.bf16.mxu1 %v3565_v56  ;;  %v1888_v21 = vunpack.c.h.bf16 %v2864_v55 }
 0x626   :  { %2399 = vmatpush1.bf16.msra.mxu0 %v3570_v57  ;;  %2440 = vmatpush1.bf16.msra.mxu1 %v3575_v58 }
 0x627   :  { %2400 = vmatprep.subr.bf16.mxu0 %v3584_v59  ;;  %2441 = vmatprep.subr.bf16.mxu1 %v3589_v60  ;;  %v1889_v59 = vunpack.c.l.bf16 %v2865_v19 }
 0x62a   :  { %2401 = vmatpush1.bf16.msra.mxu0 %v3594_v61  ;;  %2442 = vmatpush1.bf16.msra.mxu1 %v3599_v62 }
 0x62b   :  { %2402 = vmatprep.subr.bf16.mxu0 %v3608_v63  ;;  %2443 = vmatprep.subr.bf16.mxu1 %v3613_v34 }
 0x62e   :  { %2403 = vmatpush1.bf16.msra.mxu0 %v3618_v35  ;;  %2444 = vmatpush1.bf16.msra.mxu1 %v3623_v36 }
 0x62f   :  { %2404 = vmatprep.subr.bf16.mxu0 %v3632_v37  ;;  %2445 = vmatprep.subr.bf16.mxu1 %v3637_v39 }
 0x632   :  { %2405 = vmatpush1.bf16.msra.mxu0 %v3642_v40  ;;  %2446 = vmatpush1.bf16.msra.mxu1 %v3647_v41  ;;  %v1890_v41 = vunpack.c.h.bf16 %v2865_v19 }
 0x633   :  { %2406 = vmatprep.subr.bf16.mxu0 %v3656_v42  ;;  %2447 = vmatprep.subr.bf16.mxu1 %v3661_v43 }
 0x636   :  { %2407 = vmatpush1.bf16.msra.mxu0 %v3666_v44  ;;  %2448 = vmatpush1.bf16.msra.mxu1 %v3671_v46 }
 0x637   :  { %2408 = vmatprep.subr.bf16.mxu0 %v3680_v2  ;;  %2449 = vmatprep.subr.bf16.mxu1 %v3685_v3 }
 0x63a   :  { %2409 = vmatpush1.bf16.msra.mxu0 %v3690_v4  ;;  %2450 = vmatpush1.bf16.msra.mxu1 %v3695_v5 }
 0x63b   :  { %2953 = vmatprep.subr.bf16.mxu0 %v3075_v1 }
 0x6f0   :  { %v2118_v56 = vpop.f32.mrb[20].mxu0  ;;  %v2159_v57 = vpop.f32.mrb[28].mxu1 }
 0x6f1   :  { %v2166_v58 = vadd.f32 %v2118_v56, %v1887_v18  ;;  %v2120_v60 = vpop.f32.mrb[21].mxu0  ;;  %v2161_v61 = vpop.f32.mrb[29].mxu1  ;;  %v2168_v40 = vadd.f32 %v2159_v57, %v1889_v59  ;;  %v2200_v18 = vunpack.c.h.bf16 %v2899_v29 }
 0x6f2   :  { %v2167_v62 = vadd.f32 %v2120_v60, %v1888_v21  ;;  %v2122_v63 = vpop.f32.mrb[22].mxu0  ;;  %v2163_v34 = vpop.f32.mrb[30].mxu1  ;;  %v2169_v42 = vadd.f32 %v2161_v61, %v1890_v41 }
 0x6f3   :  { %v2170_v35 = vmul.f32 0.5, %v2166_v58  ;;  %v2123_v36 = vpop.f32.mrb[23].mxu0  ;;  %v2164_v37 = vpop.f32.mrb[31].mxu1 }
 0x6f4   :  { %v2174_v39 = vmul.f32 0.5, %v2167_v62  ;;  %v2179_v43 = vmul.f32 0.5, %v2169_v42 }
 0x6f5   :  { %3143 = vtanh.f32 %v2170_v35 }
 0x6f6   :  { %3145 = vtanh.f32 %v2174_v39  ;;  %v2932_v39 = vld [vmem:[%s3947_s3] ss:$0 sm:$0xff] }
 0x6f7   :  { %3147 = vtanh.f32 %v2168_v40 }
 0x6f8   :  { %3149 = vtanh.f32 %v2179_v43 }
 0x6ff   :  { %v3144_v44 = vpop.eup %3143 }
 0x700   :  { %v3146_v46 = vpop.eup %3145  ;;  %v2172_v2 = vmul.f32 0.5, %v3144_v44 }
 0x701   :  { %v2176_v3 = vmul.f32 0.5, %v3146_v46  ;;  %v3148_v5 = vpop.eup %3147 }
 0x702   :  { %v2173_v4 = vadd.f32 0.5, %v2172_v2  ;;  %v3150_v51 = vpop.eup %3149 }
 0x703   :  { %v2177_v12 = vadd.f32 0.5, %v2176_v3  ;;  %v2181_v54 = vmul.f32 0.5, %v3150_v51 }
 0x704   :  { %v2184_v13 = vmul.f32 %v3148_v5, %v2173_v4 }
 0x705   :  { %v2183_v14 = vmul.f32 %v2177_v12, %v3826_v33  ;;  %v2182_v6 = vadd.f32 0.5, %v2181_v54 }
 0x707   :  { %v3875_v25 = vadd.f32 %v2184_v13, %v2183_v14 }
 0x709   :  { %3151 = vtanh.f32 %v3875_v25 }
 0x713   :  { %v3152_v48 = vpop.eup %3151 }
 0x714   :  { %v3878_v7 = vmul.f32 %v3152_v48, %v2182_v6 }
 0x716   :  { %v2201_v8 = vpack.c.bf16 %v3878_v7, %v3878_v7 }
 0x718   :  { %2427 = vmatmul.mubr.bf16.vlgmr.msra.gmra.mrb[24].mxu0 %v2201_v8  ;;  %2468 = vmatmul.mubr.bf16.vlgmr.msra.gmra.mrb[32].mxu1 %v2201_v8 }
 0x719   :  { %2954 = vmatpush3.bf16.msra.mxu0 %v3075_v1  ;;  %2969 = vmatprep.mubr.bf16.mxu0 %v2510_v11 }
 0x71a   :  { %2955 = vmatprep.subr.bf16.mxu0 %v3076_v9 }
 0x71d   :  { %2956 = vmatpush3.bf16.msra.mxu0 %v3076_v9 }
 0x71e   :  { %2957 = vmatprep.subr.bf16.mxu0 %v3077_v15 }
 0x721   :  { %2958 = vmatpush3.bf16.msra.mxu0 %v3077_v15 }
 0x722   :  { %2959 = vmatprep.subr.bf16.mxu0 %v3078_v16 }
 0x725   :  { %2960 = vmatpush3.bf16.msra.mxu0 %v3078_v16 }
 0x726   :  { %2961 = vmatprep.subr.bf16.mxu0 %v3079_v38 }
 0x729   :  { %2962 = vmatpush3.bf16.msra.mxu0 %v3079_v38 }
 0x72a   :  { %2963 = vmatprep.subr.bf16.mxu0 %v3080_v45 }
 0x72d   :  { %2964 = vmatpush3.bf16.msra.mxu0 %v3080_v45 }
 0x72e   :  { %2965 = vmatprep.subr.bf16.mxu0 %v3081_v22 }
 0x731   :  { %2966 = vmatpush3.bf16.msra.mxu0 %v3081_v22 }
 0x732   :  { %2967 = vmatprep.subr.bf16.mxu0 %v3082_v23 }
 0x735   :  { %2968 = vmatpush3.bf16.msra.mxu0 %v3082_v23 }
 0x738   :  { %2970 = vmatmul.mubr.bf16.vlgmr.msra.gmra.mrb[28].mxu0 %v2511_v17 }
 0x739   :  { %2973 = vmatprep.mubr.bf16.mxu0 %v2512_v24 }
 0x7eb   :  { %v2428_v30 = vpop.f32.mrb[24].mxu0  ;;  %v2469_v32 = vpop.f32.mrb[32].mxu1 }
 0x7ec   :  { %v2476_v33 = vadd.f32 %v2428_v30, %v2197_v27  ;;  %v2430_v52 = vpop.f32.mrb[25].mxu0  ;;  %v2471_v10 = vpop.f32.mrb[33].mxu1  ;;  %v2478_v55 = vadd.f32 %v2469_v32, %v2199_v31 }
 0x7ed   :  { %v2477_v20 = vadd.f32 %v2430_v52, %v2198_v53  ;;  %v2432_v28 = vpop.f32.mrb[26].mxu0  ;;  %v2473_v47 = vpop.f32.mrb[34].mxu1  ;;  %v2479_v19 = vadd.f32 %v2471_v10, %v2200_v18 }
 0x7ee   :  { %v2480_v49 = vmul.f32 0.5, %v2476_v33  ;;  %v2433_v50 = vpop.f32.mrb[27].mxu0  ;;  %v2474_v0 = vpop.f32.mrb[35].mxu1 }
 0x7ef   :  { %v2484_v1 = vmul.f32 0.5, %v2477_v20  ;;  %v2489_v21 = vmul.f32 0.5, %v2479_v19 }
 0x7f0   :  { %3153 = vtanh.f32 %v2480_v49 }
 0x7f1   :  { %3155 = vtanh.f32 %v2484_v1 }
 0x7f2   :  { %3157 = vtanh.f32 %v2478_v55 }
 0x7f3   :  { %3159 = vtanh.f32 %v2489_v21 }
 0x7fa   :  { %v3154_v56 = vpop.eup %3153 }
 0x7fb   :  { %v3156_v57 = vpop.eup %3155  ;;  %v2482_v58 = vmul.f32 0.5, %v3154_v56 }
 0x7fc   :  { %v2486_v59 = vmul.f32 0.5, %v3156_v57  ;;  %v3158_v61 = vpop.eup %3157 }
 0x7fd   :  { %v2483_v60 = vadd.f32 0.5, %v2482_v58  ;;  %v3160_v36 = vpop.eup %3159 }
 0x7fe   :  { %v2487_v62 = vadd.f32 0.5, %v2486_v59  ;;  %v2491_v37 = vmul.f32 0.5, %v3160_v36 }
 0x7ff   :  { %v2494_v63 = vmul.f32 %v3158_v61, %v2483_v60 }
 0x800   :  { %v2493_v34 = vmul.f32 %v2487_v62, %v3875_v25  ;;  %v2492_v43 = vadd.f32 0.5, %v2491_v37 }
 0x802   :  { %v2495_v35 = vadd.f32 %v2494_v63, %v2493_v34 }
 0x804   :  { %3161 = vtanh.f32 %v2495_v35 }
 0x80b   :  { %v2971_v40 = vpop.f32.mrb[28].mxu0 }
 0x80c   :  { %v2628_v41 = vadd.f32 %v2971_v40, %v2932_v39  ;;  %v2619_v42 = vpop.f32.mrb[29].mxu0 }
 0x80d   :  { %v2620_v44 = vadd.f32 %v2932_v39, %v2619_v42  ;;  %v2972_v46 = vpop.f32.mrb[30].mxu0 }
 0x80e   :  { %v3162_v2 = vpop.eup %3161  ;;  %2652 = vst [vmem:[%s3948_s4 + $0x10] sm:$0xff] %v2628_v41  ;;  %v2631_v3 = vadd.f32 %v2972_v46, %v2932_v39  ;;  %v2622_v4 = vpop.f32.mrb[31].mxu0 }
 0x80f   :  { %2650 = vst [vmem:[%s3948_s4] sm:$0xff] %v2620_v44  ;;  %v2623_v5 = vadd.f32 %v2932_v39, %v2622_v4  ;;  %v2497_v12 = vmul.f32 %v3162_v2, %v2492_v43 }
 0x810   :  { %2653 = vst [vmem:[%s3948_s4 + $0x18] sm:$0xff] %v2631_v3 }
 0x811   :  { %2651 = vst [vmem:[%s3948_s4 + $0x8] sm:$0xff] %v2623_v5  ;;  %v2513_v13 = vpack.c.bf16 %v2497_v12, %v3878_v7 }
 0x813   :  { %2974 = vmatmul.mubr.bf16.gmra.mrb[32].mxu0 %v2513_v13 }
 0x8e6   :  { %v2975_v14 = vpop.f32.mrb[32].mxu0 }
 0x8e7   :  { %v2644_v25 = vadd.f32 %v2975_v14, %v2932_v39  ;;  %v2635_v51 = vpop.f32.mrb[33].mxu0 }
 0x8e8   :  { %v2636_v54 = vadd.f32 %v2932_v39, %v2635_v51  ;;  %v2976_v6 = vpop.f32.mrb[34].mxu0 }
 0x8e9   :  { %2656 = vst [vmem:[%s3948_s4 + $0x30] sm:$0xff] %v2644_v25  ;;  %v2647_v48 = vadd.f32 %v2976_v6, %v2932_v39  ;;  %v2638_v8 = vpop.f32.mrb[35].mxu0 }
 0x8ea   :  { %2654 = vst [vmem:[%s3948_s4 + $0x20] sm:$0xff] %v2636_v54  ;;  %v2639_v9 = vadd.f32 %v2932_v39, %v2638_v8 }
 0x8eb   :  { %2657 = vst [vmem:[%s3948_s4 + $0x38] sm:$0xff] %v2647_v48 }
 0x8ec   :  { %2655 = vst [vmem:[%s3948_s4 + $0x28] sm:$0xff] %v2639_v9 }

</bundles_post_ra>
